<compile_context>
chip_gen: v6e
topology: v6e:2x2x1
jax: 0.10.0
libtpu: 0.0.40
codegen_flags: <defaults>
</compile_context>

<pallas_src>
import jax
import jax.numpy as jnp
import numpy as np
from jax.experimental import pallas as pl
from jax.experimental.pallas import tpu as pltpu


# ---------------------------------------------------------------------------
# Init-time constants (torch __init__ equivalents; plain JAX, run once).
# ---------------------------------------------------------------------------

def build_grid(grid_dims):
    g0, g1 = grid_dims
    u = jnp.tile(jnp.arange(g0, dtype=jnp.float32) / g0 - 0.5, g1)       # u.repeat(g1)
    v = jnp.repeat(jnp.arange(g1, dtype=jnp.float32) / g1 - 0.5, g0)     # v.expand(g0,-1).t().reshape(-1)
    return jnp.stack((u, v), axis=1)                                      # (N, 2)


def build_weight_matrix(grid, knn, sigma):
    # NOTE: original hardcodes a (2025, 2025) buffer (45x45 grid); generalized to (N, N).
    n = grid.shape[0]
    gnorm = jnp.sum(grid * grid, axis=1, keepdims=True)                   # (N, 1)
    dist = gnorm + gnorm.T - 2.0 * (grid @ grid.T)                        # (N, N)
    weight = jnp.exp(-dist * (1.0 / sigma) * jnp.sqrt(jnp.mean(dist)))
    topv, topi = jax.lax.top_k(weight, knn)                               # sorted descending
    topv = topv.at[:, 0].set(0.0)                                         # zero self weight
    topv = topv / jnp.sum(topv, axis=1, keepdims=True)
    rows = jnp.arange(n)[:, None]
    return jnp.zeros((n, n), jnp.float32).at[rows, topi].set(topv)


def init_linear(key, fan_in, fan_out):
    kw, kb = jax.random.split(key)
    bound = 1.0 / float(np.sqrt(fan_in))
    w = jax.random.uniform(kw, (fan_in, fan_out), jnp.float32, -bound, bound)
    b = jax.random.uniform(kb, (1, fan_out), jnp.float32, -bound, bound)
    return w, b


def init_mlp(key, dims):
    params = []
    for i in range(len(dims) - 1):
        key, sub = jax.random.split(key)
        params.append(init_linear(sub, dims[i], dims[i + 1]))
    return key, params


# ---------------------------------------------------------------------------
# Fused Pallas kernel.
# ---------------------------------------------------------------------------

def _unrolled_small_k_matmul(a, w):
    """(N, C) @ (C, D) with tiny C: unrolled VPU broadcast-FMA (no lane-padded MXU op)."""
    out = a[:, 0:1] * w[0:1, :]
    for c in range(1, w.shape[0]):
        out = out + a[:, c:c + 1] * w[c:c + 1, :]
    return out


def _dot_or_unroll(a, w):
    if w.shape[0] <= 8:                                   # tiny contraction -> VPU
        return _unrolled_small_k_matmul(a, w)
    return jnp.dot(a, w, preferred_element_type=jnp.float32)


def _make_fused_kernel(n_mlp, n_fc, n_w1, n_w3, n_f1, n_f2, mlp_do_last_relu):
    """One grid step = one batch element: PointNet + weight branch + fold branch."""

    def kernel(x_ref, wproj_ref, gproj_ref, *refs):
        f_out, w_out, cw_out = refs[-3], refs[-2], refs[-1]
        weights = iter(refs[:-3])

        def nxt():
            return next(weights)[...]

        # ---- PointNetVanilla: per-point MLP -> global max pool -> FC MLP -----------
        h = x_ref[0].astype(jnp.float32)                  # (Np, 3)
        for li in range(n_mlp):
            w = nxt(); b = nxt()
            h = _dot_or_unroll(h, w) + b
            if li < n_mlp - 1 or mlp_do_last_relu:
                h = jnp.maximum(h, 0.0)
        g = jnp.max(h, axis=0, keepdims=True)             # global max pool -> (1, K)
        for li in range(n_fc):
            w = nxt(); b = nxt()
            g = jnp.dot(g, w, preferred_element_type=jnp.float32) + b
            if li < n_fc - 1:
                g = jnp.maximum(g, 0.0)
        cw = g                                            # (1, K) codeword
        cw_out[...] = cw[None].astype(cw_out.dtype)

        # FoldingNetSingle on cat(A, codeword): layer 0 is A@W0a (passed in as `base`,
        # either precomputed batch-independently or computed just above) plus the
        # broadcast codeword term; remaining layers are plain MXU matmuls.
        def stage_layer0(base, n_layers):
            w0c = nxt(); b0 = nxt()
            hh = base + (jnp.dot(cw, w0c, preferred_element_type=jnp.float32) + b0)
            if n_layers > 1:
                hh = jnp.maximum(hh, 0.0)
            return hh

        def stage_rest(hh, n_layers):
            for li in range(1, n_layers):
                w = nxt(); b = nxt()
                hh = jnp.dot(hh, w, preferred_element_type=jnp.float32) + b
                if li < n_layers - 1:                     # doLastRelu=False
                    hh = jnp.maximum(hh, 0.0)
            return hh

        # ---- Weight_estimate1: cat(weight_mat_normalize, codeword) ------------------
        h = stage_layer0(wproj_ref[...], n_w1)            # wproj = wmat @ W0a (hoisted)
        h = stage_rest(h, n_w1)

        # ---- Weight_estimate3: cat(w, codeword) + fused epilogue --------------------
        w0a = nxt()
        h = stage_layer0(_dot_or_unroll(h, w0a), n_w3)
        h = stage_rest(h, n_w3)
        h = jnp.maximum(h, 0.0)                            # torch: w[w < 0] = 0
        inv = 1.0 / jnp.sum(h, axis=1, keepdims=True)      # exact row-sum reciprocal
        h = h * inv                                        # row-normalize
        h = 0.5 * h + 0.5 * h.T                            # symmetrize (XLU transpose, fused)
        w_out[...] = h[None].astype(w_out.dtype)

        # ---- Fold1: cat(grid, codeword) ---------------------------------------------
        h = stage_layer0(gproj_ref[...], n_f1)             # gproj = grid @ W0a (hoisted)
        h = stage_rest(h, n_f1)

        # ---- Fold2: cat(f, codeword) --------------------------------------------------
        w0a = nxt()                                        # (3, D) -> unrolled VPU
        h = stage_layer0(_dot_or_unroll(h, w0a), n_f2)
        h = stage_rest(h, n_f2)
        f_out[...] = h[None].astype(f_out.dtype)

    return kernel


# ---------------------------------------------------------------------------
# pallas_call wrapper.
# ---------------------------------------------------------------------------

def _const_spec(shape):
    zeros = (0,) * len(shape)
    return pl.BlockSpec(shape, lambda b, _z=zeros: _z)


def foldingnet_forward(x, model):
    B, Np, Cin = x.shape
    N = model.N
    K = model.fc_params[-1][0].shape[1]
    out_f_dim = model.fold2_params[-1][0].shape[1]
    hi = jax.lax.Precision.HIGHEST

    # Batch-independent hoists: project the constant graph-weight matrix / folding grid
    # through the A-half of the corresponding layer-0 weights ONCE (instead of redoing
    # the (N,N)@(N,D) matmul and DMA-ing the broadcast (B,N,N) matrix per batch element).
    w1_0w, w1_0b = model.w1_params[0]
    f1_0w, f1_0b = model.fold1_params[0]
    wmat_proj = jnp.dot(model.weight_mat_normalize, w1_0w[:N], precision=hi)   # (N, D_w1)
    grid_proj = jnp.dot(model.grid, f1_0w[:2], precision=hi)                   # (N, D_f1)

    inputs = [x, wmat_proj, grid_proj]
    in_specs = [pl.BlockSpec((1, Np, Cin), lambda b: (b, 0, 0)),
                _const_spec(wmat_proj.shape),
                _const_spec(grid_proj.shape)]

    def add_const(arr):
        inputs.append(arr)
        in_specs.append(_const_spec(arr.shape))

    # PointNet weights.
    for w, b in list(model.mlp_params) + list(model.fc_params):
        add_const(w); add_const(b)

    # Weight_estimate1: codeword-half of layer 0 + bias, then remaining layers.
    add_const(w1_0w[N:]); add_const(w1_0b)
    for w, b in model.w1_params[1:]:
        add_const(w); add_const(b)

    # Weight_estimate3: a-half, codeword-half, bias, then remaining layers.
    d_w1 = model.w1_params[-1][0].shape[1]
    w3_0w, w3_0b = model.w3_params[0]
    add_const(w3_0w[:d_w1]); add_const(w3_0w[d_w1:]); add_const(w3_0b)
    for w, b in model.w3_params[1:]:
        add_const(w); add_const(b)

    # Fold1: codeword-half of layer 0 + bias, then remaining layers.
    add_const(f1_0w[2:]); add_const(f1_0b)
    for w, b in model.fold1_params[1:]:
        add_const(w); add_const(b)

    # Fold2: a-half, codeword-half, bias, then remaining layers.
    d_f1 = model.fold1_params[-1][0].shape[1]
    f2_0w, f2_0b = model.fold2_params[0]
    add_const(f2_0w[:d_f1]); add_const(f2_0w[d_f1:]); add_const(f2_0b)
    for w, b in model.fold2_params[1:]:
        add_const(w); add_const(b)

    kernel = _make_fused_kernel(
        len(model.mlp_params), len(model.fc_params),
        len(model.w1_params), len(model.w3_params),
        len(model.fold1_params), len(model.fold2_params),
        model.mlp_do_last_relu)

    f, w, cw3 = pl.pallas_call(
        kernel,
        out_shape=(jax.ShapeDtypeStruct((B, N, out_f_dim), jnp.float32),
                   jax.ShapeDtypeStruct((B, N, N), jnp.float32),
                   jax.ShapeDtypeStruct((B, 1, K), jnp.float32)),
        grid_spec=pltpu.PrefetchScalarGridSpec(
            num_scalar_prefetch=0,
            grid=(B,),
            in_specs=in_specs,
            out_specs=[pl.BlockSpec((1, N, out_f_dim), lambda b: (b, 0, 0)),
                       pl.BlockSpec((1, N, N), lambda b: (b, 0, 0)),
                       pl.BlockSpec((1, 1, K), lambda b: (b, 0, 0))]),
        compiler_params=pltpu.CompilerParams(
            dimension_semantics=("parallel",),
            # The fused (N,N) weight matrix + its transpose exceed the 64-vreg register
            # file and spill; give the compiler generous spill scratch + VMEM headroom.
            internal_scratch_in_bytes=4 * 1024 * 1024,
            vmem_limit_bytes=32 * 1024 * 1024),
    )(*inputs)
    return f, w, cw3[:, 0, :]


# ---------------------------------------------------------------------------
# Model.
# ---------------------------------------------------------------------------

class FoldingNetVanillaPallas:
    def __init__(self, key, MLP_dims, FC_dims, grid_dims, Folding1_dims,
                 Folding2_dims, Weight1_dims, Weight3_dims, knn=96,
                 sigma=0.008, MLP_doLastRelu=False):
        assert MLP_dims[-1] == FC_dims[0]
        self.N = grid_dims[0] * grid_dims[1]
        cw_dim = FC_dims[-1]
        # shape constraints implied by the torch forward (concats / square transpose)
        assert Weight1_dims[0] == self.N + cw_dim
        assert Weight3_dims[0] == Weight1_dims[-1] + cw_dim
        assert Weight3_dims[-1] == self.N
        assert Folding1_dims[0] == 2 + cw_dim
        assert Folding2_dims[0] == Folding1_dims[-1] + cw_dim

        self.mlp_do_last_relu = MLP_doLastRelu
        self.grid = build_grid(grid_dims)
        self.weight_mat_normalize = build_weight_matrix(self.grid, knn, sigma)

        key, self.mlp_params = init_mlp(key, MLP_dims)
        key, self.fc_params = init_mlp(key, FC_dims)
        key, self.fold1_params = init_mlp(key, Folding1_dims)
        key, self.fold2_params = init_mlp(key, Folding2_dims)
        key, self.w1_params = init_mlp(key, Weight1_dims)
        key, self.w3_params = init_mlp(key, Weight3_dims)

    def __call__(self, x):
        return foldingnet_forward(x, self)


# ---------------------------------------------------------------------------
# Pure-JAX reference for a correctness check.
# ---------------------------------------------------------------------------

def _mlp_ref(x, params, do_last_relu=False):
    n = len(params)
    for i, (w, b) in enumerate(params):
        x = jnp.dot(x, w, precision=jax.lax.Precision.HIGHEST) + b
        if i < n - 1 or do_last_relu:
            x = jnp.maximum(x, 0.0)
    return x


def reference_forward(model, x):
    B = x.shape[0]
    N = model.N
    h = _mlp_ref(x, model.mlp_params, model.mlp_do_last_relu)          # (B, Np, K)
    g = jnp.max(h, axis=1)                                             # (B, K)
    cw = _mlp_ref(g, model.fc_params, False)                           # (B, K)
    code = jnp.broadcast_to(cw[:, None, :], (B, N, cw.shape[-1]))
    wmat = jnp.broadcast_to(model.weight_mat_normalize[None], (B, N, N))
    w = _mlp_ref(jnp.concatenate([wmat, code], axis=2), model.w1_params)
    w = _mlp_ref(jnp.concatenate([w, code], axis=2), model.w3_params)
    w = jnp.maximum(w, 0.0)
    w = w / jnp.sum(w, axis=2, keepdims=True)
    w = 0.5 * w + 0.5 * jnp.swapaxes(w, 1, 2)
    grid_b = jnp.broadcast_to(model.grid[None], (B, N, 2))
    f = _mlp_ref(jnp.concatenate([grid_b, code], axis=2), model.fold1_params)
    f = _mlp_ref(jnp.concatenate([f, code], axis=2), model.fold2_params)
    return f, w, cw


if __name__ == "__main__":
    # Small config consistent with the module's shape constraints:
    # 16x16 folding grid -> N = 256 grid points, codeword dim K = 64.
    MLP_dims = (3, 64, 64, 64)
    FC_dims = (64, 64, 64)
    grid_dims = (16, 16)
    N = grid_dims[0] * grid_dims[1]
    K = FC_dims[-1]
    Folding1_dims = (K + 2, 64, 3)
    Folding2_dims = (K + 3, 64, 3)
    Weight1_dims = (N + K, 64, 64)
    Weight3_dims = (64 + K, 64, N)
    knn = 48
    sigma = 0.008

    B, Np = 2, 128

    root = jax.random.PRNGKey(0)
    kx, kp = jax.random.split(root)
    x = jax.random.normal(kx, (B, Np, 3), dtype=jnp.float32)

    model = FoldingNetVanillaPallas(kp, MLP_dims, FC_dims, grid_dims,
                                    Folding1_dims, Folding2_dims,
                                    Weight1_dims, Weight3_dims,
                                    knn=knn, sigma=sigma, MLP_doLastRelu=False)

    fwd = jax.jit(model.__call__)
    f, w, cw = jax.block_until_ready(fwd(x))

    f_r, w_r, cw_r = reference_forward(model, x)
    for name, got, ref in (("fold", f, f_r), ("weight", w, w_r), ("codeword", cw, cw_r)):
        err = float(jnp.max(jnp.abs(got - ref)))
        assert err < 2e-3, (name, err)

    assert f.shape == (B, N, 3) and w.shape == (B, N, N) and cw.shape == (B, K)
    print("KERNEL_OK")
</pallas_src>

<mosaic_0001>
module attributes {stable_mosaic.version = 11 : i64} {
  func.func @kernel(%arg0: i32, %arg1: memref<1x128x3xf32, #tpu.memory_space<vmem>>, %arg2: memref<256x64xf32, #tpu.memory_space<vmem>>, %arg3: memref<256x64xf32, #tpu.memory_space<vmem>>, %arg4: memref<3x64xf32, #tpu.memory_space<vmem>>, %arg5: memref<1x64xf32, #tpu.memory_space<vmem>>, %arg6: memref<64x64xf32, #tpu.memory_space<vmem>>, %arg7: memref<1x64xf32, #tpu.memory_space<vmem>>, %arg8: memref<64x64xf32, #tpu.memory_space<vmem>>, %arg9: memref<1x64xf32, #tpu.memory_space<vmem>>, %arg10: memref<64x64xf32, #tpu.memory_space<vmem>>, %arg11: memref<1x64xf32, #tpu.memory_space<vmem>>, %arg12: memref<64x64xf32, #tpu.memory_space<vmem>>, %arg13: memref<1x64xf32, #tpu.memory_space<vmem>>, %arg14: memref<64x64xf32, #tpu.memory_space<vmem>>, %arg15: memref<1x64xf32, #tpu.memory_space<vmem>>, %arg16: memref<64x64xf32, #tpu.memory_space<vmem>>, %arg17: memref<1x64xf32, #tpu.memory_space<vmem>>, %arg18: memref<64x64xf32, #tpu.memory_space<vmem>>, %arg19: memref<64x64xf32, #tpu.memory_space<vmem>>, %arg20: memref<1x64xf32, #tpu.memory_space<vmem>>, %arg21: memref<64x256xf32, #tpu.memory_space<vmem>>, %arg22: memref<1x256xf32, #tpu.memory_space<vmem>>, %arg23: memref<64x64xf32, #tpu.memory_space<vmem>>, %arg24: memref<1x64xf32, #tpu.memory_space<vmem>>, %arg25: memref<64x3xf32, #tpu.memory_space<vmem>>, %arg26: memref<1x3xf32, #tpu.memory_space<vmem>>, %arg27: memref<3x64xf32, #tpu.memory_space<vmem>>, %arg28: memref<64x64xf32, #tpu.memory_space<vmem>>, %arg29: memref<1x64xf32, #tpu.memory_space<vmem>>, %arg30: memref<64x3xf32, #tpu.memory_space<vmem>>, %arg31: memref<1x3xf32, #tpu.memory_space<vmem>>, %arg32: memref<1x256x3xf32, #tpu.memory_space<vmem>>, %arg33: memref<1x256x256xf32, #tpu.memory_space<vmem>>, %arg34: memref<1x1x64xf32, #tpu.memory_space<vmem>>) attributes {dimension_semantics = [#tpu.dimension_semantics<parallel>], iteration_bounds = array<i64: 2>, scalar_prefetch = 0 : i64, scratch_operands = 0 : i64, tpu.core_type = #tpu.core_type<tc>, window_params = [{transform_indices = @transform_0, window_bounds = array<i64: 1, 128, 3>}, {pipeline_mode = #tpu.pipeline_mode<synchronous>, transform_indices = @transform_1, window_bounds = array<i64: 256, 64>}, {pipeline_mode = #tpu.pipeline_mode<synchronous>, transform_indices = @transform_2, window_bounds = array<i64: 256, 64>}, {pipeline_mode = #tpu.pipeline_mode<synchronous>, transform_indices = @transform_3, window_bounds = array<i64: 3, 64>}, {pipeline_mode = #tpu.pipeline_mode<synchronous>, transform_indices = @transform_4, window_bounds = array<i64: 1, 64>}, {pipeline_mode = #tpu.pipeline_mode<synchronous>, transform_indices = @transform_5, window_bounds = array<i64: 64, 64>}, {pipeline_mode = #tpu.pipeline_mode<synchronous>, transform_indices = @transform_6, window_bounds = array<i64: 1, 64>}, {pipeline_mode = #tpu.pipeline_mode<synchronous>, transform_indices = @transform_7, window_bounds = array<i64: 64, 64>}, {pipeline_mode = #tpu.pipeline_mode<synchronous>, transform_indices = @transform_8, window_bounds = array<i64: 1, 64>}, {pipeline_mode = #tpu.pipeline_mode<synchronous>, transform_indices = @transform_9, window_bounds = array<i64: 64, 64>}, {pipeline_mode = #tpu.pipeline_mode<synchronous>, transform_indices = @transform_10, window_bounds = array<i64: 1, 64>}, {pipeline_mode = #tpu.pipeline_mode<synchronous>, transform_indices = @transform_11, window_bounds = array<i64: 64, 64>}, {pipeline_mode = #tpu.pipeline_mode<synchronous>, transform_indices = @transform_12, window_bounds = array<i64: 1, 64>}, {pipeline_mode = #tpu.pipeline_mode<synchronous>, transform_indices = @transform_13, window_bounds = array<i64: 64, 64>}, {pipeline_mode = #tpu.pipeline_mode<synchronous>, transform_indices = @transform_14, window_bounds = array<i64: 1, 64>}, {pipeline_mode = #tpu.pipeline_mode<synchronous>, transform_indices = @transform_15, window_bounds = array<i64: 64, 64>}, {pipeline_mode = #tpu.pipeline_mode<synchronous>, transform_indices = @transform_16, window_bounds = array<i64: 1, 64>}, {pipeline_mode = #tpu.pipeline_mode<synchronous>, transform_indices = @transform_17, window_bounds = array<i64: 64, 64>}, {pipeline_mode = #tpu.pipeline_mode<synchronous>, transform_indices = @transform_18, window_bounds = array<i64: 64, 64>}, {pipeline_mode = #tpu.pipeline_mode<synchronous>, transform_indices = @transform_19, window_bounds = array<i64: 1, 64>}, {pipeline_mode = #tpu.pipeline_mode<synchronous>, transform_indices = @transform_20, window_bounds = array<i64: 64, 256>}, {pipeline_mode = #tpu.pipeline_mode<synchronous>, transform_indices = @transform_21, window_bounds = array<i64: 1, 256>}, {pipeline_mode = #tpu.pipeline_mode<synchronous>, transform_indices = @transform_22, window_bounds = array<i64: 64, 64>}, {pipeline_mode = #tpu.pipeline_mode<synchronous>, transform_indices = @transform_23, window_bounds = array<i64: 1, 64>}, {pipeline_mode = #tpu.pipeline_mode<synchronous>, transform_indices = @transform_24, window_bounds = array<i64: 64, 3>}, {pipeline_mode = #tpu.pipeline_mode<synchronous>, transform_indices = @transform_25, window_bounds = array<i64: 1, 3>}, {pipeline_mode = #tpu.pipeline_mode<synchronous>, transform_indices = @transform_26, window_bounds = array<i64: 3, 64>}, {pipeline_mode = #tpu.pipeline_mode<synchronous>, transform_indices = @transform_27, window_bounds = array<i64: 64, 64>}, {pipeline_mode = #tpu.pipeline_mode<synchronous>, transform_indices = @transform_28, window_bounds = array<i64: 1, 64>}, {pipeline_mode = #tpu.pipeline_mode<synchronous>, transform_indices = @transform_29, window_bounds = array<i64: 64, 3>}, {pipeline_mode = #tpu.pipeline_mode<synchronous>, transform_indices = @transform_30, window_bounds = array<i64: 1, 3>}, {transform_indices = @transform_31, window_bounds = array<i64: 1, 256, 3>}, {transform_indices = @transform_32, window_bounds = array<i64: 1, 256, 256>}, {transform_indices = @transform_33, window_bounds = array<i64: 1, 1, 64>}]} {
    %c0 = arith.constant 0 : index
    %c0_0 = arith.constant 0 : index
    %c0_1 = arith.constant 0 : index
    %0 = vector.load %arg1[%c0, %c0_0, %c0_1] : memref<1x128x3xf32, #tpu.memory_space<vmem>>, vector<1x128x3xf32>
    %1 = vector.shape_cast %0 : vector<1x128x3xf32> to vector<128x3xf32>
    %c0_2 = arith.constant 0 : index
    %c0_3 = arith.constant 0 : index
    %2 = vector.load %arg4[%c0_2, %c0_3] : memref<3x64xf32, #tpu.memory_space<vmem>>, vector<3x64xf32>
    %c0_4 = arith.constant 0 : index
    %c0_5 = arith.constant 0 : index
    %3 = vector.load %arg5[%c0_4, %c0_5] : memref<1x64xf32, #tpu.memory_space<vmem>>, vector<1x64xf32>
    %4 = vector.extract_strided_slice %1 {offsets = [0, 0], sizes = [128, 1], strides = [1, 1]} : vector<128x3xf32> to vector<128x1xf32>
    %5 = vector.extract_strided_slice %2 {offsets = [0, 0], sizes = [1, 64], strides = [1, 1]} : vector<3x64xf32> to vector<1x64xf32>
    %6 = vector.broadcast %4 : vector<128x1xf32> to vector<128x64xf32>
    %7 = vector.broadcast %5 : vector<1x64xf32> to vector<128x64xf32>
    %8 = arith.mulf %6, %7 : vector<128x64xf32>
    %9 = vector.extract_strided_slice %1 {offsets = [0, 1], sizes = [128, 1], strides = [1, 1]} : vector<128x3xf32> to vector<128x1xf32>
    %10 = vector.extract_strided_slice %2 {offsets = [1, 0], sizes = [1, 64], strides = [1, 1]} : vector<3x64xf32> to vector<1x64xf32>
    %11 = vector.broadcast %9 : vector<128x1xf32> to vector<128x64xf32>
    %12 = vector.broadcast %10 : vector<1x64xf32> to vector<128x64xf32>
    %13 = arith.mulf %11, %12 : vector<128x64xf32>
    %14 = arith.addf %8, %13 : vector<128x64xf32>
    %15 = vector.extract_strided_slice %1 {offsets = [0, 2], sizes = [128, 1], strides = [1, 1]} : vector<128x3xf32> to vector<128x1xf32>
    %16 = vector.extract_strided_slice %2 {offsets = [2, 0], sizes = [1, 64], strides = [1, 1]} : vector<3x64xf32> to vector<1x64xf32>
    %17 = vector.broadcast %15 : vector<128x1xf32> to vector<128x64xf32>
    %18 = vector.broadcast %16 : vector<1x64xf32> to vector<128x64xf32>
    %19 = arith.mulf %17, %18 : vector<128x64xf32>
    %20 = arith.addf %14, %19 : vector<128x64xf32>
    %21 = vector.broadcast %3 : vector<1x64xf32> to vector<128x64xf32>
    %22 = arith.addf %20, %21 : vector<128x64xf32>
    %cst = arith.constant 0.000000e+00 : f32
    %23 = vector.broadcast %cst : f32 to vector<128x64xf32>
    %24 = arith.maximumf %22, %23 : vector<128x64xf32>
    %c0_6 = arith.constant 0 : index
    %c0_7 = arith.constant 0 : index
    %25 = vector.load %arg6[%c0_6, %c0_7] : memref<64x64xf32, #tpu.memory_space<vmem>>, vector<64x64xf32>
    %c0_8 = arith.constant 0 : index
    %c0_9 = arith.constant 0 : index
    %26 = vector.load %arg7[%c0_8, %c0_9] : memref<1x64xf32, #tpu.memory_space<vmem>>, vector<1x64xf32>
    %cst_10 = arith.constant dense<0.000000e+00> : vector<128x64xf32>
    %27 = tpu.matmul %24, %25, %cst_10 {dimension_numbers = #tpu.dot_dimension_numbers<[1], [0], [0], [1], [0, 0, 1, 1], [], []>} : vector<128x64xf32>, vector<64x64xf32>, vector<128x64xf32> -> vector<128x64xf32>
    %28 = vector.broadcast %26 : vector<1x64xf32> to vector<128x64xf32>
    %29 = arith.addf %27, %28 : vector<128x64xf32>
    %cst_11 = arith.constant 0.000000e+00 : f32
    %30 = vector.broadcast %cst_11 : f32 to vector<128x64xf32>
    %31 = arith.maximumf %29, %30 : vector<128x64xf32>
    %c0_12 = arith.constant 0 : index
    %c0_13 = arith.constant 0 : index
    %32 = vector.load %arg8[%c0_12, %c0_13] : memref<64x64xf32, #tpu.memory_space<vmem>>, vector<64x64xf32>
    %c0_14 = arith.constant 0 : index
    %c0_15 = arith.constant 0 : index
    %33 = vector.load %arg9[%c0_14, %c0_15] : memref<1x64xf32, #tpu.memory_space<vmem>>, vector<1x64xf32>
    %cst_16 = arith.constant dense<0.000000e+00> : vector<128x64xf32>
    %34 = tpu.matmul %31, %32, %cst_16 {dimension_numbers = #tpu.dot_dimension_numbers<[1], [0], [0], [1], [0, 0, 1, 1], [], []>} : vector<128x64xf32>, vector<64x64xf32>, vector<128x64xf32> -> vector<128x64xf32>
    %35 = vector.broadcast %33 : vector<1x64xf32> to vector<128x64xf32>
    %36 = arith.addf %34, %35 : vector<128x64xf32>
    %cst_17 = arith.constant dense<0xFF800000> : vector<64xf32>
    %37 = vector.multi_reduction <maximumf>, %36, %cst_17 [0] : vector<128x64xf32> to vector<64xf32>
    %38 = vector.shape_cast %37 : vector<64xf32> to vector<1x64xf32>
    %c0_18 = arith.constant 0 : index
    %c0_19 = arith.constant 0 : index
    %39 = vector.load %arg10[%c0_18, %c0_19] : memref<64x64xf32, #tpu.memory_space<vmem>>, vector<64x64xf32>
    %c0_20 = arith.constant 0 : index
    %c0_21 = arith.constant 0 : index
    %40 = vector.load %arg11[%c0_20, %c0_21] : memref<1x64xf32, #tpu.memory_space<vmem>>, vector<1x64xf32>
    %cst_22 = arith.constant dense<0.000000e+00> : vector<1x64xf32>
    %41 = tpu.matmul %38, %39, %cst_22 {dimension_numbers = #tpu.dot_dimension_numbers<[1], [0], [0], [1], [0, 0, 1, 1], [], []>} : vector<1x64xf32>, vector<64x64xf32>, vector<1x64xf32> -> vector<1x64xf32>
    %42 = arith.addf %41, %40 : vector<1x64xf32>
    %cst_23 = arith.constant 0.000000e+00 : f32
    %43 = vector.broadcast %cst_23 : f32 to vector<1x64xf32>
    %44 = arith.maximumf %42, %43 : vector<1x64xf32>
    %c0_24 = arith.constant 0 : index
    %c0_25 = arith.constant 0 : index
    %45 = vector.load %arg12[%c0_24, %c0_25] : memref<64x64xf32, #tpu.memory_space<vmem>>, vector<64x64xf32>
    %c0_26 = arith.constant 0 : index
    %c0_27 = arith.constant 0 : index
    %46 = vector.load %arg13[%c0_26, %c0_27] : memref<1x64xf32, #tpu.memory_space<vmem>>, vector<1x64xf32>
    %cst_28 = arith.constant dense<0.000000e+00> : vector<1x64xf32>
    %47 = tpu.matmul %44, %45, %cst_28 {dimension_numbers = #tpu.dot_dimension_numbers<[1], [0], [0], [1], [0, 0, 1, 1], [], []>} : vector<1x64xf32>, vector<64x64xf32>, vector<1x64xf32> -> vector<1x64xf32>
    %48 = arith.addf %47, %46 : vector<1x64xf32>
    %49 = vector.shape_cast %48 : vector<1x64xf32> to vector<1x1x64xf32>
    %c0_29 = arith.constant 0 : index
    %c0_30 = arith.constant 0 : index
    %c0_31 = arith.constant 0 : index
    %50 = vector.load %arg34[%c0_29, %c0_30, %c0_31] : memref<1x1x64xf32, #tpu.memory_space<vmem>>, vector<1x1x64xf32>
    tpu.vector_store %arg34[%c0_29, %c0_30, %c0_31], %49 {strides = array<i32>} : memref<1x1x64xf32, #tpu.memory_space<vmem>>, vector<1x1x64xf32>,
    %c0_32 = arith.constant 0 : index
    %c0_33 = arith.constant 0 : index
    %51 = vector.load %arg2[%c0_32, %c0_33] : memref<256x64xf32, #tpu.memory_space<vmem>>, vector<256x64xf32>
    %c0_34 = arith.constant 0 : index
    %c0_35 = arith.constant 0 : index
    %52 = vector.load %arg14[%c0_34, %c0_35] : memref<64x64xf32, #tpu.memory_space<vmem>>, vector<64x64xf32>
    %c0_36 = arith.constant 0 : index
    %c0_37 = arith.constant 0 : index
    %53 = vector.load %arg15[%c0_36, %c0_37] : memref<1x64xf32, #tpu.memory_space<vmem>>, vector<1x64xf32>
    %cst_38 = arith.constant dense<0.000000e+00> : vector<1x64xf32>
    %54 = tpu.matmul %48, %52, %cst_38 {dimension_numbers = #tpu.dot_dimension_numbers<[1], [0], [0], [1], [0, 0, 1, 1], [], []>} : vector<1x64xf32>, vector<64x64xf32>, vector<1x64xf32> -> vector<1x64xf32>
    %55 = arith.addf %54, %53 : vector<1x64xf32>
    %56 = vector.broadcast %55 : vector<1x64xf32> to vector<256x64xf32>
    %57 = arith.addf %51, %56 : vector<256x64xf32>
    %cst_39 = arith.constant 0.000000e+00 : f32
    %58 = vector.broadcast %cst_39 : f32 to vector<256x64xf32>
    %59 = arith.maximumf %57, %58 : vector<256x64xf32>
    %c0_40 = arith.constant 0 : index
    %c0_41 = arith.constant 0 : index
    %60 = vector.load %arg16[%c0_40, %c0_41] : memref<64x64xf32, #tpu.memory_space<vmem>>, vector<64x64xf32>
    %c0_42 = arith.constant 0 : index
    %c0_43 = arith.constant 0 : index
    %61 = vector.load %arg17[%c0_42, %c0_43] : memref<1x64xf32, #tpu.memory_space<vmem>>, vector<1x64xf32>
    %cst_44 = arith.constant dense<0.000000e+00> : vector<256x64xf32>
    %62 = tpu.matmul %59, %60, %cst_44 {dimension_numbers = #tpu.dot_dimension_numbers<[1], [0], [0], [1], [0, 0, 1, 1], [], []>} : vector<256x64xf32>, vector<64x64xf32>, vector<256x64xf32> -> vector<256x64xf32>
    %63 = vector.broadcast %61 : vector<1x64xf32> to vector<256x64xf32>
    %64 = arith.addf %62, %63 : vector<256x64xf32>
    %c0_45 = arith.constant 0 : index
    %c0_46 = arith.constant 0 : index
    %65 = vector.load %arg18[%c0_45, %c0_46] : memref<64x64xf32, #tpu.memory_space<vmem>>, vector<64x64xf32>
    %cst_47 = arith.constant dense<0.000000e+00> : vector<256x64xf32>
    %66 = tpu.matmul %64, %65, %cst_47 {dimension_numbers = #tpu.dot_dimension_numbers<[1], [0], [0], [1], [0, 0, 1, 1], [], []>} : vector<256x64xf32>, vector<64x64xf32>, vector<256x64xf32> -> vector<256x64xf32>
    %c0_48 = arith.constant 0 : index
    %c0_49 = arith.constant 0 : index
    %67 = vector.load %arg19[%c0_48, %c0_49] : memref<64x64xf32, #tpu.memory_space<vmem>>, vector<64x64xf32>
    %c0_50 = arith.constant 0 : index
    %c0_51 = arith.constant 0 : index
    %68 = vector.load %arg20[%c0_50, %c0_51] : memref<1x64xf32, #tpu.memory_space<vmem>>, vector<1x64xf32>
    %cst_52 = arith.constant dense<0.000000e+00> : vector<1x64xf32>
    %69 = tpu.matmul %48, %67, %cst_52 {dimension_numbers = #tpu.dot_dimension_numbers<[1], [0], [0], [1], [0, 0, 1, 1], [], []>} : vector<1x64xf32>, vector<64x64xf32>, vector<1x64xf32> -> vector<1x64xf32>
    %70 = arith.addf %69, %68 : vector<1x64xf32>
    %71 = vector.broadcast %70 : vector<1x64xf32> to vector<256x64xf32>
    %72 = arith.addf %66, %71 : vector<256x64xf32>
    %cst_53 = arith.constant 0.000000e+00 : f32
    %73 = vector.broadcast %cst_53 : f32 to vector<256x64xf32>
    %74 = arith.maximumf %72, %73 : vector<256x64xf32>
    %c0_54 = arith.constant 0 : index
    %c0_55 = arith.constant 0 : index
    %75 = vector.load %arg21[%c0_54, %c0_55] : memref<64x256xf32, #tpu.memory_space<vmem>>, vector<64x256xf32>
    %c0_56 = arith.constant 0 : index
    %c0_57 = arith.constant 0 : index
    %76 = vector.load %arg22[%c0_56, %c0_57] : memref<1x256xf32, #tpu.memory_space<vmem>>, vector<1x256xf32>
    %cst_58 = arith.constant dense<0.000000e+00> : vector<256x256xf32>
    %77 = tpu.matmul %74, %75, %cst_58 {dimension_numbers = #tpu.dot_dimension_numbers<[1], [0], [0], [1], [0, 0, 1, 1], [], []>} : vector<256x64xf32>, vector<64x256xf32>, vector<256x256xf32> -> vector<256x256xf32>
    %78 = vector.broadcast %76 : vector<1x256xf32> to vector<256x256xf32>
    %79 = arith.addf %77, %78 : vector<256x256xf32>
    %cst_59 = arith.constant 0.000000e+00 : f32
    %80 = vector.broadcast %cst_59 : f32 to vector<256x256xf32>
    %81 = arith.maximumf %79, %80 : vector<256x256xf32>
    %cst_60 = arith.constant dense<0.000000e+00> : vector<256xf32>
    %82 = vector.multi_reduction <add>, %81, %cst_60 [1] : vector<256x256xf32> to vector<256xf32>
    %83 = vector.shape_cast %82 : vector<256xf32> to vector<256x1xf32>
    %cst_61 = arith.constant 1.000000e+00 : f32
    %84 = vector.broadcast %cst_61 : f32 to vector<256x1xf32>
    %85 = arith.divf %84, %83 : vector<256x1xf32>
    %86 = vector.broadcast %85 : vector<256x1xf32> to vector<256x256xf32>
    %87 = arith.mulf %81, %86 : vector<256x256xf32>
    %cst_62 = arith.constant 5.000000e-01 : f32
    %88 = vector.broadcast %cst_62 : f32 to vector<256x256xf32>
    %89 = arith.mulf %88, %87 : vector<256x256xf32>
    %90 = tpu.transpose %87, [1, 0] : vector<256x256xf32> -> vector<256x256xf32>
    %cst_63 = arith.constant 5.000000e-01 : f32
    %91 = vector.broadcast %cst_63 : f32 to vector<256x256xf32>
    %92 = arith.mulf %91, %90 : vector<256x256xf32>
    %93 = arith.addf %89, %92 : vector<256x256xf32>
    %94 = vector.shape_cast %93 : vector<256x256xf32> to vector<1x256x256xf32>
    %c0_64 = arith.constant 0 : index
    %c0_65 = arith.constant 0 : index
    %c0_66 = arith.constant 0 : index
    %95 = vector.load %arg33[%c0_64, %c0_65, %c0_66] : memref<1x256x256xf32, #tpu.memory_space<vmem>>, vector<1x256x256xf32>
    tpu.vector_store %arg33[%c0_64, %c0_65, %c0_66], %94 {strides = array<i32>} : memref<1x256x256xf32, #tpu.memory_space<vmem>>, vector<1x256x256xf32>,
    %c0_67 = arith.constant 0 : index
    %c0_68 = arith.constant 0 : index
    %96 = vector.load %arg3[%c0_67, %c0_68] : memref<256x64xf32, #tpu.memory_space<vmem>>, vector<256x64xf32>
    %c0_69 = arith.constant 0 : index
    %c0_70 = arith.constant 0 : index
    %97 = vector.load %arg23[%c0_69, %c0_70] : memref<64x64xf32, #tpu.memory_space<vmem>>, vector<64x64xf32>
    %c0_71 = arith.constant 0 : index
    %c0_72 = arith.constant 0 : index
    %98 = vector.load %arg24[%c0_71, %c0_72] : memref<1x64xf32, #tpu.memory_space<vmem>>, vector<1x64xf32>
    %cst_73 = arith.constant dense<0.000000e+00> : vector<1x64xf32>
    %99 = tpu.matmul %48, %97, %cst_73 {dimension_numbers = #tpu.dot_dimension_numbers<[1], [0], [0], [1], [0, 0, 1, 1], [], []>} : vector<1x64xf32>, vector<64x64xf32>, vector<1x64xf32> -> vector<1x64xf32>
    %100 = arith.addf %99, %98 : vector<1x64xf32>
    %101 = vector.broadcast %100 : vector<1x64xf32> to vector<256x64xf32>
    %102 = arith.addf %96, %101 : vector<256x64xf32>
    %cst_74 = arith.constant 0.000000e+00 : f32
    %103 = vector.broadcast %cst_74 : f32 to vector<256x64xf32>
    %104 = arith.maximumf %102, %103 : vector<256x64xf32>
    %c0_75 = arith.constant 0 : index
    %c0_76 = arith.constant 0 : index
    %105 = vector.load %arg25[%c0_75, %c0_76] : memref<64x3xf32, #tpu.memory_space<vmem>>, vector<64x3xf32>
    %c0_77 = arith.constant 0 : index
    %c0_78 = arith.constant 0 : index
    %106 = vector.load %arg26[%c0_77, %c0_78] : memref<1x3xf32, #tpu.memory_space<vmem>>, vector<1x3xf32>
    %cst_79 = arith.constant dense<0.000000e+00> : vector<256x3xf32>
    %107 = tpu.matmul %104, %105, %cst_79 {dimension_numbers = #tpu.dot_dimension_numbers<[1], [0], [0], [1], [0, 0, 1, 1], [], []>} : vector<256x64xf32>, vector<64x3xf32>, vector<256x3xf32> -> vector<256x3xf32>
    %108 = vector.broadcast %106 : vector<1x3xf32> to vector<256x3xf32>
    %109 = arith.addf %107, %108 : vector<256x3xf32>
    %c0_80 = arith.constant 0 : index
    %c0_81 = arith.constant 0 : index
    %110 = vector.load %arg27[%c0_80, %c0_81] : memref<3x64xf32, #tpu.memory_space<vmem>>, vector<3x64xf32>
    %111 = vector.extract_strided_slice %109 {offsets = [0, 0], sizes = [256, 1], strides = [1, 1]} : vector<256x3xf32> to vector<256x1xf32>
    %112 = vector.extract_strided_slice %110 {offsets = [0, 0], sizes = [1, 64], strides = [1, 1]} : vector<3x64xf32> to vector<1x64xf32>
    %113 = vector.broadcast %111 : vector<256x1xf32> to vector<256x64xf32>
    %114 = vector.broadcast %112 : vector<1x64xf32> to vector<256x64xf32>
    %115 = arith.mulf %113, %114 : vector<256x64xf32>
    %116 = vector.extract_strided_slice %109 {offsets = [0, 1], sizes = [256, 1], strides = [1, 1]} : vector<256x3xf32> to vector<256x1xf32>
    %117 = vector.extract_strided_slice %110 {offsets = [1, 0], sizes = [1, 64], strides = [1, 1]} : vector<3x64xf32> to vector<1x64xf32>
    %118 = vector.broadcast %116 : vector<256x1xf32> to vector<256x64xf32>
    %119 = vector.broadcast %117 : vector<1x64xf32> to vector<256x64xf32>
    %120 = arith.mulf %118, %119 : vector<256x64xf32>
    %121 = arith.addf %115, %120 : vector<256x64xf32>
    %122 = vector.extract_strided_slice %109 {offsets = [0, 2], sizes = [256, 1], strides = [1, 1]} : vector<256x3xf32> to vector<256x1xf32>
    %123 = vector.extract_strided_slice %110 {offsets = [2, 0], sizes = [1, 64], strides = [1, 1]} : vector<3x64xf32> to vector<1x64xf32>
    %124 = vector.broadcast %122 : vector<256x1xf32> to vector<256x64xf32>
    %125 = vector.broadcast %123 : vector<1x64xf32> to vector<256x64xf32>
    %126 = arith.mulf %124, %125 : vector<256x64xf32>
    %127 = arith.addf %121, %126 : vector<256x64xf32>
    %c0_82 = arith.constant 0 : index
    %c0_83 = arith.constant 0 : index
    %128 = vector.load %arg28[%c0_82, %c0_83] : memref<64x64xf32, #tpu.memory_space<vmem>>, vector<64x64xf32>
    %c0_84 = arith.constant 0 : index
    %c0_85 = arith.constant 0 : index
    %129 = vector.load %arg29[%c0_84, %c0_85] : memref<1x64xf32, #tpu.memory_space<vmem>>, vector<1x64xf32>
    %cst_86 = arith.constant dense<0.000000e+00> : vector<1x64xf32>
    %130 = tpu.matmul %48, %128, %cst_86 {dimension_numbers = #tpu.dot_dimension_numbers<[1], [0], [0], [1], [0, 0, 1, 1], [], []>} : vector<1x64xf32>, vector<64x64xf32>, vector<1x64xf32> -> vector<1x64xf32>
    %131 = arith.addf %130, %129 : vector<1x64xf32>
    %132 = vector.broadcast %131 : vector<1x64xf32> to vector<256x64xf32>
    %133 = arith.addf %127, %132 : vector<256x64xf32>
    %cst_87 = arith.constant 0.000000e+00 : f32
    %134 = vector.broadcast %cst_87 : f32 to vector<256x64xf32>
    %135 = arith.maximumf %133, %134 : vector<256x64xf32>
    %c0_88 = arith.constant 0 : index
    %c0_89 = arith.constant 0 : index
    %136 = vector.load %arg30[%c0_88, %c0_89] : memref<64x3xf32, #tpu.memory_space<vmem>>, vector<64x3xf32>
    %c0_90 = arith.constant 0 : index
    %c0_91 = arith.constant 0 : index
    %137 = vector.load %arg31[%c0_90, %c0_91] : memref<1x3xf32, #tpu.memory_space<vmem>>, vector<1x3xf32>
    %cst_92 = arith.constant dense<0.000000e+00> : vector<256x3xf32>
    %138 = tpu.matmul %135, %136, %cst_92 {dimension_numbers = #tpu.dot_dimension_numbers<[1], [0], [0], [1], [0, 0, 1, 1], [], []>} : vector<256x64xf32>, vector<64x3xf32>, vector<256x3xf32> -> vector<256x3xf32>
    %139 = vector.broadcast %137 : vector<1x3xf32> to vector<256x3xf32>
    %140 = arith.addf %138, %139 : vector<256x3xf32>
    %141 = vector.shape_cast %140 : vector<256x3xf32> to vector<1x256x3xf32>
    %c0_93 = arith.constant 0 : index
    %c0_94 = arith.constant 0 : index
    %c0_95 = arith.constant 0 : index
    %142 = vector.load %arg32[%c0_93, %c0_94, %c0_95] : memref<1x256x3xf32, #tpu.memory_space<vmem>>, vector<1x256x3xf32>
    tpu.vector_store %arg32[%c0_93, %c0_94, %c0_95], %141 {strides = array<i32>} : memref<1x256x3xf32, #tpu.memory_space<vmem>>, vector<1x256x3xf32>,
    return
  }
  func.func @transform_0(%arg0: i32) -> (i32, i32, i32) {
    %c0_i32 = arith.constant 0 : i32
    %c0_i32_0 = arith.constant 0 : i32
    %c0_i32_1 = arith.constant 0 : i32
    return %arg0, %c0_i32, %c0_i32_0 : i32, i32, i32
  }
  func.func @transform_1(%arg0: i32) -> (i32, i32) {
    %c0_i32 = arith.constant 0 : i32
    %c0_i32_0 = arith.constant 0 : i32
    %c0_i32_1 = arith.constant 0 : i32
    return %c0_i32, %c0_i32_0 : i32, i32
  }
  func.func @transform_2(%arg0: i32) -> (i32, i32) {
    %c0_i32 = arith.constant 0 : i32
    %c0_i32_0 = arith.constant 0 : i32
    %c0_i32_1 = arith.constant 0 : i32
    return %c0_i32, %c0_i32_0 : i32, i32
  }
  func.func @transform_3(%arg0: i32) -> (i32, i32) {
    %c0_i32 = arith.constant 0 : i32
    %c0_i32_0 = arith.constant 0 : i32
    %c0_i32_1 = arith.constant 0 : i32
    return %c0_i32, %c0_i32_0 : i32, i32
  }
  func.func @transform_4(%arg0: i32) -> (i32, i32) {
    %c0_i32 = arith.constant 0 : i32
    %c0_i32_0 = arith.constant 0 : i32
    %c0_i32_1 = arith.constant 0 : i32
    return %c0_i32, %c0_i32_0 : i32, i32
  }
  func.func @transform_5(%arg0: i32) -> (i32, i32) {
    %c0_i32 = arith.constant 0 : i32
    %c0_i32_0 = arith.constant 0 : i32
    %c0_i32_1 = arith.constant 0 : i32
    return %c0_i32, %c0_i32_0 : i32, i32
  }
  func.func @transform_6(%arg0: i32) -> (i32, i32) {
    %c0_i32 = arith.constant 0 : i32
    %c0_i32_0 = arith.constant 0 : i32
    %c0_i32_1 = arith.constant 0 : i32
    return %c0_i32, %c0_i32_0 : i32, i32
  }
  func.func @transform_7(%arg0: i32) -> (i32, i32) {
    %c0_i32 = arith.constant 0 : i32
    %c0_i32_0 = arith.constant 0 : i32
    %c0_i32_1 = arith.constant 0 : i32
    return %c0_i32, %c0_i32_0 : i32, i32
  }
  func.func @transform_8(%arg0: i32) -> (i32, i32) {
    %c0_i32 = arith.constant 0 : i32
    %c0_i32_0 = arith.constant 0 : i32
    %c0_i32_1 = arith.constant 0 : i32
    return %c0_i32, %c0_i32_0 : i32, i32
  }
  func.func @transform_9(%arg0: i32) -> (i32, i32) {
    %c0_i32 = arith.constant 0 : i32
    %c0_i32_0 = arith.constant 0 : i32
    %c0_i32_1 = arith.constant 0 : i32
    return %c0_i32, %c0_i32_0 : i32, i32
  }
  func.func @transform_10(%arg0: i32) -> (i32, i32) {
    %c0_i32 = arith.constant 0 : i32
    %c0_i32_0 = arith.constant 0 : i32
    %c0_i32_1 = arith.constant 0 : i32
    return %c0_i32, %c0_i32_0 : i32, i32
  }
  func.func @transform_11(%arg0: i32) -> (i32, i32) {
    %c0_i32 = arith.constant 0 : i32
    %c0_i32_0 = arith.constant 0 : i32
    %c0_i32_1 = arith.constant 0 : i32
    return %c0_i32, %c0_i32_0 : i32, i32
  }
  func.func @transform_12(%arg0: i32) -> (i32, i32) {
    %c0_i32 = arith.constant 0 : i32
    %c0_i32_0 = arith.constant 0 : i32
    %c0_i32_1 = arith.constant 0 : i32
    return %c0_i32, %c0_i32_0 : i32, i32
  }
  func.func @transform_13(%arg0: i32) -> (i32, i32) {
    %c0_i32 = arith.constant 0 : i32
    %c0_i32_0 = arith.constant 0 : i32
    %c0_i32_1 = arith.constant 0 : i32
    return %c0_i32, %c0_i32_0 : i32, i32
  }
  func.func @transform_14(%arg0: i32) -> (i32, i32) {
    %c0_i32 = arith.constant 0 : i32
    %c0_i32_0 = arith.constant 0 : i32
    %c0_i32_1 = arith.constant 0 : i32
    return %c0_i32, %c0_i32_0 : i32, i32
  }
  func.func @transform_15(%arg0: i32) -> (i32, i32) {
    %c0_i32 = arith.constant 0 : i32
    %c0_i32_0 = arith.constant 0 : i32
    %c0_i32_1 = arith.constant 0 : i32
    return %c0_i32, %c0_i32_0 : i32, i32
  }
  func.func @transform_16(%arg0: i32) -> (i32, i32) {
    %c0_i32 = arith.constant 0 : i32
    %c0_i32_0 = arith.constant 0 : i32
    %c0_i32_1 = arith.constant 0 : i32
    return %c0_i32, %c0_i32_0 : i32, i32
  }
  func.func @transform_17(%arg0: i32) -> (i32, i32) {
    %c0_i32 = arith.constant 0 : i32
    %c0_i32_0 = arith.constant 0 : i32
    %c0_i32_1 = arith.constant 0 : i32
    return %c0_i32, %c0_i32_0 : i32, i32
  }
  func.func @transform_18(%arg0: i32) -> (i32, i32) {
    %c0_i32 = arith.constant 0 : i32
    %c0_i32_0 = arith.constant 0 : i32
    %c0_i32_1 = arith.constant 0 : i32
    return %c0_i32, %c0_i32_0 : i32, i32
  }
  func.func @transform_19(%arg0: i32) -> (i32, i32) {
    %c0_i32 = arith.constant 0 : i32
    %c0_i32_0 = arith.constant 0 : i32
    %c0_i32_1 = arith.constant 0 : i32
    return %c0_i32, %c0_i32_0 : i32, i32
  }
  func.func @transform_20(%arg0: i32) -> (i32, i32) {
    %c0_i32 = arith.constant 0 : i32
    %c0_i32_0 = arith.constant 0 : i32
    %c0_i32_1 = arith.constant 0 : i32
    return %c0_i32, %c0_i32_0 : i32, i32
  }
  func.func @transform_21(%arg0: i32) -> (i32, i32) {
    %c0_i32 = arith.constant 0 : i32
    %c0_i32_0 = arith.constant 0 : i32
    %c0_i32_1 = arith.constant 0 : i32
    return %c0_i32, %c0_i32_0 : i32, i32
  }
  func.func @transform_22(%arg0: i32) -> (i32, i32) {
    %c0_i32 = arith.constant 0 : i32
    %c0_i32_0 = arith.constant 0 : i32
    %c0_i32_1 = arith.constant 0 : i32
    return %c0_i32, %c0_i32_0 : i32, i32
  }
  func.func @transform_23(%arg0: i32) -> (i32, i32) {
    %c0_i32 = arith.constant 0 : i32
    %c0_i32_0 = arith.constant 0 : i32
    %c0_i32_1 = arith.constant 0 : i32
    return %c0_i32, %c0_i32_0 : i32, i32
  }
  func.func @transform_24(%arg0: i32) -> (i32, i32) {
    %c0_i32 = arith.constant 0 : i32
    %c0_i32_0 = arith.constant 0 : i32
    %c0_i32_1 = arith.constant 0 : i32
    return %c0_i32, %c0_i32_0 : i32, i32
  }
  func.func @transform_25(%arg0: i32) -> (i32, i32) {
    %c0_i32 = arith.constant 0 : i32
    %c0_i32_0 = arith.constant 0 : i32
    %c0_i32_1 = arith.constant 0 : i32
    return %c0_i32, %c0_i32_0 : i32, i32
  }
  func.func @transform_26(%arg0: i32) -> (i32, i32) {
    %c0_i32 = arith.constant 0 : i32
    %c0_i32_0 = arith.constant 0 : i32
    %c0_i32_1 = arith.constant 0 : i32
    return %c0_i32, %c0_i32_0 : i32, i32
  }
  func.func @transform_27(%arg0: i32) -> (i32, i32) {
    %c0_i32 = arith.constant 0 : i32
    %c0_i32_0 = arith.constant 0 : i32
    %c0_i32_1 = arith.constant 0 : i32
    return %c0_i32, %c0_i32_0 : i32, i32
  }
  func.func @transform_28(%arg0: i32) -> (i32, i32) {
    %c0_i32 = arith.constant 0 : i32
    %c0_i32_0 = arith.constant 0 : i32
    %c0_i32_1 = arith.constant 0 : i32
    return %c0_i32, %c0_i32_0 : i32, i32
  }
  func.func @transform_29(%arg0: i32) -> (i32, i32) {
    %c0_i32 = arith.constant 0 : i32
    %c0_i32_0 = arith.constant 0 : i32
    %c0_i32_1 = arith.constant 0 : i32
    return %c0_i32, %c0_i32_0 : i32, i32
  }
  func.func @transform_30(%arg0: i32) -> (i32, i32) {
    %c0_i32 = arith.constant 0 : i32
    %c0_i32_0 = arith.constant 0 : i32
    %c0_i32_1 = arith.constant 0 : i32
    return %c0_i32, %c0_i32_0 : i32, i32
  }
  func.func @transform_31(%arg0: i32) -> (i32, i32, i32) {
    %c0_i32 = arith.constant 0 : i32
    %c0_i32_0 = arith.constant 0 : i32
    %c0_i32_1 = arith.constant 0 : i32
    return %arg0, %c0_i32, %c0_i32_0 : i32, i32, i32
  }
  func.func @transform_32(%arg0: i32) -> (i32, i32, i32) {
    %c0_i32 = arith.constant 0 : i32
    %c0_i32_0 = arith.constant 0 : i32
    %c0_i32_1 = arith.constant 0 : i32
    return %arg0, %c0_i32, %c0_i32_0 : i32, i32, i32
  }
  func.func @transform_33(%arg0: i32) -> (i32, i32, i32) {
    %c0_i32 = arith.constant 0 : i32
    %c0_i32_0 = arith.constant 0 : i32
    %c0_i32_1 = arith.constant 0 : i32
    return %arg0, %c0_i32, %c0_i32_0 : i32, i32, i32
  }
}

</mosaic_0001>

<bundles_post_ra>
// kernel: a_call__.1
= control target key start
LH: loop header
LB: loop body
LE: loop exit
PB: predicated region body
PF: predicated region fallthrough
CT: control target
= control target key end

     0   :  { %s8054_s6 = smov 1   ;;  %s8055_s10 = smov 2   ;;  %s10880_s0 = inlined_call_operand.smem [shape: u32[34], index: -1, kind: input, shape index: {}] }
   0x1   :  { %s8122_s5 = sld [smem:[%s10880_s0]]   ;;  %s8056_s14 = smov 3  }
   0x2   :  { %s8127_s9 = sld [smem:[%s10880_s0 + %s8054_s6]]   ;;  %s8057_s18 = smov 4  }
   0x3   :  { %s8132_s13 = sld [smem:[%s10880_s0 + %s8055_s10]]   ;;  %s8058_s22 = smov 5  }
   0x4   :  { %s8137_s17 = sld [smem:[%s10880_s0 + %s8056_s14]]   ;;  %s8059_s26 = smov 6  }
   0x5   :  { %s8142_s21 = sld [smem:[%s10880_s0 + %s8057_s18]]   ;;  %s8060_s30 = smov 7  }
   0x6   :  { %s8147_s25 = sld [smem:[%s10880_s0 + %s8058_s22]]   ;;  %s8061_s4 = smov 8  }
   0x7   :  { %11044 = sst [smem:[#allocation38_spill]] %s8122_s5  ;;  %s8062_s10 = smov 9  }
   0x8   :  { %s8152_s29 = sld [smem:[%s10880_s0 + %s8059_s26]]   ;;  %s8063_s15 = smov 10  }
   0x9   :  { %11045 = sst [smem:[#allocation39_spill]] %s8132_s13  ;;  %s8064_s20 = smov 11  }
   0xa   :  { %11046 = sst [smem:[#allocation40_spill]] %s8137_s17  ;;  %s8065_s26 = smov 12  }
   0xb   :  { %11047 = sst [smem:[#allocation41_spill]] %s8142_s21  ;;  %s8066_s1 = smov 13  }
   0xc   :  { %11048 = sst [smem:[#allocation42_spill]] %s8147_s25  ;;  %s8067_s7 = smov 14  }
   0xd   :  { %s8157_s3 = sld [smem:[%s10880_s0 + %s8060_s30]]   ;;  %s8069_s22 = smov 16  }
   0xe   :  { %11049 = sst [smem:[#allocation43_spill]] %s8152_s29  ;;  %s8070_s28 = smov 17  }
   0xf   :  { %s8162_s8 = sld [smem:[%s10880_s0 + %s8061_s4]]  }
  0x10   :  { %s8167_s14 = sld [smem:[%s10880_s0 + %s8062_s10]]  }
  0x11   :  { %s8172_s19 = sld [smem:[%s10880_s0 + %s8063_s15]]   ;;  %s8068_s15 = smov 15  }
  0x12   :  { %s8177_s24 = sld [smem:[%s10880_s0 + %s8064_s20]]  }
  0x13   :  { %11050 = sst [smem:[#allocation44_spill]] %s8157_s3 }
  0x14   :  { %s8182_s30 = sld [smem:[%s10880_s0 + %s8065_s26]]  }
  0x15   :  { %11051 = sst [smem:[#allocation45_spill]] %s8162_s8 }
  0x16   :  { %11052 = sst [smem:[#allocation46_spill]] %s8167_s14 }
  0x17   :  { %11053 = sst [smem:[#allocation47_spill]] %s8172_s19 }
  0x18   :  { %s8187_s6 = sld [smem:[%s10880_s0 + %s8066_s1]]  }
  0x19   :  { %s8192_s12 = sld [smem:[%s10880_s0 + %s8067_s7]]   ;;  %s8071_s7 = smov 18  }
  0x1a   :  { %11054 = sst [smem:[#allocation48_spill]] %s8182_s30 }
  0x1b   :  { %s8197_s20 = sld [smem:[%s10880_s0 + %s8068_s15]]   ;;  %s8072_s15 = smov 19  }
  0x1c   :  { %s8202_s27 = sld [smem:[%s10880_s0 + %s8069_s22]]   ;;  %s8073_s22 = smov 20  }
  0x1d   :  { %s8207_s4 = sld [smem:[%s10880_s0 + %s8070_s28]]   ;;  %s8074_s28 = smov 21  }
  0x1e   :  { %11055 = sst [smem:[#allocation49_spill]] %s8187_s6 }
  0x1f   :  { %11056 = sst [smem:[#allocation50_spill]] %s8192_s12 }
  0x20   :  { %s8212_s13 = sld [smem:[%s10880_s0 + %s8071_s7]]   ;;  %s8075_s7 = smov 22  }
  0x21   :  { %s8217_s12 = sld [smem:[%s10880_s0 + %s8072_s15]]   ;;  %s8076_s15 = smov 23  }
  0x22   :  { %11057 = sst [smem:[#allocation51_spill]] %s8202_s27 }
  0x23   :  { %11058 = sst [smem:[#allocation52_spill]] %s8207_s4 }
  0x24   :  { %s8222_s27 = sld [smem:[%s10880_s0 + %s8073_s22]]   ;;  %s8077_s22 = smov 24  }
  0x25   :  { %s8227_s30 = sld [smem:[%s10880_s0 + %s8074_s28]]   ;;  %s8078_s28 = smov 25  }
  0x26   :  { %s8232_s19 = sld [smem:[%s10880_s0 + %s8075_s7]]   ;;  %s8079_s7 = smov 26  }
  0x27   :  { %11059 = sst [smem:[#allocation53_spill]] %s8217_s12 }
  0x28   :  { %s8237_s12 = sld [smem:[%s10880_s0 + %s8076_s15]]   ;;  %s8080_s15 = smov 27  }
  0x29   :  { %s8242_s8 = sld [smem:[%s10880_s0 + %s8077_s22]]   ;;  %s8081_s22 = smov 28  }
  0x2a   :  { %s8252_s29 = sld [smem:[%s10880_s0 + %s8079_s7]]   ;;  %s8083_s7 = smov 30  }
  0x2b   :  { %11060 = sst [smem:[#allocation54_spill]] %s8227_s30 }
  0x2c   :  { %s8247_s30 = sld [smem:[%s10880_s0 + %s8078_s28]]   ;;  %s8082_s28 = smov 29  }
  0x2d   :  { %s8262_s21 = sld [smem:[%s10880_s0 + %s8081_s22]]   ;;  %s8085_s22 = smov 32  }
  0x2e   :  { %11061 = sst [smem:[#allocation55_spill]] %s8237_s12 }
  0x2f   :  { %11062 = sst [smem:[#allocation56_spill]] %s8242_s8 }
  0x30   :  { %11064 = sst [smem:[#allocation58_spill]] %s8252_s29 }
  0x31   :  { %s8257_s12 = sld [smem:[%s10880_s0 + %s8080_s15]]   ;;  %s8084_s15 = smov 31  }
  0x32   :  { %11063 = sst [smem:[#allocation57_spill]] %s8247_s30 }
  0x33   :  { %11065 = sst [smem:[#allocation59_spill]] %s8262_s21 }
  0x34   :  { %s8267_s30 = sld [smem:[%s10880_s0 + %s8082_s28]]   ;;  %s8086_s28 = smov 33  }
  0x35   :  { %s8272_s29 = sld [smem:[%s10880_s0 + %s8083_s7]]  }
  0x36   :  { %s8277_s17 = sld [smem:[%s10880_s0 + %s8084_s15]]  }
  0x37   :  { %s8282_s21 = sld [smem:[%s10880_s0 + %s8085_s22]]  }
  0x38   :  { %s8287_s5 = sld [smem:[%s10880_s0 + %s8086_s28]]  }
  0x39   :  { %73 = vsyncpa [#allocation3], 0 }
  0x3a   :  { %74 = vsyncpa [#allocation6], 0 }
  0x3b   :  { %75 = vsyncpa [#allocation9], 0 }
  0x3c   :  { %76 = vsyncpa [#allocation12], 0 }
  0x3d   :  { %77 = vsyncpa [#allocation15], 0 }
  0x3e   :  { %78 = vsyncpa [#allocation18], 0 }
  0x3f   :  { %79 = vsyncpa [#allocation21], 0 }
  0x40   :  { %80 = vsyncpa [#allocation24], 0 }
  0x41   :  { %81 = vsyncpa [#allocation4], 0 }
  0x42   :  { %83 = vsyncpa [#allocation4 + $0x1], 0 }
  0x43   :  { %84 = vsyncpa [#allocation27], 0 }
  0x44   :  { %86 = vsyncpa [#allocation27 + $0x1], 0  ;;  %s8289_s7 = smov 0   ;;  %s8291_s10 = smov 0  }
  0x45   :  { %s8293_s11 = smov 0   ;;  %s8295_s0 = smov 0  }
  0x46 LB: > { %11066 = sst [smem:[#allocation60_spill]] %s8040_s7  ;;  %s8310_s15 = sadd.s32 4294967295, %s8052_s0   ;;  %s8052_s0 = sphi %s8295_s0, %s11360_s0   ;;  %s8048_s11 = sphi %s8293_s11, %s11362_s11   ;;  %s8044_s10 = sphi %s8291_s10, %s11364_s10   ;;  %s8040_s7 = sphi %s8289_s7, %s11363_s7  }
  0x47   : > { %11067 = sst [smem:[#allocation61_spill]] %s8048_s11  ;;  %s6190_s16 = sadd.s32 4294967294, %s8052_s0  }
  0x48   : > { %11068 = sst [smem:[#allocation62_spill]] %s8052_s0  ;;  %s8314_s18 = sadd.s32 1, %s8052_s0  }
  0x49   : > { %11069 = sst [smem:[#allocation63_spill]] %s8314_s18  ;;  %s781_s22 = sadd.s32 1, %s8048_s11 }
  0x4a   : > { %s778_s23 = ssub.s32 %s8052_s0, %s8314_s18  ;;  %p791_p0 = scmp.ne.s32.totalorder %s8048_s11, %s8044_s10 }
  0x4b   : > { %p779_p1 = scmp.eq.s32.totalorder %s778_s23, 0  ;;  %p792_p2 = scmp.eq.s32.totalorder %s8310_s15, 1 }
  0x4c   : > { %p797_p3 = scmp.ne.s32.totalorder %s8044_s10, %s8040_s7  ;;  %p798_p4 = scmp.eq.s32.totalorder %s6190_s16, 1 }
  0x4d   : > { %s8325_s26 = scalar_select %p779_p1, %s8048_s11, %s781_s22  }
  0x4e   : > { %p8327_p5 = por %p792_p2, %p791_p0  ;;  %p8331_p6 = por %p798_p4, %p797_p3 }
  0x4f   : > { %11070 = sst [smem:[#allocation64_spill]] %s8325_s26  ;;  %p6191_p7 = scmp.ge.s32.totalorder %s8052_s0, 1 }
  0x50   : > { %s11071_s28 = scalar_select %p8327_p5, 1, 0 }
  0x51   : > { %s11072_s1 = scalar_select %p8331_p6, 1, 0 }
  0x52   : > { %p831_p8 = scmp.lt.s32.totalorder %s8052_s0, 3  ;;  %p10888_p9 = scmp.eq.s32.totalorder %s8310_s15, 0 }
  0x53   : > { %11073 = sst [smem:[#allocation65_spill]] %s11072_s1  ;;  %s8087_s16 = smov [#allocation5]  }
  0x54   : > { %p8338_p10 = pnand %p6191_p7, %p831_p8  ;;  %s865_s22 = sshll.u32 %s8087_s16, 4  ;;  %s866_s22 = int_to_ptr.vmem [resolvable:$true] %s865_s22 }
  0x55   : > { %s8088_s26 = smov [#allocation8]   ;;  %s8089_s18 = smov [#allocation11]  }
  0x56   : > { %p7212_p11 = pneg %p8338_p10  ;;  %s897_s11 = sshll.u32 %s8088_s26, 4  ;;  %s898_s11 = int_to_ptr.vmem [resolvable:$true] %s897_s11 }
  0x57   : > { %s929_s1 = sshll.u32 %s8089_s18, 4  ;;  %s7577_s0 = scalar_lea.vmem %s866_s22, 1024  ;;  %s930_s1 = int_to_ptr.vmem [resolvable:$true] %s929_s1 }
  0x58   : > { %p8346_p12 = pnand %p10888_p9, %p7212_p11  ;;  %p7578_p0 = scmp.ne.s32.totalorder %s866_s22, %s7577_s0 }
  0x59   : > { %p7585_p3 = scmp.lt.s32.totalorder %s866_s22, %s866_s22  ;;  %p7586_p4 = scmp.lt.s32.totalorder %s7577_s0, %s7577_s0 }
  0x5a   : > { %p8352_p13 = pneg %p8346_p12 }
  0x5b   : > { %p7587_p7 = por %p7586_p4, %p7585_p3 }
  0x5c   : > { %p7580_p1 = pnand %p7578_p0, %p8352_p13 }
  0x5e   : > { %p7581_p2 = pneg %p7580_p1 }
  0x60   : > { %p7588_p8 = pnand %p7587_p7, %p7581_p2 }
  0x62   : > { %7591 = shalt.err (!%p7588_p8)
}
  0x63   : > { %s10890_s26 = smov 128   ;;  %s11077_s25 = sld [smem:[#allocation42_spill]] }
  0x64   : > { %s10892_s18 = smov 8   ;;  %s7603_s16 = scalar_lea.vmem %s898_s11, 1024 }
  0x65   : > { %p7604_p11 = scmp.ne.s32.totalorder %s898_s11, %s7603_s16  ;;  %p7611_p9 = scmp.lt.s32.totalorder %s898_s11, %s898_s11 }
  0x66   : > { %p7612_p6 = scmp.lt.s32.totalorder %s7603_s16, %s7603_s16 }
  0x67   : > { %p7606_p0 = pnand %p7604_p11, %p8352_p13 }
  0x68   : > { %p7613_p3 = por %p7612_p6, %p7611_p9 }
  0x69   : > { %7218 = dma.hbm_to_vmem [thread:$0]  (!%p8346_p12), %s11077_s25, 1024, %s866_s22, [#allocation6], %s10890_s26, %s10890_s26, %s10892_s18  }
  0x6a   : > { %p7607_p1 = pneg %p7606_p0 }
  0x6c   : > { %p7614_p2 = pnand %p7613_p3, %p7607_p1 }
  0x6e   : > { %7617 = shalt.err (!%p7614_p2)
}
  0x6f   : > { %s11078_s14 = sld [smem:[#allocation46_spill]]  ;;  %s7629_s0 = scalar_lea.vmem %s930_s1, 1024 }
  0x70   : > { %p7630_p4 = scmp.ne.s32.totalorder %s930_s1, %s7629_s0  ;;  %p7637_p11 = scmp.lt.s32.totalorder %s930_s1, %s930_s1 }
  0x71   : > { %p7638_p0 = scmp.lt.s32.totalorder %s7629_s0, %s7629_s0 }
  0x72   : > { %p7632_p7 = pnand %p7630_p4, %p8352_p13 }
  0x73   : > { %p7639_p5 = por %p7638_p0, %p7637_p11 }
  0x74   : > { %p7633_p8 = pneg %p7632_p7 }
  0x75   : > { %7224 = dma.hbm_to_vmem [thread:$0]  (!%p8346_p12), %s11078_s14, 1024, %s898_s11, [#allocation9], %s10890_s26, %s10890_s26, %s10892_s18  }
  0x76   : > { %p7640_p6 = pnand %p7639_p5, %p7633_p8 }
  0x78   : > { %7643 = shalt.err (!%p7640_p6)
}
  0x79   : > { %s11079_s6 = sld [smem:[#allocation49_spill]]  ;;  %s8092_s11 = smov [#allocation14]  }
  0x7a   : > { %s961_s22 = sshll.u32 %s8092_s11, 4  ;;  %s8093_s16 = smov [#allocation17]   ;;  %s962_s22 = int_to_ptr.vmem [resolvable:$true] %s961_s22 }
  0x7b   : > { %s990_s14 = sshll.u32 %s8093_s16, 4  ;;  %s7655_s25 = scalar_lea.vmem %s962_s22, 1024  ;;  %s991_s14 = int_to_ptr.vmem [resolvable:$true] %s990_s14 }
  0x7c   : > { %p7656_p9 = scmp.ne.s32.totalorder %s962_s22, %s7655_s25  ;;  %p7663_p5 = scmp.lt.s32.totalorder %s962_s22, %s962_s22 }
  0x7d   : > { %p7664_p2 = scmp.lt.s32.totalorder %s7655_s25, %s7655_s25 }
  0x7e   : > { %p7658_p1 = pnand %p7656_p9, %p8352_p13 }
  0x7f   : > { %7230 = dma.hbm_to_vmem [thread:$0]  (!%p8346_p12), %s11079_s6, 1024, %s930_s1, [#allocation12], %s10890_s26, %s10890_s26, %s10892_s18  }
  0x80   : > { %p7659_p3 = pneg %p7658_p1  ;;  %p7665_p4 = por %p7664_p2, %p7663_p5 }
  0x82   : > { %p7666_p7 = pnand %p7665_p4, %p7659_p3 }
  0x84   : > { %7669 = shalt.err (!%p7666_p7)
}
  0x85   : > { %s11080_s4 = sld [smem:[#allocation52_spill]]  ;;  %s7681_s1 = scalar_lea.vmem %s991_s14, 2048 }
  0x86   : > { %p7682_p8 = scmp.ne.s32.totalorder %s991_s14, %s7681_s1  ;;  %p7689_p6 = scmp.lt.s32.totalorder %s991_s14, %s991_s14 }
  0x87   : > { %p7690_p9 = scmp.lt.s32.totalorder %s7681_s1, %s7681_s1 }
  0x88   : > { %p7684_p11 = pnand %p7682_p8, %p8352_p13 }
  0x89   : > { %p7691_p1 = por %p7690_p9, %p7689_p6 }
  0x8a   : > { %p7685_p0 = pneg %p7684_p11 }
  0x8b   : > { %7236 = dma.hbm_to_vmem [thread:$0]  (!%p8346_p12), %s11080_s4, 1024, %s962_s22, [#allocation15], %s10890_s26, %s10890_s26, %s10892_s18  }
  0x8c   : > { %p7692_p5 = pnand %p7691_p1, %p7685_p0 }
  0x8e   : > { %7695 = shalt.err (!%p7692_p5)
}
  0x8f   : > { %s8094_s25 = smov 256   ;;  %s8095_s0 = smov 16  }
  0x90   : > { %7242 = dma.hbm_to_vmem [thread:$0]  (!%p8346_p12), %s8222_s27, 2048, %s991_s14, [#allocation18], %s8094_s25, %s8094_s25, %s8095_s0  }
  0x91   : > { %s8096_s11 = smov [#allocation20]   ;;  %s8097_s16 = smov [#allocation2]  }
  0x92   : > { %s1022_s22 = sshll.u32 %s8096_s11, 4  ;;  %s843_s26 = sshll.u32 %s8097_s16, 4  ;;  %s1023_s22 = int_to_ptr.vmem [resolvable:$true] %s1022_s22  ;;  %s844_s26 = int_to_ptr.vmem [resolvable:$true] %s843_s26 }
  0x93   : > { %s7707_s18 = scalar_lea.vmem %s1023_s22, 1024  ;;  %p7715_p7 = scmp.lt.s32.totalorder %s1023_s22, %s1023_s22 }
  0x94   : > { %p7708_p3 = scmp.ne.s32.totalorder %s1023_s22, %s7707_s18  ;;  %p7716_p8 = scmp.lt.s32.totalorder %s7707_s18, %s7707_s18 }
  0x96   : > { %p7710_p2 = pnand %p7708_p3, %p8352_p13  ;;  %p7717_p11 = por %p7716_p8, %p7715_p7 }
  0x98   : > { %p7711_p4 = pneg %p7710_p2 }
  0x9a   : > { %p7718_p0 = pnand %p7717_p11, %p7711_p4 }
  0x9c   : > { %7721 = shalt.err (!%p7718_p0)
}
  0x9d   : > { %s11081_s1 = smov 8   ;;  %s11082_s4 = smov 128  }
  0x9e   : > { %s11083_s8 = sld [smem:[#allocation56_spill]]  ;;  %s7733_s14 = scalar_lea.vmem %s844_s26, 4096 }
  0x9f   : > { %p7734_p6 = scmp.ne.s32.totalorder %s844_s26, %s7733_s14  ;;  %p7741_p5 = scmp.lt.s32.totalorder %s844_s26, %s844_s26 }
  0xa0   : > { %p7742_p3 = scmp.lt.s32.totalorder %s7733_s14, %s7733_s14 }
  0xa1   : > { %p7736_p9 = pnand %p7734_p6, %p8352_p13 }
  0xa2   : > { %p7743_p2 = por %p7742_p3, %p7741_p5 }
  0xa3   : > { %p7737_p1 = pneg %p7736_p9 }
  0xa4   : > { %7248 = dma.hbm_to_vmem [thread:$0]  (!%p8346_p12), %s11083_s8, 1024, %s1023_s22, [#allocation21], %s11082_s4, %s11082_s4, %s11081_s1  }
  0xa5   : > { %p7744_p7 = pnand %p7743_p2, %p7737_p1 }
  0xa7   : > { %7747 = shalt.err (!%p7744_p7)
}
  0xa8   : > { %7215 = dma.hbm_to_vmem [thread:$0]  (!%p8346_p12), %s8127_s9, 4096, %s844_s26, [#allocation3], %s11082_s4, %s11082_s4, %s11081_s1  }
  0xa9   : > { %s8098_s18 = smov [#allocation7]   ;;  %s8099_s0 = smov [#allocation10]  }
  0xaa   : > { %s881_s25 = sshll.u32 %s8098_s18, 4  ;;  %s913_s11 = sshll.u32 %s8099_s0, 4  ;;  %s882_s25 = int_to_ptr.vmem [resolvable:$true] %s881_s25  ;;  %s914_s11 = int_to_ptr.vmem [resolvable:$true] %s913_s11 }
  0xab   : > { %s7759_s22 = scalar_lea.vmem %s882_s25, 1024  ;;  %p7767_p0 = scmp.lt.s32.totalorder %s882_s25, %s882_s25 }
  0xac   : > { %p7760_p4 = scmp.ne.s32.totalorder %s882_s25, %s7759_s22  ;;  %p7768_p6 = scmp.lt.s32.totalorder %s7759_s22, %s7759_s22 }
  0xae   : > { %p7762_p8 = pnand %p7760_p4, %p8352_p13  ;;  %p7769_p9 = por %p7768_p6, %p7767_p0 }
  0xb0   : > { %p7763_p11 = pneg %p7762_p8 }
  0xb2   : > { %p7770_p1 = pnand %p7769_p9, %p7763_p11 }
  0xb4   : > { %7773 = shalt.err (!%p7770_p1)
}
  0xb5   : > { %s11084_s3 = sld [smem:[#allocation44_spill]]  ;;  %s7785_s26 = scalar_lea.vmem %s914_s11, 1024 }
  0xb6   : > { %p7786_p5 = scmp.ne.s32.totalorder %s914_s11, %s7785_s26  ;;  %p7793_p7 = scmp.lt.s32.totalorder %s914_s11, %s914_s11 }
  0xb7   : > { %p7794_p4 = scmp.lt.s32.totalorder %s7785_s26, %s7785_s26 }
  0xb8   : > { %p7788_p3 = pnand %p7786_p5, %p8352_p13 }
  0xb9   : > { %p7795_p8 = por %p7794_p4, %p7793_p7 }
  0xba   : > { %p7789_p2 = pneg %p7788_p3 }
  0xbb   : > { %7221 = dma.hbm_to_vmem [thread:$0]  (!%p8346_p12), %s11084_s3, 1024, %s882_s25, [#allocation6], %s11082_s4, %s11082_s4, %s11081_s1  }
  0xbc   : > { %p7796_p0 = pnand %p7795_p8, %p7789_p2 }
  0xbe   : > { %7799 = shalt.err (!%p7796_p0)
}
  0xbf   : > { %7227 = dma.hbm_to_vmem [thread:$0]  (!%p8346_p12), %s8177_s24, 1024, %s914_s11, [#allocation9], %s11082_s4, %s11082_s4, %s11081_s1  }
  0xc0   : > { %s8100_s16 = smov [#allocation13]   ;;  %s8101_s18 = smov [#allocation16]  }
  0xc1   : > { %s945_s14 = sshll.u32 %s8100_s16, 4  ;;  %s974_s25 = sshll.u32 %s8101_s18, 4  ;;  %s946_s14 = int_to_ptr.vmem [resolvable:$true] %s945_s14  ;;  %s975_s25 = int_to_ptr.vmem [resolvable:$true] %s974_s25 }
  0xc2   : > { %s7811_s0 = scalar_lea.vmem %s946_s14, 1024  ;;  %p7819_p1 = scmp.lt.s32.totalorder %s946_s14, %s946_s14 }
  0xc3   : > { %p7812_p11 = scmp.ne.s32.totalorder %s946_s14, %s7811_s0  ;;  %p7820_p5 = scmp.lt.s32.totalorder %s7811_s0, %s7811_s0 }
  0xc5   : > { %p7814_p6 = pnand %p7812_p11, %p8352_p13  ;;  %p7821_p3 = por %p7820_p5, %p7819_p1 }
  0xc7   : > { %p7815_p9 = pneg %p7814_p6 }
  0xc9   : > { %p7822_p2 = pnand %p7821_p3, %p7815_p9 }
  0xcb   : > { %7825 = shalt.err (!%p7822_p2)
}
  0xcc   : > { %7233 = dma.hbm_to_vmem [thread:$0]  (!%p8346_p12), %s8197_s20, 1024, %s946_s14, [#allocation12], %s11082_s4, %s11082_s4, %s11081_s1  }
  0xcd   : > { %s7837_s11 = scalar_lea.vmem %s975_s25, 1024  ;;  %p7845_p0 = scmp.lt.s32.totalorder %s975_s25, %s975_s25 }
  0xce   : > { %p7838_p7 = scmp.ne.s32.totalorder %s975_s25, %s7837_s11  ;;  %p7846_p11 = scmp.lt.s32.totalorder %s7837_s11, %s7837_s11 }
  0xd0   : > { %p7840_p4 = pnand %p7838_p7, %p8352_p13  ;;  %p7847_p6 = por %p7846_p11, %p7845_p0 }
  0xd2   : > { %p7841_p8 = pneg %p7840_p4 }
  0xd4   : > { %p7848_p1 = pnand %p7847_p6, %p7841_p8 }
  0xd6   : > { %7851 = shalt.err (!%p7848_p1)
}
  0xd7   : > { %7239 = dma.hbm_to_vmem [thread:$0]  (!%p8346_p12), %s8212_s13, 1024, %s975_s25, [#allocation15], %s11082_s4, %s11082_s4, %s11081_s1  }
  0xd8   : > { %s8102_s22 = smov [#allocation19]   ;;  %s8103_s16 = smov [#allocation22]  }
  0xd9   : > { %s1006_s26 = sshll.u32 %s8102_s22, 4  ;;  %s1041_s14 = sshll.u32 %s8103_s16, 4  ;;  %s1007_s26 = int_to_ptr.vmem [resolvable:$true] %s1006_s26  ;;  %s1042_s14 = int_to_ptr.vmem [resolvable:$true] %s1041_s14 }
  0xda   : > { %s7863_s18 = scalar_lea.vmem %s1007_s26, 1024  ;;  %p7871_p2 = scmp.lt.s32.totalorder %s1007_s26, %s1007_s26 }
  0xdb   : > { %p7864_p9 = scmp.ne.s32.totalorder %s1007_s26, %s7863_s18  ;;  %p7872_p7 = scmp.lt.s32.totalorder %s7863_s18, %s7863_s18 }
  0xdd   : > { %p7866_p5 = pnand %p7864_p9, %p8352_p13  ;;  %p7873_p4 = por %p7872_p7, %p7871_p2 }
  0xdf   : > { %p7867_p3 = pneg %p7866_p5 }
  0xe1   : > { %p7874_p8 = pnand %p7873_p4, %p7867_p3 }
  0xe3   : > { %7877 = shalt.err (!%p7874_p8)
}
  0xe4   : > { %7245 = dma.hbm_to_vmem [thread:$0]  (!%p8346_p12), %s8232_s19, 1024, %s1007_s26, [#allocation18], %s11082_s4, %s11082_s4, %s11081_s1  }
  0xe5   : > { %s7889_s25 = scalar_lea.vmem %s1042_s14, 1024  ;;  %p7897_p1 = scmp.lt.s32.totalorder %s1042_s14, %s1042_s14 }
  0xe6   : > { %p7890_p0 = scmp.ne.s32.totalorder %s1042_s14, %s7889_s25  ;;  %p7898_p9 = scmp.lt.s32.totalorder %s7889_s25, %s7889_s25 }
  0xe8   : > { %p7892_p11 = pnand %p7890_p0, %p8352_p13  ;;  %p7899_p5 = por %p7898_p9, %p7897_p1 }
  0xea   : > { %p7893_p6 = pneg %p7892_p11 }
  0xec   : > { %p7900_p2 = pnand %p7899_p5, %p7893_p6 }
  0xee   : > { %7903 = shalt.err (!%p7900_p2)
}
  0xef   : > { %7251 = dma.hbm_to_vmem [thread:$0]  (!%p8346_p12), %s8257_s12, 1024, %s1042_s14, [#allocation21], %s11082_s4, %s11082_s4, %s11081_s1  }
  0xf0   : > { %s8104_s0 = smov [#allocation23]  }
  0xf1   : > { %s1057_s11 = sshll.u32 %s8104_s0, 4  ;;  %s1058_s11 = int_to_ptr.vmem [resolvable:$true] %s1057_s11 }
  0xf2   : > { %s7915_s22 = scalar_lea.vmem %s1058_s11, 1024  ;;  %p7923_p8 = scmp.lt.s32.totalorder %s1058_s11, %s1058_s11 }
  0xf3   : > { %p7916_p3 = scmp.ne.s32.totalorder %s1058_s11, %s7915_s22  ;;  %p7924_p0 = scmp.lt.s32.totalorder %s7915_s22, %s7915_s22 }
  0xf5   : > { %p7918_p7 = pnand %p7916_p3, %p8352_p13  ;;  %p7925_p11 = por %p7924_p0, %p7923_p8 }
  0xf7   : > { %p7919_p4 = pneg %p7918_p7 }
  0xf9   : > { %p7926_p6 = pnand %p7925_p11, %p7919_p4 }
  0xfb   : > { %7929 = shalt.err (!%p7926_p6)
}
  0xfc   : > { %7254 = dma.hbm_to_vmem [thread:$0]  (!%p8346_p12), %s8267_s30, 1024, %s1058_s11, [#allocation24], %s11082_s4, %s11082_s4, %s11081_s1  }
  0xfd   : > { %1084 = sbr.rel (%p8338_p10) target bundleno = 3454 (0xd7e), region = 144 }
 0x102   : > { %p11085_p1 = scmp.eq.s32.totalorder %s8310_s15, 0 }
 0x104   : > { %7999 = dma.done.wait (%p11085_p1), [#allocation3], 4096   ;;  %p11086_p13 = pmov %p11085_p1 }
 0x105   : > { %p11087_p9 = pmov %p11085_p1 }
 0x106   : > { %8001 = vsyncadd (%p11086_p13), [#allocation3], 4294963200 }
 0x107   : > { %8003 = dma.done.wait (%p11087_p9), [#allocation6], 2048   ;;  %p11088_p5 = pmov %p11085_p1 }
 0x108   : > { %p11089_p2 = pmov %p11085_p1 }
 0x109   : > { %8005 = vsyncadd (%p11088_p5), [#allocation6], 4294965248 }
 0x10a   : > { %8007 = dma.done.wait (%p11089_p2), [#allocation9], 2048   ;;  %p11090_p12 = pmov %p11085_p1 }
 0x10b   : > { %p11091_p10 = pmov %p11085_p1 }
 0x10c   : > { %8009 = vsyncadd (%p11090_p12), [#allocation9], 4294965248 }
 0x10d   : > { %8011 = dma.done.wait (%p11091_p10), [#allocation12], 2048   ;;  %p11092_p3 = pmov %p11085_p1 }
 0x10e   : > { %p11093_p7 = pmov %p11085_p1 }
 0x10f   : > { %8013 = vsyncadd (%p11092_p3), [#allocation12], 4294965248 }
 0x110   : > { %8015 = dma.done.wait (%p11093_p7), [#allocation15], 2048   ;;  %p11094_p4 = pmov %p11085_p1 }
 0x111   : > { %p11095_p8 = pmov %p11085_p1 }
 0x112   : > { %8017 = vsyncadd (%p11094_p4), [#allocation15], 4294965248 }
 0x113   : > { %8019 = dma.done.wait (%p11095_p8), [#allocation18], 3072   ;;  %p11096_p0 = pmov %p11085_p1 }
 0x115   : > { %8021 = vsyncadd (%p11096_p0), [#allocation18], 4294964224  ;;  %p11097_p11 = pmov %p11096_p0 }
 0x116   : > { %p11098_p6 = pmov %p11096_p0 }
 0x117   : > { %8023 = dma.done.wait (%p11097_p11), [#allocation21], 2048  }
 0x118   : > { %8025 = vsyncadd (%p11098_p6), [#allocation21], 4294965248  ;;  %p11099_p1 = pmov %p11096_p0 }
 0x119   : > { %p11100_p13 = pmov %p11096_p0 }
 0x11a   : > { %8027 = dma.done.wait (%p11099_p1), [#allocation24], 1024  }
 0x11b   : > { %8029 = vsyncadd (%p11100_p13), [#allocation24], 4294966272  ;;  %s11101_s4 = sld [smem:[#allocation38_spill]]  ;;  %p1229_p9 = scmp.lt.s32.totalorder %s8310_s15, 1  ;;  %v10927_v0 = vmov 0   ;;  %v10930_v3 = vmov 1   ;;  %v1337_v26 = vlaneseq }
 0x11c   : > { %7383 = vset.pattern.permute.xlu1 %v10927_v0  ;;  %7381 = vset.pattern.permute.xlu0 %v10927_v0  ;;  %v10932_v5 = vmov 2   ;;  %v1602_v11 = vld [vmem:[#allocation5 + $0x38] sm:$0xff]  ;;  %v1601_v13 = vld [vmem:[#allocation5 + $0x30] sm:$0xff]  ;;  %v1600_v14 = vld [vmem:[#allocation5 + $0x28] sm:$0xff]  ;;  %s11102_s1 = sld [smem:[#allocation40_spill]]  ;;  %vm1610_vm0 = vcmask 523264  }
 0x11d   : > { %s8503_s7 = scalar_select %p1229_p9, %s8310_s15, 1  ;;  %6702 = vmatprep.subr.mxu1 %v1602_v11  ;;  %v1599_v17 = vld [vmem:[#allocation5 + $0x20] sm:$0xff]  ;;  %v1598_v18 = vld [vmem:[#allocation5 + $0x18] sm:$0xff]  ;;  %v1597_v19 = vld [vmem:[#allocation5 + $0x10] sm:$0xff]  ;;  %v8564_v27 = vshrl.u32 %v1337_v26, 7  ;;  %vm8109_vm1 = vmmov 0  }
 0x11e   : > { %6703 = vmatpush3.msra.mxu1 %v1602_v11  ;;  %v1596_v20 = vld [vmem:[#allocation5 + $0x8] sm:$0xff]  ;;  %v1595_v21 = vld [vmem:[#allocation5] sm:$0xff]  ;;  %s11103_s26 = sld [smem:[#allocation41_spill]]  ;;  %v1827_v56 = vld [vmem:[#allocation7 + $0x38] sm:$0xff]  ;;  %s8759_s0 = sand.u32 1, %s8044_s10   ;;  %vm2230_vm2 = vcmask 516096  }
 0x11f   : > { %s6437_s2 = sshll.u32 %s8503_s7, 7  ;;  %6704 = vmatprep.subr.mxu1 %v1601_v13  ;;  %v8568_v28 = vsub.s32 0, %v8564_v27  ;;  %v8573_v32 = vsub.s32 1, %v8564_v27  ;;  %v10926_v35 = vsub.s32 2, %v8564_v27  ;;  %s11104_s16 = sld [smem:[#allocation43_spill]]  ;;  %vm5834_vm3 = vcmask 23552  }
 0x120   : > { %6705 = vmatpush3.msra.mxu1 %v1601_v13  ;;  %s11105_s14 = sld [smem:[#allocation45_spill]]  ;;  %s1228_s11 = scalar_lea.vmem [#allocation26], %s8759_s0 }
 0x121   : > { %s8507_s23 = scalar_lea.vmem %s11101_s4, %s6437_s2  ;;  %6706 = vmatprep.subr.mxu1 %v1600_v14  ;;  %s11106_s18 = sld [smem:[#allocation47_spill]] }
 0x122   : > { %v1240_v1 = vld [vmem:[%s8507_s23 + $0x8] sm:$0xff]  ;;  %v1239_v2 = vld [vmem:[%s8507_s23] sm:$0xff]  ;;  %v1242_v4 = vld [vmem:[%s8507_s23 + $0x18] sm:$0xff]  ;;  %6707 = vmatpush3.msra.mxu1 %v1600_v14  ;;  %s11107_s25 = sld [smem:[#allocation48_spill]]  ;;  %p11355_p2 = scmp.ne.s32.totalorder %s11071_s28, 0 }
 0x123   : > { %1264 = vperm.xlu1 %7383, %v1240_v1   ;;  %1259 = vperm.xlu0 %7381, %v1239_v2   ;;  %v1244_v6 = vld [vmem:[%s8507_s23 + $0x28] sm:$0xff]  ;;  %v1241_v7 = vld [vmem:[%s8507_s23 + $0x10] sm:$0xff]  ;;  %v1246_v8 = vld [vmem:[%s8507_s23 + $0x38] sm:$0xff]  ;;  %s11108_s22 = sld [smem:[#allocation50_spill]] }
 0x124   : > { %v8522_v9 = vld [vmem:[%s8507_s23 + $0x48] sm:$0xff]  ;;  %v8526_v10 = vld [vmem:[%s8507_s23 + $0x58] sm:$0xff]  ;;  %v1243_v15 = vld [vmem:[%s8507_s23 + $0x20] sm:$0xff]  ;;  %6708 = vmatprep.subr.mxu1 %v1599_v17  ;;  %s11109_s4 = sld [smem:[#allocation51_spill]] }
 0x125   : > { %v8530_v12 = vld [vmem:[%s8507_s23 + $0x68] sm:$0xff]  ;;  %v8536_v16 = vld [vmem:[%s8507_s23 + $0x78] sm:$0xff]  ;;  %6709 = vmatpush3.msra.mxu1 %v1599_v17  ;;  %v1245_v22 = vld [vmem:[%s8507_s23 + $0x30] sm:$0xff]  ;;  %s11110_s2 = sld [smem:[#allocation53_spill]] }
 0x126   : > { %6710 = vmatprep.subr.mxu1 %v1598_v18  ;;  %v1247_v23 = vld [vmem:[%s8507_s23 + $0x40] sm:$0xff]  ;;  %v1249_v24 = vld [vmem:[%s8507_s23 + $0x50] sm:$0xff] }
 0x127   : > { %7384 = vset.pattern.permute.xlu1 %v10930_v3  ;;  %7382 = vset.pattern.permute.xlu0 %v10930_v3  ;;  %v1251_v25 = vld [vmem:[%s8507_s23 + $0x60] sm:$0xff]  ;;  %v1253_v34 = vld [vmem:[%s8507_s23 + $0x70] sm:$0xff]  ;;  %s11111_s23 = sld [smem:[#allocation55_spill]] }
 0x128   : > { %1362 = vperm.xlu1 %7384, %v1240_v1   ;;  %1358 = vperm.xlu0 %7382, %v1239_v2   ;;  %v1255_v29 = vld [vmem:[%s11102_s1] sm:$0x7]  ;;  %s11112_s1 = sld [smem:[#allocation39_spill]] }
 0x129   : > { %6711 = vmatpush3.msra.mxu1 %v1598_v18  ;;  %v8576_v33 = vrot.slane %v1255_v29, %v8568_v28  ;;  %v8581_v36 = vrot.slane %v1255_v29, %v8573_v32  ;;  %v8588_v41 = vrot.slane %v1255_v29, %v10926_v35  ;;  %v8593_v46 = vld [vmem:[%s11103_s26] ss:$0 sm:$0xff]  ;;  %s11113_s26 = sld [smem:[#allocation54_spill]] }
 0x12a   : > { %6712 = vmatprep.subr.mxu1 %v1597_v19 }
 0x12b   : > { %6713 = vmatpush3.msra.mxu1 %v1597_v19 }
 0x12c   : > { %7385 = vset.pattern.permute.xlu1 %v10932_v5  ;;  %7388 = vset.pattern.permute.xlu0 %v10927_v0 }
 0x12d   : > { %1458 = vperm.xlu1 %7385, %v1239_v2   ;;  %1274 = vperm.xlu0 %7388, %v1242_v4  }
 0x12e   : > { %6714 = vmatprep.subr.mxu1 %v1596_v20 }
 0x12f   : > { %6715 = vmatpush3.msra.mxu1 %v1596_v20 }
 0x130   : > { %6716 = vmatprep.subr.mxu1 %v1595_v21 }
 0x131   : > { %7386 = vset.pattern.permute.xlu1 %v10927_v0  ;;  %1284 = vperm.xlu0 %7388, %v1244_v6  }
 0x132   : > { %1269 = vperm.xlu1 %7386, %v1241_v7   ;;  %6717 = vmatpush3.msra.mxu1 %v1595_v21 }
 0x133   : > { %6742 = vmatprep.subr.mxu1 %v1827_v56 }
 0x135   : > { %1294 = vperm.xlu0 %7388, %v1246_v8  }
 0x136   : > { %7387 = vset.pattern.permute.xlu1 %v10930_v3 }
 0x137   : > { %1366 = vperm.xlu1 %7387, %v1241_v7  }
 0x139   : > { %1304 = vperm.xlu0 %7388, %v8522_v9  }
 0x13b   : > { %1370 = vperm.xlu1 %7387, %v1242_v4  }
 0x13d   : > { %1314 = vperm.xlu0 %7388, %v8526_v10  }
 0x13f   : > { %7389 = vset.pattern.permute.xlu1 %v10932_v5 }
 0x140   : > { %1466 = vperm.xlu1 %7389, %v1241_v7  }
 0x141   : > { %1324 = vperm.xlu0 %7388, %v8530_v12  }
 0x144   : > { %7390 = vset.pattern.permute.xlu1 %v10927_v0 }
 0x145   : > { %1279 = vperm.xlu1 %7390, %v1243_v15   ;;  %1334 = vperm.xlu0 %7388, %v8536_v16  }
 0x149   : > { %7391 = vset.pattern.permute.xlu1 %v10930_v3  ;;  %7407 = vset.pattern.permute.xlu0 %v10932_v5 }
 0x14a   : > { %1374 = vperm.xlu1 %7391, %v1243_v15   ;;  %1462 = vperm.xlu0 %7407, %v1240_v1  }
 0x14e   : > { %1378 = vperm.xlu1 %7391, %v1244_v6   ;;  %1470 = vperm.xlu0 %7407, %v1242_v4  }
 0x152   : > { %7392 = vset.pattern.permute.xlu1 %v10932_v5  ;;  %1478 = vperm.xlu0 %7407, %v1244_v6  }
 0x153   : > { %1474 = vperm.xlu1 %7392, %v1243_v15  }
 0x156   : > { %1486 = vperm.xlu0 %7407, %v1246_v8  }
 0x157   : > { %7393 = vset.pattern.permute.xlu1 %v10927_v0 }
 0x158   : > { %1289 = vperm.xlu1 %7393, %v1245_v22  }
 0x15a   : > { %1494 = vperm.xlu0 %7407, %v8522_v9  }
 0x15c   : > { %7394 = vset.pattern.permute.xlu1 %v10930_v3 }
 0x15d   : > { %1382 = vperm.xlu1 %7394, %v1245_v22  }
 0x15e   : > { %1502 = vperm.xlu0 %7407, %v8526_v10  }
 0x161   : > { %1386 = vperm.xlu1 %7394, %v1246_v8  }
 0x162   : > { %1510 = vperm.xlu0 %7407, %v8530_v12  }
 0x165   : > { %7395 = vset.pattern.permute.xlu1 %v10932_v5 }
 0x166   : > { %1482 = vperm.xlu1 %7395, %v1245_v22   ;;  %1518 = vperm.xlu0 %7407, %v8536_v16  }
 0x16a   : > { %7396 = vset.pattern.permute.xlu1 %v10927_v0 }
 0x16b   : > { %1299 = vperm.xlu1 %7396, %v1247_v23  }
 0x16f   : > { %7397 = vset.pattern.permute.xlu1 %v10930_v3 }
 0x170   : > { %1390 = vperm.xlu1 %7397, %v1247_v23  }
 0x174   : > { %1394 = vperm.xlu1 %7397, %v8522_v9  }
 0x178   : > { %7398 = vset.pattern.permute.xlu1 %v10932_v5 }
 0x179   : > { %1490 = vperm.xlu1 %7398, %v1247_v23  }
 0x17d   : > { %7399 = vset.pattern.permute.xlu1 %v10927_v0 }
 0x17e   : > { %1309 = vperm.xlu1 %7399, %v1249_v24  }
 0x182   : > { %7400 = vset.pattern.permute.xlu1 %v10930_v3 }
 0x183   : > { %1398 = vperm.xlu1 %7400, %v1249_v24  }
 0x187   : > { %1402 = vperm.xlu1 %7400, %v8526_v10  }
 0x18b   : > { %7401 = vset.pattern.permute.xlu1 %v10932_v5 }
 0x18c   : > { %1498 = vperm.xlu1 %7401, %v1249_v24  }
 0x190   : > { %7402 = vset.pattern.permute.xlu1 %v10927_v0 }
 0x191   : > { %1319 = vperm.xlu1 %7402, %v1251_v25  }
 0x195   : > { %7403 = vset.pattern.permute.xlu1 %v10930_v3 }
 0x196   : > { %1406 = vperm.xlu1 %7403, %v1251_v25  }
 0x19a   : > { %1410 = vperm.xlu1 %7403, %v8530_v12  }
 0x19e   : > { %v1265_v30 = vpop.permute.xlu1 %1264  ;;  %7404 = vset.pattern.permute.xlu1 %v10932_v5  ;;  %v1260_v31 = vpop.permute.xlu0 %1259 }
 0x19f   : > { %1506 = vperm.xlu1 %7404, %v1251_v25   ;;  %v1341_v37 = vmul.f32 %v8576_v33, %v1260_v31  ;;  %v1342_v6 = vmul.f32 %v8576_v33, %v1265_v30  ;;  %v1826_v31 = vld [vmem:[#allocation7 + $0x30] sm:$0xff] }
 0x1a3   : > { %v1363_v38 = vpop.permute.xlu1 %1362  ;;  %7405 = vset.pattern.permute.xlu1 %v10927_v0  ;;  %v1359_v39 = vpop.permute.xlu0 %1358 }
 0x1a4   : > { %1329 = vperm.xlu1 %7405, %v1253_v34   ;;  %v1425_v40 = vmul.f32 %v8581_v36, %v1359_v39  ;;  %v1426_v2 = vmul.f32 %v8581_v36, %v1363_v38 }
 0x1a6   : > { %v1441_v42 = vadd.f32 %v1425_v40, %v1341_v37  ;;  %v1442_v10 = vadd.f32 %v1426_v2, %v1342_v6 }
 0x1a8   : > { %7406 = vset.pattern.permute.xlu1 %v10930_v3  ;;  %v1459_v43 = vpop.permute.xlu1 %1458  ;;  %v1275_v44 = vpop.permute.xlu0 %1274 }
 0x1a9   : > { %v1525_v45 = vmul.f32 %v8588_v41, %v1459_v43  ;;  %1414 = vperm.xlu1 %7406, %v1253_v34   ;;  %v1344_v11 = vmul.f32 %v8576_v33, %v1275_v44  ;;  %v1825_v43 = vld [vmem:[#allocation7 + $0x28] sm:$0xff] }
 0x1ab   : > { %v1541_v47 = vadd.f32 %v1525_v45, %v1441_v42 }
 0x1ac   : > { %v1285_v48 = vpop.permute.xlu0 %1284 }
 0x1ad   : > { %1418 = vperm.xlu1 %7406, %v8536_v16   ;;  %v1270_v49 = vpop.permute.xlu1 %1269  ;;  %v1563_v50 = vadd.f32 %v8593_v46, %v1541_v47  ;;  %v1346_v15 = vmul.f32 %v8576_v33, %v1285_v48  ;;  %v1824_v48 = vld [vmem:[#allocation7 + $0x20] sm:$0xff] }
 0x1ae   : > { %v1343_v63 = vmul.f32 %v8576_v33, %v1270_v49 }
 0x1af   : > { %v1579_v51 = vmax.f32 %v1563_v50, 0.0 }
 0x1b0   : > { %v8597_v52 = vpop.permute.xlu0 %1294 }
 0x1b1   : > { %7408 = vset.pattern.permute.xlu1 %v10932_v5  ;;  %6718 = vmatprep.mubr.msk.f32.mxu1 %vm1610_vm0, %v1579_v51 }
 0x1b2   : > { %1514 = vperm.xlu1 %7408, %v1253_v34   ;;  %v1367_v53 = vpop.permute.xlu1 %1366 }
 0x1b3   : > { %v1427_v60 = vmul.f32 %v8581_v36, %v1367_v53 }
 0x1b4   : > { %v8601_v54 = vpop.permute.xlu0 %1304 }
 0x1b5   : > { %v1443_v4 = vadd.f32 %v1427_v60, %v1343_v63  ;;  %v1348_v60 = vmul.f32 %v8576_v33, %v8597_v52 }
 0x1b6   : > { %v1371_v55 = vpop.permute.xlu1 %1370  ;;  %7409 = vset.pattern.permute.xlu1 %v10927_v0 }
 0x1b7   : > { %v1428_v12 = vmul.f32 %v8581_v36, %v1371_v55 }
 0x1b8   : > { %v8604_v57 = vpop.permute.xlu0 %1314 }
 0x1b9   : > { %v1444_v19 = vadd.f32 %v1428_v12, %v1344_v11 }
 0x1bb   : > { %v1467_v58 = vpop.permute.xlu1 %1466 }
 0x1bc   : > { %v8606_v59 = vpop.permute.xlu0 %1324  ;;  %v1527_v1 = vmul.f32 %v8588_v41, %v1467_v58 }
 0x1be   : > { %v1543_v7 = vadd.f32 %v1527_v1, %v1443_v4 }
 0x1c0   : > { %v1280_v61 = vpop.permute.xlu1 %1279  ;;  %v8609_v62 = vpop.permute.xlu0 %1334  ;;  %v1565_v16 = vadd.f32 %v8593_v46, %v1543_v7 }
 0x1c1   : > { %v1345_v29 = vmul.f32 %v8576_v33, %v1280_v61 }
 0x1c2   : > { %v1581_v26 = vmax.f32 %v1565_v16, 0.0 }
 0x1c5   : > { %v1375_v8 = vpop.permute.xlu1 %1374  ;;  %v1463_v9 = vpop.permute.xlu0 %1462 }
 0x1c6   : > { %v1526_v13 = vmul.f32 %v8588_v41, %v1463_v9  ;;  %v1429_v23 = vmul.f32 %v8581_v36, %v1375_v8 }
 0x1c8   : > { %v1542_v14 = vadd.f32 %v1526_v13, %v1442_v10  ;;  %v1445_v40 = vadd.f32 %v1429_v23, %v1345_v29 }
 0x1c9   : > { %v1379_v17 = vpop.permute.xlu1 %1378  ;;  %v1471_v18 = vpop.permute.xlu0 %1470 }
 0x1ca   : > { %v1564_v20 = vadd.f32 %v8593_v46, %v1542_v14  ;;  %v1430_v21 = vmul.f32 %v8581_v36, %v1379_v17  ;;  %v1528_v22 = vmul.f32 %v8588_v41, %v1471_v18  ;;  %v1350_v18 = vmul.f32 %v8576_v33, %v8601_v54 }
 0x1cc   : > { %v1580_v24 = vmax.f32 %v1564_v20, 0.0  ;;  %v1544_v25 = vadd.f32 %v1528_v22, %v1444_v19  ;;  %v1446_v34 = vadd.f32 %v1430_v21, %v1346_v15 }
 0x1cd   : > { %v1479_v30 = vpop.permute.xlu0 %1478 }
 0x1ce   : > { %v1566_v37 = vadd.f32 %v8593_v46, %v1544_v25  ;;  %v1530_v38 = vmul.f32 %v8588_v41, %v1479_v30  ;;  %v1475_v39 = vpop.permute.xlu1 %1474  ;;  %6719 = vmatmul.mubr.msk.f32.vlgmr.msra.gmra.mxu1 %vm1610_vm0, %v1580_v24 }
 0x1cf   : > { %v1529_v42 = vmul.f32 %v8588_v41, %v1475_v39  ;;  %6721 = vmatprep.mubr.msk.f32.mxu1 %vm1610_vm0, %v1581_v26  ;;  %6743 = vmatpush3.msra.mxu1 %v1827_v56 }
 0x1d0   : > { %v1582_v44 = vmax.f32 %v1566_v37, 0.0  ;;  %v1546_v45 = vadd.f32 %v1530_v38, %v1446_v34  ;;  %6744 = vmatprep.subr.mxu1 %v1826_v31 }
 0x1d1   : > { %v1545_v47 = vadd.f32 %v1529_v42, %v1445_v40  ;;  %6745 = vmatpush3.msra.mxu1 %v1826_v31  ;;  %v1487_v58 = vpop.permute.xlu0 %1486 }
 0x1d2   : > { %v1568_v49 = vadd.f32 %v8593_v46, %v1546_v45  ;;  %6722 = vmatmul.mubr.msk.f32.gmra.mxu1 %vm1610_vm0, %v1582_v44  ;;  %6746 = vmatprep.subr.mxu1 %v1825_v43  ;;  %v1532_v1 = vmul.f32 %v8588_v41, %v1487_v58  ;;  %v1352_v44 = vmul.f32 %v8576_v33, %v8604_v57 }
 0x1d3   : > { %v1567_v50 = vadd.f32 %v8593_v46, %v1545_v47  ;;  %v1290_v51 = vpop.permute.xlu1 %1289  ;;  %6747 = vmatpush3.msra.mxu1 %v1825_v43 }
 0x1d4   : > { %6748 = vmatprep.subr.mxu1 %v1824_v48  ;;  %v1584_v55 = vmax.f32 %v1568_v49, 0.0  ;;  %v1347_v6 = vmul.f32 %v8576_v33, %v1290_v51 }
 0x1d5   : > { %v1583_v53 = vmax.f32 %v1567_v50, 0.0  ;;  %6749 = vmatpush3.msra.mxu1 %v1824_v48  ;;  %v1495_v17 = vpop.permute.xlu0 %1494 }
 0x1d6   : > { %v1534_v21 = vmul.f32 %v8588_v41, %v1495_v17 }
 0x1d7   : > { %6724 = vmatprep.mubr.msk.f32.mxu1 %vm1610_vm0, %v1583_v53 }
 0x1d8   : > { %v1383_v56 = vpop.permute.xlu1 %1382  ;;  %6725 = vmatmul.mubr.msk.f32.gmra.mxu1 %vm1610_vm0, %v1584_v55 }
 0x1d9   : > { %v1431_v2 = vmul.f32 %v8581_v36, %v1383_v56  ;;  %v1503_v42 = vpop.permute.xlu0 %1502 }
 0x1da   : > { %v1536_v47 = vmul.f32 %v8588_v41, %v1503_v42 }
 0x1db   : > { %v1447_v9 = vadd.f32 %v1431_v2, %v1347_v6 }
 0x1dc   : > { %v1387_v61 = vpop.permute.xlu1 %1386 }
 0x1dd   : > { %v1432_v63 = vmul.f32 %v8581_v36, %v1387_v61 }
 0x1df   : > { %v1448_v4 = vadd.f32 %v1432_v63, %v1348_v60  ;;  %v1823_v63 = vld [vmem:[#allocation7 + $0x18] sm:$0xff] }
 0x1e0   : > { %6750 = vmatprep.subr.mxu1 %v1823_v63 }
 0x1e1   : > { %v1548_v7 = vadd.f32 %v1532_v1, %v1448_v4  ;;  %v1483_v8 = vpop.permute.xlu1 %1482  ;;  %6751 = vmatpush3.msra.mxu1 %v1823_v63  ;;  %v1822_v4 = vld [vmem:[#allocation7 + $0x10] sm:$0xff] }
 0x1e2   : > { %v1531_v10 = vmul.f32 %v8588_v41, %v1483_v8  ;;  %6752 = vmatprep.subr.mxu1 %v1822_v4  ;;  %v1820_v8 = vld [vmem:[#allocation7] sm:$0xff] }
 0x1e3   : > { %v1570_v12 = vadd.f32 %v8593_v46, %v1548_v7  ;;  %v1821_v7 = vld [vmem:[#allocation7 + $0x8] sm:$0xff]  ;;  %6753 = vmatpush3.msra.mxu1 %v1822_v4 }
 0x1e4   : > { %v1547_v11 = vadd.f32 %v1531_v10, %v1447_v9  ;;  %6754 = vmatprep.subr.mxu1 %v1821_v7  ;;  %v1354_v10 = vmul.f32 %v8576_v33, %v8606_v59 }
 0x1e5   : > { %v1586_v15 = vmax.f32 %v1570_v12, 0.0  ;;  %6755 = vmatpush3.msra.mxu1 %v1821_v7  ;;  %v1511_v12 = vpop.permute.xlu0 %1510 }
 0x1e6   : > { %v1569_v52 = vadd.f32 %v8593_v46, %v1547_v11  ;;  %v1300_v13 = vpop.permute.xlu1 %1299  ;;  %6756 = vmatprep.subr.mxu1 %v1820_v8 }
 0x1e7   : > { %v1349_v24 = vmul.f32 %v8576_v33, %v1300_v13  ;;  %6757 = vmatpush3.msra.mxu1 %v1820_v8  ;;  %v1538_v13 = vmul.f32 %v8588_v41, %v1511_v12 }
 0x1e8   : > { %v1585_v14 = vmax.f32 %v1569_v52, 0.0 }
 0x1ea   : > { %6727 = vmatprep.mubr.msk.f32.mxu1 %vm1610_vm0, %v1585_v14 }
 0x1eb   : > { %v1391_v16 = vpop.permute.xlu1 %1390  ;;  %6728 = vmatmul.mubr.msk.f32.gmra.mxu1 %vm1610_vm0, %v1586_v15 }
 0x1ec   : > { %v1433_v22 = vmul.f32 %v8581_v36, %v1391_v16 }
 0x1ee   : > { %v1449_v29 = vadd.f32 %v1433_v22, %v1349_v24 }
 0x1ef   : > { %v1395_v19 = vpop.permute.xlu1 %1394 }
 0x1f0   : > { %v1434_v20 = vmul.f32 %v8581_v36, %v1395_v19 }
 0x1f2   : > { %v1450_v23 = vadd.f32 %v1434_v20, %v1350_v18 }
 0x1f4   : > { %v1550_v25 = vadd.f32 %v1534_v21, %v1450_v23  ;;  %v1491_v26 = vpop.permute.xlu1 %1490 }
 0x1f5   : > { %v1533_v30 = vmul.f32 %v8588_v41, %v1491_v26  ;;  %v1519_v26 = vpop.permute.xlu0 %1518 }
 0x1f6   : > { %v1572_v34 = vadd.f32 %v8593_v46, %v1550_v25 }
 0x1f7   : > { %v1549_v31 = vadd.f32 %v1533_v30, %v1449_v29  ;;  %v1356_v30 = vmul.f32 %v8576_v33, %v8609_v62 }
 0x1f8   : > { %v1588_v39 = vmax.f32 %v1572_v34, 0.0 }
 0x1f9   : > { %v1571_v54 = vadd.f32 %v8593_v46, %v1549_v31  ;;  %v1310_v37 = vpop.permute.xlu1 %1309 }
 0x1fa   : > { %v1351_v50 = vmul.f32 %v8576_v33, %v1310_v37 }
 0x1fb   : > { %v1587_v38 = vmax.f32 %v1571_v54, 0.0  ;;  %v1540_v54 = vmul.f32 %v8588_v41, %v1519_v26 }
 0x1fd   : > { %6730 = vmatprep.mubr.msk.f32.mxu1 %vm1610_vm0, %v1587_v38 }
 0x1fe   : > { %v1399_v40 = vpop.permute.xlu1 %1398  ;;  %6731 = vmatmul.mubr.msk.f32.gmra.mxu1 %vm1610_vm0, %v1588_v39 }
 0x1ff   : > { %v1435_v48 = vmul.f32 %v8581_v36, %v1399_v40 }
 0x201   : > { %v1451_v55 = vadd.f32 %v1435_v48, %v1351_v50 }
 0x202   : > { %v1403_v43 = vpop.permute.xlu1 %1402 }
 0x203   : > { %v1436_v45 = vmul.f32 %v8581_v36, %v1403_v43 }
 0x205   : > { %v1452_v49 = vadd.f32 %v1436_v45, %v1352_v44 }
 0x207   : > { %v1552_v51 = vadd.f32 %v1536_v47, %v1452_v49  ;;  %v1499_v53 = vpop.permute.xlu1 %1498 }
 0x208   : > { %v1535_v56 = vmul.f32 %v8588_v41, %v1499_v53 }
 0x209   : > { %v1574_v60 = vadd.f32 %v8593_v46, %v1552_v51 }
 0x20a   : > { %v1551_v58 = vadd.f32 %v1535_v56, %v1451_v55 }
 0x20b   : > { %v1590_v2 = vmax.f32 %v1574_v60, 0.0 }
 0x20c   : > { %v1573_v61 = vadd.f32 %v8593_v46, %v1551_v58  ;;  %v1320_v57 = vpop.permute.xlu1 %1319 }
 0x20d   : > { %v1353_v15 = vmul.f32 %v8576_v33, %v1320_v57 }
 0x20e   : > { %v1589_v1 = vmax.f32 %v1573_v61, 0.0 }
 0x210   : > { %6733 = vmatprep.mubr.msk.f32.mxu1 %vm1610_vm0, %v1589_v1 }
 0x211   : > { %v1407_v6 = vpop.permute.xlu1 %1406  ;;  %6734 = vmatmul.mubr.msk.f32.gmra.mxu1 %vm1610_vm0, %v1590_v2 }
 0x212   : > { %v1437_v52 = vmul.f32 %v8581_v36, %v1407_v6 }
 0x214   : > { %v1453_v18 = vadd.f32 %v1437_v52, %v1353_v15 }
 0x215   : > { %v1411_v9 = vpop.permute.xlu1 %1410 }
 0x216   : > { %v1438_v11 = vmul.f32 %v8581_v36, %v1411_v9 }
 0x218   : > { %v1454_v14 = vadd.f32 %v1438_v11, %v1354_v10 }
 0x21a   : > { %v1554_v16 = vadd.f32 %v1538_v13, %v1454_v14  ;;  %v1507_v17 = vpop.permute.xlu1 %1506 }
 0x21b   : > { %v1537_v19 = vmul.f32 %v8588_v41, %v1507_v17 }
 0x21c   : > { %v1576_v21 = vadd.f32 %v8593_v46, %v1554_v16 }
 0x21d   : > { %v1553_v20 = vadd.f32 %v1537_v19, %v1453_v18 }
 0x21e   : > { %v1592_v24 = vmax.f32 %v1576_v21, 0.0 }
 0x21f   : > { %v1575_v59 = vadd.f32 %v8593_v46, %v1553_v20  ;;  %v1330_v22 = vpop.permute.xlu1 %1329 }
 0x220   : > { %v1355_v38 = vmul.f32 %v8576_v33, %v1330_v22 }
 0x221   : > { %v1591_v23 = vmax.f32 %v1575_v59, 0.0 }
 0x223   : > { %6736 = vmatprep.mubr.msk.f32.mxu1 %vm1610_vm0, %v1591_v23 }
 0x224   : > { %v1415_v25 = vpop.permute.xlu1 %1414  ;;  %6737 = vmatmul.mubr.msk.f32.gmra.mxu1 %vm1610_vm0, %v1592_v24 }
 0x225   : > { %v1439_v34 = vmul.f32 %v8581_v36, %v1415_v25 }
 0x227   : > { %v1455_v42 = vadd.f32 %v1439_v34, %v1355_v38 }
 0x228   : > { %v1419_v29 = vpop.permute.xlu1 %1418 }
 0x229   : > { %v1440_v31 = vmul.f32 %v8581_v36, %v1419_v29  ;;  %v6228_v36 = vld [vmem:[%s11104_s16] ss:$0 sm:$0xff]  ;;  %s11140_s16 = sld [smem:[#allocation57_spill]] }
 0x22b   : > { %v1456_v37 = vadd.f32 %v1440_v31, %v1356_v30 }
 0x22d   : > { %v1556_v39 = vadd.f32 %v1540_v54, %v1456_v37  ;;  %v1515_v40 = vpop.permute.xlu1 %1514 }
 0x22e   : > { %v1539_v43 = vmul.f32 %v8588_v41, %v1515_v40  ;;  %v8108_v40 = vmov 0.0  }
 0x22f   : > { %v1578_v45 = vadd.f32 %v8593_v46, %v1556_v39  ;;  %6782 = vmatprep.subr.mxu0 %v8108_v40  ;;  %6801 = vmatprep.subr.mxu1 %v8108_v40 }
 0x230   : > { %v1555_v44 = vadd.f32 %v1539_v43, %v1455_v42  ;;  %v2072_v42 = vld [vmem:[#allocation8 + $0x38] sm:$0xff]  ;;  %v2071_v43 = vld [vmem:[#allocation8 + $0x30] sm:$0xff]  ;;  %6798 = vmatprep.mubr.msk.f32.mxu0 %vm8109_vm1, %v8108_v40 }
 0x231   : > { %v1594_v48 = vmax.f32 %v1578_v45, 0.0  ;;  %6783 = vmatpush3.msra.mxu0 %v2072_v42  ;;  %v2069_v45 = vld [vmem:[#allocation8 + $0x20] sm:$0xff] }
 0x232   : > { %v1577_v62 = vadd.f32 %v8593_v46, %v1555_v44  ;;  %6784 = vmatprep.subr.mxu0 %v8108_v40  ;;  %v2070_v44 = vld [vmem:[#allocation8 + $0x28] sm:$0xff] }
 0x233   : > { %6785 = vmatpush3.msra.mxu0 %v2071_v43 }
 0x234   : > { %v1593_v47 = vmax.f32 %v1577_v62, 0.0  ;;  %6786 = vmatprep.subr.mxu0 %v8108_v40  ;;  %v2068_v62 = vld [vmem:[#allocation8 + $0x18] sm:$0xff] }
 0x235   : > { %6787 = vmatpush3.msra.mxu0 %v2070_v44 }
 0x236   : > { %6739 = vmatprep.mubr.msk.f32.mxu1 %vm1610_vm0, %v1593_v47  ;;  %6788 = vmatprep.subr.mxu0 %v8108_v40  ;;  %v2067_v47 = vld [vmem:[#allocation8 + $0x10] sm:$0xff] }
 0x237   : > { %6740 = vmatmul.mubr.msk.f32.gmra.mxu1 %vm1610_vm0, %v1594_v48  ;;  %6789 = vmatpush3.msra.mxu0 %v2069_v45  ;;  %v2066_v48 = vld [vmem:[#allocation8 + $0x8] sm:$0xff] }
 0x238   : > { %6790 = vmatprep.subr.mxu0 %v8108_v40 }
 0x239   : > { %6791 = vmatpush3.msra.mxu0 %v2068_v62 }
 0x23a   : > { %6792 = vmatprep.subr.mxu0 %v8108_v40 }
 0x23b   : > { %6793 = vmatpush3.msra.mxu0 %v2067_v47 }
 0x23c   : > { %6794 = vmatprep.subr.mxu0 %v8108_v40 }
 0x23d   : > { %6795 = vmatpush3.msra.mxu0 %v2066_v48 }
 0x23e   : > { %6796 = vmatprep.subr.mxu0 %v8108_v40 }
 0x28e   : > { %v6720_v49 = vpop.f32.mrf.mxu1 }
 0x28f   : > { %v1731_v50 = vadd.f32 %v6720_v49, %v6228_v36  ;;  %v2155_v49 = vld [vmem:[#allocation10 + $0x38] sm:$0xff] }
 0x290   : > { %v1725_v33 = vpop.f32.mrf.mxu1 }
 0x291   : > { %v1726_v51 = vadd.f32 %v6228_v36, %v1725_v33  ;;  %v1805_v56 = vmax.f32 %v1731_v50, 0.0  ;;  %v2154_v50 = vld [vmem:[#allocation10 + $0x30] sm:$0xff]  ;;  %v2153_v33 = vld [vmem:[#allocation10 + $0x28] sm:$0xff] }
 0x292   : > { %v6723_v53 = vpop.f32.mrf.mxu1 }
 0x293   : > { %v1804_v55 = vmax.f32 %v1726_v51, 0.0  ;;  %v1741_v41 = vadd.f32 %v6723_v53, %v6228_v36  ;;  %v2152_v51 = vld [vmem:[#allocation10 + $0x20] sm:$0xff]  ;;  %v2151_v53 = vld [vmem:[#allocation10 + $0x18] sm:$0xff] }
 0x294   : > { %v1735_v58 = vpop.f32.mrf.mxu1 }
 0x295   : > { %v1736_v60 = vadd.f32 %v6228_v36, %v1735_v58  ;;  %6758 = vmatprep.mubr.msk.f32.mxu1 %vm1610_vm0, %v1804_v55  ;;  %v1807_v61 = vmax.f32 %v1741_v41, 0.0  ;;  %v2150_v55 = vld [vmem:[#allocation10 + $0x10] sm:$0xff] }
 0x296   : > { %6759 = vmatmul.mubr.msk.f32.vlgmr.msra.gmra.mxu1 %vm1610_vm0, %v1805_v56  ;;  %v2149_v56 = vld [vmem:[#allocation10 + $0x8] sm:$0xff] }
 0x297   : > { %v1806_v46 = vmax.f32 %v1736_v60, 0.0  ;;  %6802 = vmatpush3.msra.mxu1 %v2155_v49 }
 0x298   : > { %v6726_v57 = vpop.f32.mrf.mxu1  ;;  %6803 = vmatprep.subr.mxu1 %v8108_v40 }
 0x299   : > { %6761 = vmatprep.mubr.msk.f32.mxu1 %vm1610_vm0, %v1806_v46  ;;  %v1751_v63 = vadd.f32 %v6726_v57, %v6228_v36  ;;  %6804 = vmatpush3.msra.mxu1 %v2154_v50 }
 0x29a   : > { %v1745_v1 = vpop.f32.mrf.mxu1  ;;  %6762 = vmatmul.mubr.msk.f32.gmra.mxu1 %vm1610_vm0, %v1807_v61  ;;  %6805 = vmatprep.subr.mxu1 %v8108_v40 }
 0x29b   : > { %v1746_v2 = vadd.f32 %v6228_v36, %v1745_v1  ;;  %v1809_v6 = vmax.f32 %v1751_v63, 0.0  ;;  %6806 = vmatpush3.msra.mxu1 %v2153_v33 }
 0x29c   : > { %6807 = vmatprep.subr.mxu1 %v8108_v40 }
 0x29d   : > { %v1808_v4 = vmax.f32 %v1746_v2, 0.0  ;;  %6808 = vmatpush3.msra.mxu1 %v2152_v51 }
 0x29e   : > { %6809 = vmatprep.subr.mxu1 %v8108_v40 }
 0x29f   : > { %6764 = vmatprep.mubr.msk.f32.mxu1 %vm1610_vm0, %v1808_v4  ;;  %6810 = vmatpush3.msra.mxu1 %v2151_v53 }
 0x2a0   : > { %6765 = vmatmul.mubr.msk.f32.gmra.mxu1 %vm1610_vm0, %v1809_v6  ;;  %6811 = vmatprep.subr.mxu1 %v8108_v40 }
 0x2a1   : > { %6812 = vmatpush3.msra.mxu1 %v2150_v55 }
 0x2a2   : > { %6813 = vmatprep.subr.mxu1 %v8108_v40 }
 0x2a3   : > { %6814 = vmatpush3.msra.mxu1 %v2149_v56 }
 0x2a4   : > { %6815 = vmatprep.subr.mxu1 %v8108_v40 }
 0x2ab   : > { %v6729_v7 = vpop.f32.mrf.mxu1 }
 0x2ac   : > { %v1761_v8 = vadd.f32 %v6729_v7, %v6228_v36 }
 0x2ad   : > { %v1755_v9 = vpop.f32.mrf.mxu1 }
 0x2ae   : > { %v1756_v10 = vadd.f32 %v6228_v36, %v1755_v9  ;;  %v1811_v12 = vmax.f32 %v1761_v8, 0.0  ;;  %v6245_v9 = vld [vmem:[%s11105_s14] ss:$0 sm:$0xff]  ;;  %s11159_s14 = sld [smem:[#allocation58_spill]] }
 0x2b0   : > { %v1810_v11 = vmax.f32 %v1756_v10, 0.0 }
 0x2b2   : > { %6767 = vmatprep.mubr.msk.f32.mxu1 %vm1610_vm0, %v1810_v11 }
 0x2b3   : > { %6768 = vmatmul.mubr.msk.f32.gmra.mxu1 %vm1610_vm0, %v1811_v12 }
 0x2be   : > { %v6732_v52 = vpop.f32.mrf.mxu1 }
 0x2bf   : > { %v1771_v13 = vadd.f32 %v6732_v52, %v6228_v36 }
 0x2c0   : > { %v1765_v14 = vpop.f32.mrf.mxu1 }
 0x2c1   : > { %v1766_v15 = vadd.f32 %v6228_v36, %v1765_v14  ;;  %v1813_v17 = vmax.f32 %v1771_v13, 0.0 }
 0x2c3   : > { %v1812_v16 = vmax.f32 %v1766_v15, 0.0 }
 0x2c5   : > { %6770 = vmatprep.mubr.msk.f32.mxu1 %vm1610_vm0, %v1812_v16 }
 0x2c6   : > { %6771 = vmatmul.mubr.msk.f32.gmra.mxu1 %vm1610_vm0, %v1813_v17 }
 0x2d1   : > { %v6735_v18 = vpop.f32.mrf.mxu1 }
 0x2d2   : > { %v1781_v19 = vadd.f32 %v6735_v18, %v6228_v36 }
 0x2d3   : > { %v1775_v20 = vpop.f32.mrf.mxu1 }
 0x2d4   : > { %v1776_v21 = vadd.f32 %v6228_v36, %v1775_v20  ;;  %v1815_v22 = vmax.f32 %v1781_v19, 0.0 }
 0x2d6   : > { %v1814_v59 = vmax.f32 %v1776_v21, 0.0 }
 0x2d8   : > { %6773 = vmatprep.mubr.msk.f32.mxu1 %vm1610_vm0, %v1814_v59 }
 0x2d9   : > { %6774 = vmatmul.mubr.msk.f32.gmra.mxu1 %vm1610_vm0, %v1815_v22 }
 0x2e4   : > { %v6738_v23 = vpop.f32.mrf.mxu1 }
 0x2e5   : > { %v1791_v24 = vadd.f32 %v6738_v23, %v6228_v36 }
 0x2e6   : > { %v1785_v25 = vpop.f32.mrf.mxu1 }
 0x2e7   : > { %v1786_v26 = vadd.f32 %v6228_v36, %v1785_v25  ;;  %v1817_v30 = vmax.f32 %v1791_v24, 0.0 }
 0x2e9   : > { %v1816_v29 = vmax.f32 %v1786_v26, 0.0 }
 0x2eb   : > { %6776 = vmatprep.mubr.msk.f32.mxu1 %vm1610_vm0, %v1816_v29 }
 0x2ec   : > { %6777 = vmatmul.mubr.msk.f32.gmra.mxu1 %vm1610_vm0, %v1817_v30 }
 0x2f7   : > { %v6741_v31 = vpop.f32.mrf.mxu1 }
 0x2f8   : > { %v1801_v34 = vadd.f32 %v6741_v31, %v6228_v36 }
 0x2f9   : > { %v1795_v54 = vpop.f32.mrf.mxu1 }
 0x2fa   : > { %v1796_v37 = vadd.f32 %v6228_v36, %v1795_v54  ;;  %v1819_v39 = vmax.f32 %v1801_v34, 0.0  ;;  %v2065_v36 = vld [vmem:[#allocation8] sm:$0xff] }
 0x2fb   : > { %6797 = vmatpush3.msra.mxu0 %v2065_v36 }
 0x2fc   : > { %v1818_v38 = vmax.f32 %v1796_v37, 0.0  ;;  %6820 = vmatprep.subr.mxu0 %v8108_v40 }
 0x2fe   : > { %6779 = vmatprep.mubr.msk.f32.mxu1 %vm1610_vm0, %v1818_v38 }
 0x2ff   : > { %6780 = vmatmul.mubr.msk.f32.gmra.mxu1 %vm1610_vm0, %v1819_v39 }
 0x300   : > { %6817 = vmatprep.mubr.msk.f32.mxu1 %vm8109_vm1, %v8108_v40 }
 0x356   : > { %v6760_v41 = vpop.f32.mrf.mxu1 }
 0x357   : > { %v1955_v11 = vadd.f32 %v6760_v41, %v6245_v9 }
 0x358   : > { %v1949_v58 = vpop.f32.mrf.mxu1 }
 0x359   : > { %v1950_v12 = vadd.f32 %v6245_v9, %v1949_v58  ;;  %v2029_v23 = vsel %vm1610_vm0, %v1955_v11, -inf  ;;  %v2271_v11 = vld [vmem:[#allocation11 + $0x38] sm:$0xff] }
 0x35a   : > { %v6763_v60 = vpop.f32.mrf.mxu1 }
 0x35b   : > { %v1965_v17 = vadd.f32 %v6763_v60, %v6245_v9  ;;  %v2028_v24 = vsel %vm1610_vm0, %v1950_v12, -inf  ;;  %v2270_v12 = vld [vmem:[#allocation11 + $0x30] sm:$0xff] }
 0x35c   : > { %v1959_v46 = vpop.f32.mrf.mxu1 }
 0x35d   : > { %v1960_v18 = vadd.f32 %v6245_v9, %v1959_v46  ;;  %v2031_v34 = vsel %vm1610_vm0, %v1965_v17, -inf  ;;  %v2073_v17 = vld [vmem:[%s11106_s18] sm:$0x1]  ;;  %s11165_s18 = sld [smem:[#allocation59_spill]] }
 0x35f   : > { %v2030_v54 = vsel %vm1610_vm0, %v1960_v18, -inf }
 0x360   : > { %v6766_v61 = vpop.f32.mrf.mxu1 }
 0x361   : > { %v1975_v52 = vadd.f32 %v6766_v61, %v6245_v9 }
 0x362   : > { %v1969_v57 = vpop.f32.mrf.mxu1 }
 0x363   : > { %v1970_v10 = vadd.f32 %v6245_v9, %v1969_v57  ;;  %v2034_v25 = vsel %vm1610_vm0, %v1975_v52, -inf  ;;  %v2269_v52 = vld [vmem:[#allocation11 + $0x28] sm:$0xff] }
 0x364   : > { %v2035_v62 = vmax.f32 %v2029_v23, %v2034_v25  ;;  %v2420_v23 = vld [vmem:[#allocation13 + $0x30] sm:$0xff]  ;;  %v2156_v25 = vld [vmem:[%s11107_s25] sm:$0x1]  ;;  %s6438_s25 = sshll.u32 %s8503_s7, 8  ;;  %s6222_s7 = sshll.u32 %s8759_s0, 9 }
 0x365   : > { %v2032_v20 = vsel %vm1610_vm0, %v1970_v10, -inf }
 0x366   : > { %v2033_v37 = vmax.f32 %v2028_v24, %v2032_v20  ;;  %v2419_v24 = vld [vmem:[#allocation13 + $0x28] sm:$0xff] }
 0x373   : > { %v6769_v63 = vpop.f32.mrf.mxu1 }
 0x374   : > { %v1985_v14 = vadd.f32 %v6769_v63, %v6245_v9 }
 0x375   : > { %v1979_v1 = vpop.f32.mrf.mxu1 }
 0x376   : > { %v1980_v15 = vadd.f32 %v6245_v9, %v1979_v1  ;;  %v2038_v26 = vsel %vm1610_vm0, %v1985_v14, -inf  ;;  %v2267_v14 = vld [vmem:[#allocation11 + $0x18] sm:$0xff] }
 0x377   : > { %v2039_v47 = vmax.f32 %v2031_v34, %v2038_v26  ;;  %v2764_v34 = vld [vmem:[#allocation16 + $0x30] sm:$0xff] }
 0x378   : > { %v2036_v29 = vsel %vm1610_vm0, %v1980_v15, -inf  ;;  %v2266_v15 = vld [vmem:[#allocation11 + $0x10] sm:$0xff] }
 0x379   : > { %v2037_v48 = vmax.f32 %v2030_v54, %v2036_v29  ;;  %v2763_v54 = vld [vmem:[#allocation16 + $0x28] sm:$0xff] }
 0x386   : > { %v6772_v2 = vpop.f32.mrf.mxu1 }
 0x387   : > { %v1995_v19 = vadd.f32 %v6772_v2, %v6245_v9 }
 0x388   : > { %v1989_v4 = vpop.f32.mrf.mxu1 }
 0x389   : > { %v1990_v16 = vadd.f32 %v6245_v9, %v1989_v4  ;;  %v2042_v38 = vsel %vm1610_vm0, %v1995_v19, -inf }
 0x38a   : > { %v2043_v53 = vmax.f32 %v2035_v62, %v2042_v38  ;;  %v2761_v38 = vld [vmem:[#allocation16 + $0x18] sm:$0xff]  ;;  %v2416_v62 = vld [vmem:[#allocation13 + $0x10] sm:$0xff] }
 0x38b   : > { %v2040_v30 = vsel %vm1610_vm0, %v1990_v16, -inf  ;;  %v2265_v16 = vld [vmem:[#allocation11 + $0x8] sm:$0xff] }
 0x38c   : > { %v2041_v36 = vmax.f32 %v2033_v37, %v2040_v30  ;;  %v2765_v30 = vld [vmem:[#allocation16 + $0x38] sm:$0xff]  ;;  %v2762_v37 = vld [vmem:[#allocation16 + $0x20] sm:$0xff] }
 0x399   : > { %v6775_v6 = vpop.f32.mrf.mxu1 }
 0x39a   : > { %v2005_v21 = vadd.f32 %v6775_v6, %v6245_v9 }
 0x39b   : > { %v1999_v7 = vpop.f32.mrf.mxu1 }
 0x39c   : > { %v2000_v59 = vadd.f32 %v6245_v9, %v1999_v7  ;;  %v2046_v42 = vsel %vm1610_vm0, %v2005_v21, -inf }
 0x39d   : > { %v2047_v55 = vmax.f32 %v2039_v47, %v2046_v42  ;;  %v2759_v42 = vld [vmem:[#allocation16 + $0x8] sm:$0xff] }
 0x39e   : > { %v2044_v43 = vsel %vm1610_vm0, %v2000_v59, -inf  ;;  %v2264_v59 = vld [vmem:[#allocation11] sm:$0xff]  ;;  %v2415_v47 = vld [vmem:[#allocation13 + $0x8] sm:$0xff] }
 0x39f   : > { %v2045_v56 = vmax.f32 %v2037_v48, %v2044_v43  ;;  %v2758_v43 = vld [vmem:[#allocation16] sm:$0xff] }
 0x3a0   : > { %v2414_v48 = vld [vmem:[#allocation13] sm:$0xff] }
 0x3ac   : > { %v6778_v8 = vpop.f32.mrf.mxu1 }
 0x3ad   : > { %v2015_v31 = vadd.f32 %v6778_v8, %v6245_v9 }
 0x3ae   : > { %v2009_v13 = vpop.f32.mrf.mxu1 }
 0x3af   : > { %v2010_v22 = vadd.f32 %v6245_v9, %v2009_v13  ;;  %v2050_v50 = vsel %vm1610_vm0, %v2015_v31, -inf  ;;  %v2268_v13 = vld [vmem:[#allocation11 + $0x20] sm:$0xff] }
 0x3b0   : > { %v2051_v60 = vmax.f32 %v2043_v53, %v2050_v50  ;;  %v2755_v50 = vld [vmem:[#allocation14 + $0x28] sm:$0xff]  ;;  %v2272_v53 = vld [vmem:[%s11108_s22] sm:$0x1]  ;;  %s9798_s22 = scalar_lea.vmem %s8277_s17, %s6438_s25 }
 0x3b1   : > { %v2048_v44 = vsel %vm1610_vm0, %v2010_v22, -inf  ;;  %v2421_v22 = vld [vmem:[#allocation13 + $0x38] sm:$0xff] }
 0x3b2   : > { %v2049_v41 = vmax.f32 %v2041_v36, %v2048_v44  ;;  %v2418_v44 = vld [vmem:[#allocation13 + $0x20] sm:$0xff]  ;;  %v2757_v36 = vld [vmem:[#allocation14 + $0x38] sm:$0xff] }
 0x3b4   : > { %v2056_v57 = vmax.f32 %v2049_v41, %v2051_v60  ;;  %v2233_v60 = vld [vmem:[#allocation2 + $0x8] sm:$0xff] }
 0x3bf   : > { %v6781_v39 = vpop.f32.mrf.mxu1 }
 0x3c0   : > { %v2025_v45 = vadd.f32 %v6781_v39, %v6245_v9  ;;  %v2760_v39 = vld [vmem:[#allocation16 + $0x10] sm:$0xff] }
 0x3c1   : > { %v2019_v49 = vpop.f32.mrf.mxu1 }
 0x3c2   : > { %v2054_v33 = vsel %vm1610_vm0, %v2025_v45, -inf  ;;  %v2020_v51 = vadd.f32 %v6245_v9, %v2019_v49  ;;  %v2148_v9 = vld [vmem:[#allocation10] sm:$0xff]  ;;  %v2417_v45 = vld [vmem:[#allocation13 + $0x18] sm:$0xff]  ;;  %v2756_v49 = vld [vmem:[#allocation14 + $0x30] sm:$0xff] }
 0x3c3   : > { %v2055_v46 = vmax.f32 %v2047_v55, %v2054_v33  ;;  %6816 = vmatpush3.msra.mxu1 %v2148_v9  ;;  %v2754_v33 = vld [vmem:[#allocation14 + $0x20] sm:$0xff] }
 0x3c4   : > { %v2052_v58 = vsel %vm1610_vm0, %v2020_v51, -inf  ;;  %6839 = vmatprep.subr.mxu1 %v2421_v22  ;;  %v2753_v51 = vld [vmem:[#allocation14 + $0x18] sm:$0xff] }
 0x3c5   : > { %v2053_v61 = vmax.f32 %v2045_v56, %v2052_v58  ;;  %v2232_v58 = vld [vmem:[#allocation2] sm:$0xff] }
 0x3c7   : > { %v2057_v63 = vmax.f32 %v2053_v61, %v2055_v46  ;;  %v2234_v46 = vld [vmem:[#allocation2 + $0x10] sm:$0xff] }
 0x3c9   : > { %v2058_v1 = vmax.f32 %v2056_v57, %v2057_v63 }
 0x3cb   : > { %v2059_v2 = vrot.slane %v2058_v1, 4 }
 0x3cd   : > { %v2060_v4 = vmax.f32 %v2058_v1, %v2059_v2  ;;  %v2235_v2 = vld [vmem:[#allocation2 + $0x18] sm:$0xff] }
 0x3cf   : > { %v2061_v6 = vrot.slane %v2060_v4, 2 }
 0x3d1   : > { %v2062_v7 = vmax.f32 %v2060_v4, %v2061_v6  ;;  %v2236_v4 = vld [vmem:[#allocation2 + $0x20] sm:$0xff] }
 0x3d3   : > { %v2063_v8 = vrot.slane %v2062_v7, 1 }
 0x3d5   : > { %v2064_v10 = vmax.f32 %v2062_v7, %v2063_v8 }
 0x3d7   : > { %6799 = vmatmul.mubr.msk.f32.vlgmr.msra.gmra.mxu0 %vm1610_vm0, %v2064_v10 }
 0x3d8   : > { %6836 = vmatprep.mubr.msk.f32.mxu0 %vm8109_vm1, %v8108_v40  ;;  %6821 = vmatpush3.msra.mxu0 %v2271_v11  ;;  %v2237_v11 = vld [vmem:[#allocation2 + $0x28] sm:$0xff] }
 0x3d9   : > { %6822 = vmatprep.subr.mxu0 %v8108_v40 }
 0x3da   : > { %6823 = vmatpush3.msra.mxu0 %v2270_v12  ;;  %v2238_v12 = vld [vmem:[#allocation2 + $0x30] sm:$0xff] }
 0x3db   : > { %6824 = vmatprep.subr.mxu0 %v8108_v40 }
 0x3dc   : > { %6825 = vmatpush3.msra.mxu0 %v2269_v52 }
 0x3dd   : > { %6826 = vmatprep.subr.mxu0 %v8108_v40 }
 0x3de   : > { %6827 = vmatpush3.msra.mxu0 %v2268_v13 }
 0x3df   : > { %6828 = vmatprep.subr.mxu0 %v8108_v40 }
 0x3e0   : > { %6829 = vmatpush3.msra.mxu0 %v2267_v14 }
 0x3e1   : > { %6830 = vmatprep.subr.mxu0 %v8108_v40 }
 0x3e2   : > { %6831 = vmatpush3.msra.mxu0 %v2266_v15 }
 0x3e3   : > { %6832 = vmatprep.subr.mxu0 %v8108_v40 }
 0x3e4   : > { %6833 = vmatpush3.msra.mxu0 %v2265_v16  ;;  %v2239_v16 = vld [vmem:[#allocation2 + $0x38] sm:$0xff] }
 0x3e5   : > { %6834 = vmatprep.subr.mxu0 %v8108_v40 }
 0x3e6   : > { %6835 = vmatpush3.msra.mxu0 %v2264_v59 }
 0x3e7   : > { %6903 = vmatprep.subr.mxu0 %v8108_v40 }
 0x497   : > { %v2143_v18 = vpop.f32.mrf.mxu0 }
 0x498   : > { %v2144_v19 = vadd.f32 %v2143_v18, %v2073_v17  ;;  %v2240_v17 = vld [vmem:[#allocation2 + $0x40] sm:$0xff] }
 0x499   : > { %v6800_v20 = vpop.f32.mrf.mxu0 }
 0x49a   : > { %v2147_v21 = vmax.f32 %v2144_v19, 0.0 }
 0x49c   : > { %6818 = vmatmul.mubr.msk.f32.vlgmr.msra.gmra.mxu1 %vm1610_vm0, %v2147_v21 }
 0x49d   : > { %6840 = vmatpush3.msra.mxu1 %v2421_v22  ;;  %v2241_v22 = vld [vmem:[#allocation2 + $0x48] sm:$0xff] }
 0x49e   : > { %6841 = vmatprep.subr.mxu1 %v2420_v23 }
 0x49f   : > { %6842 = vmatpush3.msra.mxu1 %v2420_v23 }
 0x4a0   : > { %6843 = vmatprep.subr.mxu1 %v2419_v24 }
 0x4a1   : > { %6844 = vmatpush3.msra.mxu1 %v2419_v24  ;;  %v2242_v24 = vld [vmem:[#allocation2 + $0x50] sm:$0xff] }
 0x4a2   : > { %6845 = vmatprep.subr.mxu1 %v2418_v44 }
 0x4a3   : > { %6846 = vmatpush3.msra.mxu1 %v2418_v44  ;;  %v2246_v44 = vld [vmem:[#allocation2 + $0x70] sm:$0xff] }
 0x4a4   : > { %6847 = vmatprep.subr.mxu1 %v2417_v45 }
 0x4a5   : > { %6848 = vmatpush3.msra.mxu1 %v2417_v45 }
 0x4a6   : > { %6849 = vmatprep.subr.mxu1 %v2416_v62 }
 0x4a7   : > { %6850 = vmatpush3.msra.mxu1 %v2416_v62 }
 0x4a8   : > { %6851 = vmatprep.subr.mxu1 %v2415_v47 }
 0x4a9   : > { %6852 = vmatpush3.msra.mxu1 %v2415_v47 }
 0x4aa   : > { %6853 = vmatprep.subr.mxu1 %v2414_v48 }
 0x4ab   : > { %6854 = vmatpush3.msra.mxu1 %v2414_v48 }
 0x55c   : > { %v2226_v26 = vpop.f32.mrf.mxu1 }
 0x55d   : > { %v8762_v29 = vadd.f32 %v2226_v26, %v2156_v25 }
 0x55e   : > { %v6819_v31 = vpop.f32.mrf.mxu1 }
 0x55f   : > { %6837 = vmatmul.mubr.msk.f32.vlgmr.msra.gmra.mxu0 %vm1610_vm0, %v8762_v29  ;;  %2231 = vst.msk [vmem:[%s1228_s11] sm:$0x1] %vm2230_vm2, %v8762_v29 }
 0x560   : > { %6904 = vmatpush3.msra.mxu0 %v2765_v30  ;;  %6919 = vmatprep.mubr.msk.f32.mxu0 %vm8109_vm1, %v8108_v40 }
 0x561   : > { %6905 = vmatprep.subr.mxu0 %v8108_v40 }
 0x562   : > { %6906 = vmatpush3.msra.mxu0 %v2764_v34  ;;  %v2243_v34 = vld [vmem:[#allocation2 + $0x58] sm:$0xff] }
 0x563   : > { %6907 = vmatprep.subr.mxu0 %v8108_v40 }
 0x564   : > { %6908 = vmatpush3.msra.mxu0 %v2763_v54  ;;  %v2244_v54 = vld [vmem:[#allocation2 + $0x60] sm:$0xff] }
 0x565   : > { %6909 = vmatprep.subr.mxu0 %v8108_v40 }
 0x566   : > { %6910 = vmatpush3.msra.mxu0 %v2762_v37 }
 0x567   : > { %6911 = vmatprep.subr.mxu0 %v8108_v40 }
 0x568   : > { %6912 = vmatpush3.msra.mxu0 %v2761_v38 }
 0x569   : > { %6913 = vmatprep.subr.mxu0 %v8108_v40 }
 0x56a   : > { %6914 = vmatpush3.msra.mxu0 %v2760_v39 }
 0x56b   : > { %6915 = vmatprep.subr.mxu0 %v8108_v40 }
 0x56c   : > { %6916 = vmatpush3.msra.mxu0 %v2759_v42 }
 0x56d   : > { %6917 = vmatprep.subr.mxu0 %v8108_v40 }
 0x56e   : > { %6918 = vmatpush3.msra.mxu0 %v2758_v43  ;;  %v2245_v43 = vld [vmem:[#allocation2 + $0x68] sm:$0xff] }
 0x56f   : > { %6920 = vmatmul.mubr.msk.f32.vlgmr.msra.gmra.mxu0 %vm1610_vm0, %v8762_v29  ;;  %6922 = vmatprep.subr.mxu0 %v2757_v36 }
 0x570   : > { %6923 = vmatpush3.msra.mxu0 %v2757_v36  ;;  %v2247_v36 = vld [vmem:[#allocation2 + $0x78] sm:$0xff] }
 0x571   : > { %6924 = vmatprep.subr.mxu0 %v2756_v49 }
 0x572   : > { %6925 = vmatpush3.msra.mxu0 %v2756_v49  ;;  %v2248_v49 = vld [vmem:[#allocation2 + $0x80] sm:$0xff] }
 0x573   : > { %6926 = vmatprep.subr.mxu0 %v2755_v50 }
 0x574   : > { %6927 = vmatpush3.msra.mxu0 %v2755_v50 }
 0x575   : > { %6928 = vmatprep.subr.mxu0 %v2754_v33 }
 0x576   : > { %6929 = vmatpush3.msra.mxu0 %v2754_v33 }
 0x577   : > { %6930 = vmatprep.subr.mxu0 %v2753_v51 }
 0x578   : > { %6931 = vmatpush3.msra.mxu0 %v2753_v51 }
 0x61f   : > { %v2342_v55 = vpop.f32.mrf.mxu0 }
 0x620   : > { %v2343_v56 = vadd.f32 %v2342_v55, %v2272_v53  ;;  %v2249_v55 = vld [vmem:[#allocation2 + $0x88] sm:$0xff] }
 0x621   : > { %v6838_v41 = vpop.f32.mrf.mxu0 }
 0x622   : > { %v8783_v61 = vrot.slane %v2343_v56, %v8568_v28  ;;  %v2250_v56 = vld [vmem:[#allocation2 + $0x90] sm:$0xff] }
 0x624   : > { %v2350_v57 = vadd.f32 %v8783_v61, %v2232_v58  ;;  %v2351_v63 = vadd.f32 %v8783_v61, %v2233_v60  ;;  %v2352_v1 = vadd.f32 %v8783_v61, %v2234_v46  ;;  %v2353_v8 = vadd.f32 %v8783_v61, %v2235_v2 }
 0x625   : > { %v2354_v9 = vadd.f32 %v8783_v61, %v2236_v4  ;;  %v2355_v13 = vadd.f32 %v8783_v61, %v2237_v11  ;;  %v2356_v15 = vadd.f32 %v8783_v61, %v2238_v12  ;;  %v2357_v20 = vadd.f32 %v8783_v61, %v2239_v16 }
 0x626   : > { %v2382_v6 = vmax.f32 %v2350_v57, 0.0  ;;  %v2383_v7 = vmax.f32 %v2351_v63, 0.0  ;;  %v2384_v10 = vmax.f32 %v2352_v1, 0.0  ;;  %v2385_v52 = vmax.f32 %v2353_v8, 0.0  ;;  %v2251_v57 = vld [vmem:[#allocation2 + $0x98] sm:$0xff]  ;;  %v2252_v63 = vld [vmem:[#allocation2 + $0xa0] sm:$0xff] }
 0x627   : > { %v2386_v14 = vmax.f32 %v2354_v9, 0.0  ;;  %v2387_v19 = vmax.f32 %v2355_v13, 0.0  ;;  %v2388_v21 = vmax.f32 %v2356_v15, 0.0  ;;  %v2358_v59 = vadd.f32 %v8783_v61, %v2240_v17  ;;  %v2254_v8 = vld [vmem:[#allocation2 + $0xb0] sm:$0xff]  ;;  %v2256_v13 = vld [vmem:[#allocation2 + $0xc0] sm:$0xff] }
 0x628   : > { %6855 = vmatprep.mubr.msk.f32.mxu1 %vm1610_vm0, %v2382_v6  ;;  %v2389_v25 = vmax.f32 %v2357_v20, 0.0  ;;  %v2359_v26 = vadd.f32 %v8783_v61, %v2241_v22  ;;  %v2360_v31 = vadd.f32 %v8783_v61, %v2242_v24  ;;  %v2361_v38 = vadd.f32 %v8783_v61, %v2243_v34  ;;  %v2258_v20 = vld [vmem:[#allocation2 + $0xd0] sm:$0xff]  ;;  %v2259_v24 = vld [vmem:[#allocation2 + $0xd8] sm:$0xff] }
 0x629   : > { %6856 = vmatmul.mubr.msk.f32.vlgmr.msra.gmra.mxu1 %vm1610_vm0, %v2383_v7  ;;  %v2390_v30 = vmax.f32 %v2358_v59, 0.0  ;;  %v2362_v42 = vadd.f32 %v8783_v61, %v2244_v54  ;;  %v2363_v62 = vadd.f32 %v8783_v61, %v2245_v43  ;;  %v2364_v48 = vadd.f32 %v8783_v61, %v2246_v44  ;;  %v2253_v7 = vld [vmem:[#allocation2 + $0xa8] sm:$0xff]  ;;  %v2263_v44 = vld [vmem:[#allocation2 + $0xf8] sm:$0xff] }
 0x62a   : > { %6858 = vmatprep.mubr.msk.f32.mxu1 %vm1610_vm0, %v2384_v10  ;;  %v2391_v37 = vmax.f32 %v2359_v26, 0.0  ;;  %v2392_v39 = vmax.f32 %v2360_v31, 0.0  ;;  %v2393_v45 = vmax.f32 %v2361_v38, 0.0  ;;  %v2365_v33 = vadd.f32 %v8783_v61, %v2247_v36  ;;  %v2261_v54 = vld [vmem:[#allocation2 + $0xe8] sm:$0xff]  ;;  %v2752_v36 = vld [vmem:[#allocation14 + $0x10] sm:$0xff] }
 0x62b   : > { %v2394_v47 = vmax.f32 %v2362_v42, 0.0  ;;  %v2395_v50 = vmax.f32 %v2363_v62, 0.0  ;;  %v2396_v51 = vmax.f32 %v2364_v48, 0.0  ;;  %v2366_v53 = vadd.f32 %v8783_v61, %v2248_v49  ;;  %6932 = vmatprep.subr.mxu0 %v2752_v36  ;;  %v2751_v49 = vld [vmem:[#allocation14 + $0x8] sm:$0xff] }
 0x62c   : > { %v2397_v41 = vmax.f32 %v2365_v33, 0.0  ;;  %v2367_v58 = vadd.f32 %v8783_v61, %v2249_v55  ;;  %v2368_v46 = vadd.f32 %v8783_v61, %v2250_v56  ;;  %v2369_v2 = vadd.f32 %v8783_v61, %v2251_v57  ;;  %6933 = vmatpush3.msra.mxu0 %v2752_v36  ;;  %v3208_v33 = vld [vmem:[#allocation17 + $0x70] sm:$0xff]  ;;  %v3205_v55 = vld [vmem:[#allocation17 + $0x58] sm:$0xff]  ;;  %v3199_v57 = vld [vmem:[#allocation17 + $0x28] sm:$0xff] }
 0x62d   : > { %6859 = vmatmul.mubr.msk.f32.gmra.mxu1 %vm1610_vm0, %v2385_v52  ;;  %v2398_v60 = vmax.f32 %v2366_v53, 0.0  ;;  %v2370_v6 = vadd.f32 %v8783_v61, %v2252_v63  ;;  %v2371_v9 = vadd.f32 %v8783_v61, %v2253_v7  ;;  %v2372_v12 = vadd.f32 %v8783_v61, %v2254_v8  ;;  %v2255_v52 = vld [vmem:[#allocation2 + $0xb8] sm:$0xff]  ;;  %6934 = vmatprep.subr.mxu0 %v2751_v49  ;;  %v3206_v53 = vld [vmem:[#allocation17 + $0x60] sm:$0xff]  ;;  %v3204_v56 = vld [vmem:[#allocation17 + $0x50] sm:$0xff] }
 0x62e   : > { %6861 = vmatprep.mubr.msk.f32.mxu1 %vm1610_vm0, %v2386_v14  ;;  %v2399_v1 = vmax.f32 %v2367_v58, 0.0  ;;  %v2400_v4 = vmax.f32 %v2368_v46, 0.0  ;;  %v2401_v10 = vmax.f32 %v2369_v2, 0.0  ;;  %v2373_v15 = vadd.f32 %v8783_v61, %v2255_v52  ;;  %6935 = vmatpush3.msra.mxu0 %v2751_v49  ;;  %v3202_v58 = vld [vmem:[#allocation17 + $0x40] sm:$0xff]  ;;  %v3200_v46 = vld [vmem:[#allocation17 + $0x30] sm:$0xff]  ;;  %v4286_v52 = vld [vmem:[#allocation19 + $0x38] sm:$0xff] }
 0x62f   : > { %v8797_v18 = vpop.f32.mrf.mxu0  ;;  %v2402_v11 = vmax.f32 %v2370_v6, 0.0  ;;  %v2403_v14 = vmax.f32 %v2371_v9, 0.0  ;;  %v2404_v16 = vmax.f32 %v2372_v12, 0.0  ;;  %v2374_v17 = vadd.f32 %v8783_v61, %v2256_v13  ;;  %v3198_v63 = vld [vmem:[#allocation17 + $0x20] sm:$0xff]  ;;  %v3196_v2 = vld [vmem:[#allocation17 + $0x10] sm:$0xff] }
 0x630   : > { %v2381_v62 = vadd.f32 %v8783_v61, %v2263_v44  ;;  %v3194_v6 = vld [vmem:[#allocation17] sm:$0xff] }
 0x631   : > { %v6921_v23 = vpop.f32.mrf.mxu0  ;;  %6862 = vmatmul.mubr.msk.f32.gmra.mxu1 %vm1610_vm0, %v2387_v19  ;;  %v2257_v19 = vld [vmem:[#allocation2 + $0xc8] sm:$0xff]  ;;  %v2406_v22 = vmax.f32 %v2374_v17, 0.0  ;;  %v8854_v8 = vld [vmem:[%s11109_s4] ss:$0 sm:$0xff]  ;;  %s10398_s4 = scalar_lea.vmem [#allocation25], %s6222_s7 }
 0x632   : > { %6864 = vmatprep.mubr.msk.f32.mxu1 %vm1610_vm0, %v2388_v21  ;;  %v2405_v21 = vmax.f32 %v2373_v15, 0.0  ;;  %v2375_v59 = vadd.f32 %v8783_v61, %v2257_v19  ;;  %v2376_v23 = vadd.f32 %v8783_v61, %v2258_v20  ;;  %v2413_v48 = vmax.f32 %v2381_v62, 0.0  ;;  %v4284_v19 = vld [vmem:[#allocation19 + $0x28] sm:$0xff] }
 0x634   : > { %v2407_v26 = vmax.f32 %v2375_v59, 0.0  ;;  %v2408_v31 = vmax.f32 %v2376_v23, 0.0 }
 0x635   : > { %6865 = vmatmul.mubr.msk.f32.gmra.mxu1 %vm1610_vm0, %v2389_v25  ;;  %v2260_v25 = vld [vmem:[#allocation2 + $0xe0] sm:$0xff] }
 0x636   : > { %6867 = vmatprep.mubr.msk.f32.mxu1 %vm1610_vm0, %v2390_v30  ;;  %v2377_v30 = vadd.f32 %v8783_v61, %v2259_v24  ;;  %v2378_v34 = vadd.f32 %v8783_v61, %v2260_v25  ;;  %v4282_v24 = vld [vmem:[#allocation19 + $0x18] sm:$0xff] }
 0x638   : > { %v2409_v38 = vmax.f32 %v2377_v30, 0.0  ;;  %v2410_v42 = vmax.f32 %v2378_v34, 0.0 }
 0x639   : > { %6868 = vmatmul.mubr.msk.f32.gmra.mxu1 %vm1610_vm0, %v2391_v37  ;;  %v2262_v37 = vld [vmem:[#allocation2 + $0xf0] sm:$0xff] }
 0x63a   : > { %6870 = vmatprep.mubr.msk.f32.mxu1 %vm1610_vm0, %v2392_v39  ;;  %v2379_v39 = vadd.f32 %v8783_v61, %v2261_v54  ;;  %v2380_v43 = vadd.f32 %v8783_v61, %v2262_v37  ;;  %v3209_v61 = vld [vmem:[#allocation17 + $0x78] sm:$0xff]  ;;  %v4280_v54 = vld [vmem:[#allocation19 + $0x8] sm:$0xff] }
 0x63b   : > { %3334 = vmatprep.subr.mxu1 %v3209_v61 }
 0x63c   : > { %3335 = vmatpush1.msra.mxu1 %v3208_v33 }
 0x63d   : > { %6871 = vmatmul.mubr.msk.f32.gmra.mxu1 %vm1610_vm0, %v2393_v45  ;;  %v2411_v45 = vmax.f32 %v2379_v39, 0.0 }
 0x63e   : > { %6873 = vmatprep.mubr.msk.f32.mxu1 %vm1610_vm0, %v2394_v47  ;;  %v2412_v47 = vmax.f32 %v2380_v43, 0.0 }
 0x641   : > { %6874 = vmatmul.mubr.msk.f32.gmra.mxu1 %vm1610_vm0, %v2395_v50  ;;  %v2750_v50 = vld [vmem:[#allocation14] sm:$0xff] }
 0x642   : > { %6876 = vmatprep.mubr.msk.f32.mxu1 %vm1610_vm0, %v2396_v51  ;;  %6936 = vmatprep.subr.mxu0 %v2750_v50  ;;  %v3207_v51 = vld [vmem:[#allocation17 + $0x68] sm:$0xff] }
 0x643   : > { %6937 = vmatpush3.msra.mxu0 %v2750_v50  ;;  %3336 = vmatprep.subr.mxu1 %v3207_v51 }
 0x644   : > { %6986 = vmatprep.subr.mxu0 %v8108_v40  ;;  %3337 = vmatpush1.msra.mxu1 %v3206_v53 }
 0x645   : > { %6877 = vmatmul.mubr.msk.f32.gmra.mxu1 %vm1610_vm0, %v2397_v41  ;;  %v3203_v41 = vld [vmem:[#allocation17 + $0x48] sm:$0xff]  ;;  %3338 = vmatprep.subr.mxu1 %v3205_v55 }
 0x646   : > { %6879 = vmatprep.mubr.msk.f32.mxu1 %vm1610_vm0, %v2398_v60  ;;  %3339 = vmatpush1.msra.mxu1 %v3204_v56  ;;  %v3201_v60 = vld [vmem:[#allocation17 + $0x38] sm:$0xff] }
 0x647   : > { %3340 = vmatprep.subr.mxu1 %v3203_v41 }
 0x648   : > { %3341 = vmatpush1.msra.mxu1 %v3202_v58 }
 0x649   : > { %6880 = vmatmul.mubr.msk.f32.gmra.mxu1 %vm1610_vm0, %v2399_v1  ;;  %3342 = vmatprep.subr.mxu1 %v3201_v60  ;;  %v3197_v1 = vld [vmem:[#allocation17 + $0x18] sm:$0xff] }
 0x64a   : > { %6882 = vmatprep.mubr.msk.f32.mxu1 %vm1610_vm0, %v2400_v4  ;;  %3343 = vmatpush1.msra.mxu1 %v3200_v46  ;;  %v3195_v4 = vld [vmem:[#allocation17 + $0x8] sm:$0xff] }
 0x64b   : > { %3344 = vmatprep.subr.mxu1 %v3199_v57 }
 0x64c   : > { %3345 = vmatpush1.msra.mxu1 %v3198_v63 }
 0x64d   : > { %6883 = vmatmul.mubr.msk.f32.gmra.mxu1 %vm1610_vm0, %v2401_v10  ;;  %3346 = vmatprep.subr.mxu1 %v3197_v1 }
 0x64e   : > { %6885 = vmatprep.mubr.msk.f32.mxu1 %vm1610_vm0, %v2402_v11  ;;  %3347 = vmatpush1.msra.mxu1 %v3196_v2 }
 0x64f   : > { %3348 = vmatprep.subr.mxu1 %v3195_v4 }
 0x650   : > { %3349 = vmatpush1.msra.mxu1 %v3194_v6 }
 0x651   : > { %6886 = vmatmul.mubr.msk.f32.gmra.mxu1 %vm1610_vm0, %v2403_v14  ;;  %v4285_v14 = vld [vmem:[#allocation19 + $0x30] sm:$0xff] }
 0x652   : > { %6888 = vmatprep.mubr.msk.f32.mxu1 %vm1610_vm0, %v2404_v16 }
 0x655   : > { %6889 = vmatmul.mubr.msk.f32.gmra.mxu1 %vm1610_vm0, %v2405_v21  ;;  %v4283_v21 = vld [vmem:[#allocation19 + $0x20] sm:$0xff] }
 0x656   : > { %6891 = vmatprep.mubr.msk.f32.mxu1 %vm1610_vm0, %v2406_v22 }
 0x659   : > { %6892 = vmatmul.mubr.msk.f32.gmra.mxu1 %vm1610_vm0, %v2407_v26  ;;  %v4281_v26 = vld [vmem:[#allocation19 + $0x10] sm:$0xff] }
 0x65a   : > { %6894 = vmatprep.mubr.msk.f32.mxu1 %vm1610_vm0, %v2408_v31 }
 0x65d   : > { %6895 = vmatmul.mubr.msk.f32.gmra.mxu1 %vm1610_vm0, %v2409_v38  ;;  %v4279_v38 = vld [vmem:[#allocation19] sm:$0xff] }
 0x65e   : > { %6897 = vmatprep.mubr.msk.f32.mxu1 %vm1610_vm0, %v2410_v42 }
 0x661   : > { %6898 = vmatmul.mubr.msk.f32.gmra.mxu1 %vm1610_vm0, %v2411_v45 }
 0x662   : > { %6900 = vmatprep.mubr.msk.f32.mxu1 %vm1610_vm0, %v2412_v47 }
 0x665   : > { %6901 = vmatmul.mubr.msk.f32.gmra.mxu1 %vm1610_vm0, %v2413_v48 }
 0x666   : > { %3382 = vmatprep.mubr.f32.mxu1 %v8108_v40 }
 0x6e9   : > { %v6857_v7 = vpop.f32.mrf.mxu1 }
 0x6ea   : > { %v2597_v11 = vadd.f32 %v6857_v7, %v8854_v8 }
 0x6eb   : > { %v2591_v10 = vpop.f32.mrf.mxu1 }
 0x6ec   : > { %v2592_v9 = vadd.f32 %v8854_v8, %v2591_v10 }
 0x6ed   : > { %v6860_v12 = vpop.f32.mrf.mxu1 }
 0x6ee   : > { %6938 = vmatprep.mubr.msk.f32.mxu0 %vm1610_vm0, %v2592_v9  ;;  %v2607_v16 = vadd.f32 %v6860_v12, %v8854_v8 }
 0x6ef   : > { %v2601_v13 = vpop.f32.mrf.mxu1  ;;  %6939 = vmatmul.mubr.msk.f32.vlgmr.msra.gmra.mxu0 %vm1610_vm0, %v2597_v11 }
 0x6f0   : > { %v2602_v15 = vadd.f32 %v8854_v8, %v2601_v13  ;;  %6987 = vmatpush3.msra.mxu0 %v4286_v52 }
 0x6f1   : > { %v6863_v17 = vpop.f32.mrf.mxu1  ;;  %6988 = vmatprep.subr.mxu0 %v8108_v40 }
 0x6f2   : > { %6941 = vmatprep.mubr.msk.f32.mxu0 %vm1610_vm0, %v2602_v15  ;;  %6989 = vmatpush3.msra.mxu0 %v4285_v14  ;;  %v2617_v22 = vadd.f32 %v6863_v17, %v8854_v8 }
 0x6f3   : > { %v2611_v20 = vpop.f32.mrf.mxu1  ;;  %6942 = vmatmul.mubr.msk.f32.gmra.mxu0 %vm1610_vm0, %v2607_v16  ;;  %6990 = vmatprep.subr.mxu0 %v8108_v40 }
 0x6f4   : > { %v2612_v59 = vadd.f32 %v8854_v8, %v2611_v20  ;;  %6991 = vmatpush3.msra.mxu0 %v4284_v19 }
 0x6f5   : > { %v6866_v23 = vpop.f32.mrf.mxu1  ;;  %6992 = vmatprep.subr.mxu0 %v8108_v40 }
 0x6f6   : > { %6944 = vmatprep.mubr.msk.f32.mxu0 %vm1610_vm0, %v2612_v59  ;;  %6993 = vmatpush3.msra.mxu0 %v4283_v21  ;;  %v2627_v31 = vadd.f32 %v6866_v23, %v8854_v8 }
 0x6f7   : > { %v2621_v25 = vpop.f32.mrf.mxu1  ;;  %6945 = vmatmul.mubr.msk.f32.gmra.mxu0 %vm1610_vm0, %v2617_v22  ;;  %6994 = vmatprep.subr.mxu0 %v8108_v40 }
 0x6f8   : > { %v2622_v30 = vadd.f32 %v8854_v8, %v2621_v25  ;;  %6995 = vmatpush3.msra.mxu0 %v4282_v24 }
 0x6f9   : > { %v6869_v34 = vpop.f32.mrf.mxu1  ;;  %6996 = vmatprep.subr.mxu0 %v8108_v40 }
 0x6fa   : > { %6947 = vmatprep.mubr.msk.f32.mxu0 %vm1610_vm0, %v2622_v30  ;;  %6997 = vmatpush3.msra.mxu0 %v4281_v26  ;;  %v2637_v42 = vadd.f32 %v6869_v34, %v8854_v8  ;;  %v4433_v26 = vld [vmem:[#allocation20 + $0x38] sm:$0xff]  ;;  %v4432_v30 = vld [vmem:[#allocation20 + $0x30] sm:$0xff] }
 0x6fb   : > { %v2631_v37 = vpop.f32.mrf.mxu1  ;;  %6948 = vmatmul.mubr.msk.f32.gmra.mxu0 %vm1610_vm0, %v2627_v31  ;;  %6998 = vmatprep.subr.mxu0 %v8108_v40  ;;  %v4431_v31 = vld [vmem:[#allocation20 + $0x28] sm:$0xff]  ;;  %v4429_v34 = vld [vmem:[#allocation20 + $0x18] sm:$0xff] }
 0x6fc   : > { %v2632_v39 = vadd.f32 %v8854_v8, %v2631_v37  ;;  %6999 = vmatpush3.msra.mxu0 %v4280_v54  ;;  %v4428_v54 = vld [vmem:[#allocation20 + $0x10] sm:$0xff]  ;;  %v4427_v37 = vld [vmem:[#allocation20 + $0x8] sm:$0xff] }
 0x6fd   : > { %v6872_v43 = vpop.f32.mrf.mxu1  ;;  %7000 = vmatprep.subr.mxu0 %v8108_v40 }
 0x6fe   : > { %6950 = vmatprep.mubr.msk.f32.mxu0 %vm1610_vm0, %v2632_v39  ;;  %7001 = vmatpush3.msra.mxu0 %v4279_v38  ;;  %v2647_v62 = vadd.f32 %v6872_v43, %v8854_v8  ;;  %v4426_v38 = vld [vmem:[#allocation20] sm:$0xff] }
 0x6ff   : > { %v2641_v44 = vpop.f32.mrf.mxu1  ;;  %6951 = vmatmul.mubr.msk.f32.gmra.mxu0 %vm1610_vm0, %v2637_v42  ;;  %7005 = vmatprep.subr.mxu0 %v4433_v26  ;;  %v2766_v39 = vld [vmem:[%s11110_s2] sm:$0x1]  ;;  %s6439_s2 = sshll.u32 %s8310_s15, 13 }
 0x700   : > { %v2642_v45 = vadd.f32 %v8854_v8, %v2641_v44  ;;  %v2834_v42 = vadd.f32 %v8797_v18, %v2766_v39 }
 0x701   : > { %v6875_v47 = vpop.f32.mrf.mxu1 }
 0x702   : > { %6953 = vmatprep.mubr.msk.f32.mxu0 %vm1610_vm0, %v2642_v45  ;;  %v2657_v49 = vadd.f32 %v6875_v47, %v8854_v8  ;;  %v8935_v44 = vrot.slane %v2834_v42, %v8568_v28 }
 0x703   : > { %v2651_v48 = vpop.f32.mrf.mxu1  ;;  %6954 = vmatmul.mubr.msk.f32.gmra.mxu0 %vm1610_vm0, %v2647_v62 }
 0x704   : > { %v2652_v36 = vadd.f32 %v8854_v8, %v2651_v48 }
 0x705   : > { %v6878_v50 = vpop.f32.mrf.mxu1 }
 0x706   : > { %6956 = vmatprep.mubr.msk.f32.mxu0 %vm1610_vm0, %v2652_v36  ;;  %v2667_v51 = vadd.f32 %v6878_v50, %v8854_v8 }
 0x707   : > { %v2661_v61 = vpop.f32.mrf.mxu1  ;;  %6957 = vmatmul.mubr.msk.f32.gmra.mxu0 %vm1610_vm0, %v2657_v49 }
 0x708   : > { %v2662_v33 = vadd.f32 %v8854_v8, %v2661_v61 }
 0x709   : > { %v6881_v53 = vpop.f32.mrf.mxu1 }
 0x70a   : > { %6959 = vmatprep.mubr.msk.f32.mxu0 %vm1610_vm0, %v2662_v33  ;;  %v2677_v41 = vadd.f32 %v6881_v53, %v8854_v8 }
 0x70b   : > { %v2671_v55 = vpop.f32.mrf.mxu1  ;;  %6960 = vmatmul.mubr.msk.f32.gmra.mxu0 %vm1610_vm0, %v2667_v51 }
 0x70c   : > { %v2672_v56 = vadd.f32 %v8854_v8, %v2671_v55 }
 0x70d   : > { %v6884_v58 = vpop.f32.mrf.mxu1 }
 0x70e   : > { %6962 = vmatprep.mubr.msk.f32.mxu0 %vm1610_vm0, %v2672_v56  ;;  %v2687_v57 = vadd.f32 %v6884_v58, %v8854_v8 }
 0x70f   : > { %v2681_v60 = vpop.f32.mrf.mxu1  ;;  %6963 = vmatmul.mubr.msk.f32.gmra.mxu0 %vm1610_vm0, %v2677_v41 }
 0x710   : > { %v2682_v46 = vadd.f32 %v8854_v8, %v2681_v60 }
 0x711   : > { %v6887_v63 = vpop.f32.mrf.mxu1 }
 0x712   : > { %6965 = vmatprep.mubr.msk.f32.mxu0 %vm1610_vm0, %v2682_v46  ;;  %v2697_v4 = vadd.f32 %v6887_v63, %v8854_v8 }
 0x713   : > { %v2691_v1 = vpop.f32.mrf.mxu1  ;;  %6966 = vmatmul.mubr.msk.f32.gmra.mxu0 %vm1610_vm0, %v2687_v57 }
 0x714   : > { %v2692_v2 = vadd.f32 %v8854_v8, %v2691_v1 }
 0x715   : > { %v6890_v6 = vpop.f32.mrf.mxu1 }
 0x716   : > { %6968 = vmatprep.mubr.msk.f32.mxu0 %vm1610_vm0, %v2692_v2  ;;  %v2707_v9 = vadd.f32 %v6890_v6, %v8854_v8 }
 0x717   : > { %v2701_v7 = vpop.f32.mrf.mxu1  ;;  %6969 = vmatmul.mubr.msk.f32.gmra.mxu0 %vm1610_vm0, %v2697_v4 }
 0x718   : > { %v2702_v10 = vadd.f32 %v8854_v8, %v2701_v7 }
 0x719   : > { %v6893_v11 = vpop.f32.mrf.mxu1 }
 0x71a   : > { %6971 = vmatprep.mubr.msk.f32.mxu0 %vm1610_vm0, %v2702_v10  ;;  %v2717_v13 = vadd.f32 %v6893_v11, %v8854_v8 }
 0x71b   : > { %v2711_v12 = vpop.f32.mrf.mxu1  ;;  %6972 = vmatmul.mubr.msk.f32.gmra.mxu0 %vm1610_vm0, %v2707_v9 }
 0x71c   : > { %v2712_v52 = vadd.f32 %v8854_v8, %v2711_v12 }
 0x71d   : > { %v6896_v14 = vpop.f32.mrf.mxu1 }
 0x71e   : > { %6974 = vmatprep.mubr.msk.f32.mxu0 %vm1610_vm0, %v2712_v52  ;;  %v2727_v17 = vadd.f32 %v6896_v14, %v8854_v8 }
 0x71f   : > { %v2721_v15 = vpop.f32.mrf.mxu1  ;;  %6975 = vmatmul.mubr.msk.f32.gmra.mxu0 %vm1610_vm0, %v2717_v13 }
 0x720   : > { %v2722_v16 = vadd.f32 %v8854_v8, %v2721_v15 }
 0x721   : > { %v6899_v19 = vpop.f32.mrf.mxu1 }
 0x722   : > { %6977 = vmatprep.mubr.msk.f32.mxu0 %vm1610_vm0, %v2722_v16  ;;  %v2737_v59 = vadd.f32 %v6899_v19, %v8854_v8 }
 0x723   : > { %v2731_v20 = vpop.f32.mrf.mxu1  ;;  %6978 = vmatmul.mubr.msk.f32.gmra.mxu0 %vm1610_vm0, %v2727_v17 }
 0x724   : > { %v2732_v21 = vadd.f32 %v8854_v8, %v2731_v20 }
 0x725   : > { %v6902_v22 = vpop.f32.mrf.mxu1 }
 0x726   : > { %6980 = vmatprep.mubr.msk.f32.mxu0 %vm1610_vm0, %v2732_v21  ;;  %v2747_v25 = vadd.f32 %v6902_v22, %v8854_v8 }
 0x727   : > { %v2741_v23 = vpop.f32.mrf.mxu1  ;;  %6981 = vmatmul.mubr.msk.f32.gmra.mxu0 %vm1610_vm0, %v2737_v59 }
 0x728   : > { %v2742_v24 = vadd.f32 %v8854_v8, %v2741_v23  ;;  %v4430_v8 = vld [vmem:[#allocation20 + $0x20] sm:$0xff] }
 0x72a   : > { %6983 = vmatprep.mubr.msk.f32.mxu0 %vm1610_vm0, %v2742_v24 }
 0x72b   : > { %6984 = vmatmul.mubr.msk.f32.gmra.mxu0 %vm1610_vm0, %v2747_v25 }
 0x72c   : > { %7002 = vmatprep.mubr.msk.f32.mxu0 %vm8109_vm1, %v8108_v40 }
 0x72f   : > { %7003 = vmatmul.mubr.msk.f32.vlgmr.msra.gmra.mxu0 %vm1610_vm0, %v8762_v29 }
 0x730   : > { %7006 = vmatpush3.msra.mxu0 %v4433_v26 }
 0x731   : > { %7007 = vmatprep.subr.mxu0 %v4432_v30 }
 0x732   : > { %7008 = vmatpush3.msra.mxu0 %v4432_v30 }
 0x733   : > { %7009 = vmatprep.subr.mxu0 %v4431_v31 }
 0x734   : > { %7010 = vmatpush3.msra.mxu0 %v4431_v31 }
 0x735   : > { %7011 = vmatprep.subr.mxu0 %v4430_v8 }
 0x736   : > { %7012 = vmatpush3.msra.mxu0 %v4430_v8 }
 0x737   : > { %7013 = vmatprep.subr.mxu0 %v4429_v34 }
 0x738   : > { %7014 = vmatpush3.msra.mxu0 %v4429_v34 }
 0x739   : > { %7015 = vmatprep.subr.mxu0 %v4428_v54 }
 0x73a   : > { %7016 = vmatpush3.msra.mxu0 %v4428_v54 }
 0x73b   : > { %7017 = vmatprep.subr.mxu0 %v4427_v37 }
 0x73c   : > { %7018 = vmatpush3.msra.mxu0 %v4427_v37 }
 0x73d   : > { %7019 = vmatprep.subr.mxu0 %v4426_v38 }
 0x73e   : > { %7020 = vmatpush3.msra.mxu0 %v4426_v38 }
 0x73f   : > { %7069 = vmatprep.subr.mxu0 %v8108_v40 }
 0x7af   : > { %v6940_v43 = vpop.f32.mrf.mxu0 }
 0x7b0   : > { %v3009_v48 = vadd.f32 %v6940_v43, %v8935_v44 }
 0x7b1   : > { %v3003_v45 = vpop.f32.mrf.mxu0 }
 0x7b2   : > { %v3004_v62 = vadd.f32 %v3003_v45, %v8935_v44  ;;  %v3163_v61 = vmax.f32 %v3009_v48, 0.0 }
 0x7b3   : > { %v6943_v47 = vpop.f32.mrf.mxu0 }
 0x7b4   : > { %v3162_v36 = vmax.f32 %v3004_v62, 0.0  ;;  %v3019_v53 = vadd.f32 %v6943_v47, %v8935_v44 }
 0x7b5   : > { %v3013_v49 = vpop.f32.mrf.mxu0 }
 0x7b6   : > { %6331 = vmatmul.mubr.msk.f32.vlgmr.msra.gmra.mxu1 %vm1610_vm0, %v3162_v36  ;;  %v3014_v18 = vadd.f32 %v3013_v49, %v8935_v44  ;;  %v3165_v58 = vmax.f32 %v3019_v53, 0.0 }
 0x7b7   : > { %v6946_v50 = vpop.f32.mrf.mxu0  ;;  %3388 = vmatprep.mubr.f32.mxu1 %v8108_v40 }
 0x7b8   : > { %v3164_v55 = vmax.f32 %v3014_v18, 0.0  ;;  %v3029_v63 = vadd.f32 %v6946_v50, %v8935_v44 }
 0x7b9   : > { %v3023_v33 = vpop.f32.mrf.mxu0 }
 0x7ba   : > { %6332 = vmatmul.mubr.msk.f32.gmra.mxu1 %vm1610_vm0, %v3163_v61  ;;  %v3024_v60 = vadd.f32 %v3023_v33, %v8935_v44  ;;  %v3167_v6 = vmax.f32 %v3029_v63, 0.0  ;;  %v4287_v33 = vld [vmem:[%s11111_s23] sm:$0x1]  ;;  %s10820_s23 = scalar_lea.hbm %s8282_s21, %s6439_s2 }
 0x7bb   : > { %v6949_v51 = vpop.f32.mrf.mxu0  ;;  %3394 = vmatprep.mubr.f32.mxu1 %v8108_v40 }
 0x7bc   : > { %v3166_v1 = vmax.f32 %v3024_v60, 0.0  ;;  %v3039_v11 = vadd.f32 %v6949_v51, %v8935_v44  ;;  %v4248_v60 = vld [vmem:[%s11112_s1 + $0x8] sm:$0xff] }
 0x7bd   : > { %v3033_v56 = vpop.f32.mrf.mxu0 }
 0x7be   : > { %6333 = vmatmul.mubr.msk.f32.gmra.mxu1 %vm1610_vm0, %v3164_v55  ;;  %v3034_v7 = vadd.f32 %v3033_v56, %v8935_v44  ;;  %v3169_v14 = vmax.f32 %v3039_v11, 0.0 }
 0x7bf   : > { %v6952_v41 = vpop.f32.mrf.mxu0  ;;  %3400 = vmatprep.mubr.f32.mxu1 %v8108_v40 }
 0x7c0   : > { %v3168_v12 = vmax.f32 %v3034_v7, 0.0  ;;  %v3049_v19 = vadd.f32 %v6952_v41, %v8935_v44  ;;  %v4250_v7 = vld [vmem:[%s11112_s1 + $0x18] sm:$0xff] }
 0x7c1   : > { %v3043_v46 = vpop.f32.mrf.mxu0 }
 0x7c2   : > { %6334 = vmatmul.mubr.msk.f32.gmra.mxu1 %vm1610_vm0, %v3165_v58  ;;  %v3044_v15 = vadd.f32 %v3043_v46, %v8935_v44  ;;  %v3171_v22 = vmax.f32 %v3049_v19, 0.0  ;;  %v4247_v58 = vld [vmem:[%s11112_s1] sm:$0xff]  ;;  %v4249_v46 = vld [vmem:[%s11112_s1 + $0x10] sm:$0xff]  ;;  %v5358_v19 = vld [vmem:[#allocation22 + $0x38] sm:$0xff] }
 0x7c3   : > { %v6955_v57 = vpop.f32.mrf.mxu0  ;;  %3406 = vmatprep.mubr.f32.mxu1 %v8108_v40 }
 0x7c4   : > { %v3170_v20 = vmax.f32 %v3044_v15, 0.0  ;;  %v3059_v26 = vadd.f32 %v6955_v57, %v8935_v44 }
 0x7c5   : > { %v3053_v2 = vpop.f32.mrf.mxu0 }
 0x7c6   : > { %6335 = vmatmul.mubr.msk.f32.gmra.mxu1 %vm1610_vm0, %v3166_v1  ;;  %v3054_v23 = vadd.f32 %v3053_v2, %v8935_v44  ;;  %v3173_v34 = vmax.f32 %v3059_v26, 0.0 }
 0x7c7   : > { %v6958_v4 = vpop.f32.mrf.mxu0  ;;  %3412 = vmatprep.mubr.f32.mxu1 %v8108_v40 }
 0x7c8   : > { %v3172_v30 = vmax.f32 %v3054_v23, 0.0  ;;  %v3069_v39 = vadd.f32 %v6958_v4, %v8935_v44 }
 0x7c9   : > { %v3063_v10 = vpop.f32.mrf.mxu0 }
 0x7ca   : > { %6336 = vmatmul.mubr.msk.f32.gmra.mxu1 %vm1610_vm0, %v3167_v6  ;;  %v3064_v54 = vadd.f32 %v3063_v10, %v8935_v44  ;;  %v3175_v62 = vmax.f32 %v3069_v39, 0.0  ;;  %v4251_v10 = vld [vmem:[%s11112_s1 + $0x20] sm:$0xff]  ;;  %v5357_v39 = vld [vmem:[#allocation22 + $0x30] sm:$0xff] }
 0x7cb   : > { %v6961_v9 = vpop.f32.mrf.mxu0  ;;  %3418 = vmatprep.mubr.f32.mxu1 %v8108_v40 }
 0x7cc   : > { %v3174_v42 = vmax.f32 %v3064_v54, 0.0  ;;  %v3079_v49 = vadd.f32 %v6961_v9, %v8935_v44  ;;  %v4254_v54 = vld [vmem:[%s11112_s1 + $0x38] sm:$0xff] }
 0x7cd   : > { %v3073_v52 = vpop.f32.mrf.mxu0 }
 0x7ce   : > { %6337 = vmatmul.mubr.msk.f32.gmra.mxu1 %vm1610_vm0, %v3168_v12  ;;  %v3074_v47 = vadd.f32 %v3073_v52, %v8935_v44  ;;  %v3177_v53 = vmax.f32 %v3079_v49, 0.0 }
 0x7cf   : > { %v6964_v13 = vpop.f32.mrf.mxu0  ;;  %3424 = vmatprep.mubr.f32.mxu1 %v8108_v40 }
 0x7d0   : > { %v3176_v50 = vmax.f32 %v3074_v47, 0.0  ;;  %v3089_v63 = vadd.f32 %v6964_v13, %v8935_v44 }
 0x7d1   : > { %v3083_v16 = vpop.f32.mrf.mxu0 }
 0x7d2   : > { %6338 = vmatmul.mubr.msk.f32.gmra.mxu1 %vm1610_vm0, %v3169_v14  ;;  %v3084_v55 = vadd.f32 %v3083_v16, %v8935_v44  ;;  %v3179_v52 = vmax.f32 %v3089_v63, 0.0  ;;  %v4252_v16 = vld [vmem:[%s11112_s1 + $0x28] sm:$0xff]  ;;  %v5355_v63 = vld [vmem:[#allocation22 + $0x20] sm:$0xff] }
 0x7d3   : > { %v8961_v17 = vpop.f32.mrf.mxu0  ;;  %3430 = vmatprep.mubr.f32.mxu1 %v8108_v40 }
 0x7d4   : > { %v3178_v1 = vmax.f32 %v3084_v55, 0.0  ;;  %v3099_v23 = vadd.f32 %v8961_v17, %v8935_v44 }
 0x7d5   : > { %v8965_v21 = vpop.f32.mrf.mxu0 }
 0x7d6   : > { %6339 = vmatmul.mubr.msk.f32.gmra.mxu1 %vm1610_vm0, %v3170_v20  ;;  %v3094_v13 = vadd.f32 %v8965_v21, %v8935_v44  ;;  %v4253_v20 = vld [vmem:[%s11112_s1 + $0x30] sm:$0xff]  ;;  %v3181_v47 = vmax.f32 %v3099_v23, 0.0 }
 0x7d7   : > { %v8968_v59 = vpop.f32.mrf.mxu0  ;;  %3436 = vmatprep.mubr.f32.mxu1 %v8108_v40 }
 0x7d8   : > { %v3180_v26 = vmax.f32 %v3094_v13, 0.0 }
 0x7d9   : > { %v8972_v24 = vpop.f32.mrf.mxu0 }
 0x7da   : > { %6340 = vmatmul.mubr.msk.f32.gmra.mxu1 %vm1610_vm0, %v3171_v22 }
 0x7db   : > { %v8975_v25 = vpop.f32.mrf.mxu0  ;;  %3442 = vmatprep.mubr.f32.mxu1 %v8108_v40 }
 0x7dc   : > { %v3119_v13 = vadd.f32 %v8975_v25, %v8935_v44 }
 0x7dd   : > { %v8979_v31 = vpop.f32.mrf.mxu0 }
 0x7de   : > { %6341 = vmatmul.mubr.msk.f32.gmra.mxu1 %vm1610_vm0, %v3172_v30  ;;  %v3185_v23 = vmax.f32 %v3119_v13, 0.0 }
 0x7df   : > { %v8982_v8 = vpop.f32.mrf.mxu0  ;;  %3448 = vmatprep.mubr.f32.mxu1 %v8108_v40 }
 0x7e1   : > { %v8986_v37 = vpop.f32.mrf.mxu0 }
 0x7e2   : > { %6342 = vmatmul.mubr.msk.f32.gmra.mxu1 %vm1610_vm0, %v3173_v34 }
 0x7e3   : > { %v8989_v38 = vpop.f32.mrf.mxu0  ;;  %3454 = vmatprep.mubr.f32.mxu1 %v8108_v40 }
 0x7e5   : > { %v8993_v43 = vpop.f32.mrf.mxu0 }
 0x7e6   : > { %6343 = vmatmul.mubr.msk.f32.gmra.mxu1 %vm1610_vm0, %v3174_v42  ;;  %v4255_v42 = vld [vmem:[%s11112_s1 + $0x40] sm:$0xff] }
 0x7e7   : > { %v8996_v45 = vpop.f32.mrf.mxu0  ;;  %3460 = vmatprep.mubr.f32.mxu1 %v8108_v40 }
 0x7e9   : > { %v9000_v48 = vpop.f32.mrf.mxu0 }
 0x7ea   : > { %6344 = vmatmul.mubr.msk.f32.gmra.mxu1 %vm1610_vm0, %v3175_v62 }
 0x7eb   : > { %v6985_v36 = vpop.f32.mrf.mxu0  ;;  %3466 = vmatprep.mubr.f32.mxu1 %v8108_v40 }
 0x7ec   : > { %v9006_v61 = vadd.f32 %v6985_v36, %v8935_v44  ;;  %v3104_v36 = vadd.f32 %v8972_v24, %v8935_v44 }
 0x7ed   : > { %v9008_v18 = vpop.f32.mrf.mxu0 }
 0x7ee   : > { %6345 = vmatmul.mubr.msk.f32.gmra.mxu1 %vm1610_vm0, %v3176_v50 }
 0x7ef   : > { %v4354_v51 = vpop.f32.mrf.mxu0  ;;  %3472 = vmatprep.mubr.f32.mxu1 %v8108_v40 }
 0x7f0   : > { %v4355_v56 = vadd.f32 %v4354_v51, %v4287_v33  ;;  %v4256_v33 = vld [vmem:[%s11112_s1 + $0x48] sm:$0xff] }
 0x7f1   : > { %v7004_v41 = vpop.f32.mrf.mxu0  ;;  %v5356_v51 = vld [vmem:[#allocation22 + $0x28] sm:$0xff] }
 0x7f2   : > { %v9018_v57 = vrot.slane %v4355_v56, %v8568_v28  ;;  %6346 = vmatmul.mubr.msk.f32.gmra.mxu1 %vm1610_vm0, %v3177_v53  ;;  %v4257_v53 = vld [vmem:[%s11112_s1 + $0x50] sm:$0xff]  ;;  %v3109_v56 = vadd.f32 %v8968_v59, %v8935_v44  ;;  %v3182_v41 = vmax.f32 %v3104_v36, 0.0 }
 0x7f3   : > { %3478 = vmatprep.mubr.f32.mxu1 %v8108_v40 }
 0x7f4   : > { %v4362_v2 = vadd.f32 %v9018_v57, %v4247_v58  ;;  %v4363_v4 = vadd.f32 %v9018_v57, %v4248_v60  ;;  %v4364_v6 = vadd.f32 %v9018_v57, %v4249_v46  ;;  %v4365_v12 = vadd.f32 %v9018_v57, %v4250_v7  ;;  %v4258_v46 = vld [vmem:[%s11112_s1 + $0x58] sm:$0xff] }
 0x7f5   : > { %v4366_v15 = vadd.f32 %v9018_v57, %v4251_v10  ;;  %v4367_v21 = vadd.f32 %v9018_v57, %v4252_v16  ;;  %v4368_v34 = vadd.f32 %v9018_v57, %v4253_v20  ;;  %v4369_v62 = vadd.f32 %v9018_v57, %v4254_v54  ;;  %v5353_v20 = vld [vmem:[#allocation22 + $0x10] sm:$0xff]  ;;  %v4264_v54 = vld [vmem:[%s11112_s1 + $0x88] sm:$0xff] }
 0x7f6   : > { %6347 = vmatmul.mubr.msk.f32.gmra.mxu1 %vm1610_vm0, %v3178_v1  ;;  %v4394_v9 = vmax.f32 %v4362_v2, 0.0  ;;  %v4395_v11 = vmax.f32 %v4363_v4, 0.0  ;;  %v4396_v14 = vmax.f32 %v4364_v6, 0.0  ;;  %v4397_v22 = vmax.f32 %v4365_v12, 0.0  ;;  %v4259_v1 = vld [vmem:[%s11112_s1 + $0x60] sm:$0xff]  ;;  %v4261_v12 = vld [vmem:[%s11112_s1 + $0x70] sm:$0xff] }
 0x7f7   : > { %3484 = vmatprep.mubr.f32.mxu1 %v8108_v40  ;;  %v4398_v30 = vmax.f32 %v4366_v15, 0.0  ;;  %v4399_v17 = vmax.f32 %v4367_v21, 0.0  ;;  %v4400_v49 = vmax.f32 %v4368_v34, 0.0  ;;  %v4370_v50 = vadd.f32 %v9018_v57, %v4255_v42  ;;  %v4265_v42 = vld [vmem:[%s11112_s1 + $0x90] sm:$0xff] }
 0x7f8   : > { %7021 = vmatprep.mubr.msk.f32.mxu0 %vm1610_vm0, %v4394_v9  ;;  %v4401_v55 = vmax.f32 %v4369_v62, 0.0  ;;  %v4371_v24 = vadd.f32 %v9018_v57, %v4256_v33  ;;  %v4372_v60 = vadd.f32 %v9018_v57, %v4257_v53  ;;  %v4373_v2 = vadd.f32 %v9018_v57, %v4258_v46  ;;  %v4260_v9 = vld [vmem:[%s11112_s1 + $0x68] sm:$0xff]  ;;  %v5351_v33 = vld [vmem:[#allocation22] sm:$0xff] }
 0x7f9   : > { %7022 = vmatmul.mubr.msk.f32.vlgmr.msra.gmra.mxu0 %vm1610_vm0, %v4395_v11  ;;  %v4402_v58 = vmax.f32 %v4370_v50, 0.0  ;;  %v3183_v4 = vmax.f32 %v3109_v56, 0.0  ;;  %v3114_v6 = vadd.f32 %v8979_v31, %v8935_v44  ;;  %v4374_v10 = vadd.f32 %v9018_v57, %v4259_v1  ;;  %v5354_v11 = vld [vmem:[#allocation22 + $0x18] sm:$0xff] }
 0x7fa   : > { %6348 = vmatmul.mubr.msk.f32.gmra.mxu1 %vm1610_vm0, %v3179_v52  ;;  %7024 = vmatprep.mubr.msk.f32.mxu0 %vm1610_vm0, %v4396_v14  ;;  %v4403_v59 = vmax.f32 %v4371_v24, 0.0  ;;  %v4404_v7 = vmax.f32 %v4372_v60, 0.0  ;;  %v4405_v52 = vmax.f32 %v4373_v2, 0.0  ;;  %v4375_v31 = vadd.f32 %v9018_v57, %v4260_v9  ;;  %v4266_v50 = vld [vmem:[%s11112_s1 + $0x98] sm:$0xff]  ;;  %v4269_v60 = vld [vmem:[%s11112_s1 + $0xb0] sm:$0xff] }
 0x7fb   : > { %3490 = vmatprep.mubr.f32.mxu1 %v8108_v40  ;;  %7070 = vmatpush3.msra.mxu0 %v5358_v19  ;;  %v3184_v14 = vmax.f32 %v3114_v6, 0.0  ;;  %v4406_v15 = vmax.f32 %v4374_v10, 0.0  ;;  %v4376_v16 = vadd.f32 %v9018_v57, %v4261_v12  ;;  %v4262_v19 = vld [vmem:[%s11112_s1 + $0x78] sm:$0xff]  ;;  %v3129_v62 = vadd.f32 %v8982_v8, %v8935_v44  ;;  %v4271_v6 = vld [vmem:[%s11112_s1 + $0xc0] sm:$0xff] }
 0x7fc   : > { %7071 = vmatprep.subr.mxu0 %v8108_v40  ;;  %v4407_v25 = vmax.f32 %v4375_v31, 0.0  ;;  %v4377_v21 = vadd.f32 %v9018_v57, %v4262_v19  ;;  %v4381_v53 = vadd.f32 %v9018_v57, %v4266_v50  ;;  %v3134_v24 = vadd.f32 %v8993_v43, %v8935_v44  ;;  %v4273_v31 = vld [vmem:[%s11112_s1 + $0xd0] sm:$0xff] }
 0x7fd   : > { %7025 = vmatmul.mubr.msk.f32.gmra.mxu0 %vm1610_vm0, %v4397_v22  ;;  %v4263_v22 = vld [vmem:[%s11112_s1 + $0x80] sm:$0xff]  ;;  %v3139_v43 = vadd.f32 %v8989_v38, %v8935_v44  ;;  %v4384_v2 = vadd.f32 %v9018_v57, %v4269_v60  ;;  %v3144_v9 = vadd.f32 %v9000_v48, %v8935_v44  ;;  %v4386_v12 = vadd.f32 %v9018_v57, %v4271_v6 }
 0x7fe   : > { %6349 = vmatmul.mubr.msk.f32.gmra.mxu1 %vm1610_vm0, %v3180_v26  ;;  %7027 = vmatprep.mubr.msk.f32.mxu0 %vm1610_vm0, %v4398_v30  ;;  %v3124_v26 = vadd.f32 %v8986_v37, %v8935_v44  ;;  %v4408_v30 = vmax.f32 %v4376_v16, 0.0  ;;  %v4378_v34 = vadd.f32 %v9018_v57, %v4263_v22  ;;  %v4379_v37 = vadd.f32 %v9018_v57, %v4264_v54  ;;  %v4275_v22 = vld [vmem:[%s11112_s1 + $0xe0] sm:$0xff]  ;;  %v4277_v54 = vld [vmem:[%s11112_s1 + $0xf0] sm:$0xff] }
 0x7ff   : > { %3496 = vmatprep.mubr.f32.mxu1 %v8108_v40  ;;  %7072 = vmatpush3.msra.mxu0 %v5357_v39  ;;  %v5352_v39 = vld [vmem:[#allocation22 + $0x8] sm:$0xff]  ;;  %v4413_v46 = vmax.f32 %v4381_v53, 0.0  ;;  %v3188_v1 = vmax.f32 %v3134_v24, 0.0  ;;  %v3189_v38 = vmax.f32 %v3139_v43, 0.0  ;;  %v3149_v48 = vadd.f32 %v8996_v45, %v8935_v44 }
 0x800   : > { %7073 = vmatprep.subr.mxu0 %v8108_v40  ;;  %v4410_v36 = vmax.f32 %v4378_v34, 0.0  ;;  %v4411_v8 = vmax.f32 %v4379_v37, 0.0  ;;  %v4418_v16 = vmax.f32 %v4386_v12, 0.0  ;;  %v4388_v19 = vadd.f32 %v9018_v57, %v4273_v31  ;;  %v4276_v34 = vld [vmem:[%s11112_s1 + $0xe8] sm:$0xff] }
 0x801   : > { %7028 = vmatmul.mubr.msk.f32.gmra.mxu0 %vm1610_vm0, %v4399_v17  ;;  %v4409_v17 = vmax.f32 %v4377_v21, 0.0  ;;  %v3191_v45 = vmax.f32 %v3149_v48, 0.0 }
 0x802   : > { %6350 = vmatmul.mubr.msk.f32.gmra.mxu1 %vm1610_vm0, %v3181_v47  ;;  %7030 = vmatprep.mubr.msk.f32.mxu0 %vm1610_vm0, %v4400_v49  ;;  %v3186_v47 = vmax.f32 %v3124_v26, 0.0  ;;  %v4380_v49 = vadd.f32 %v9018_v57, %v4265_v42  ;;  %v4420_v26 = vmax.f32 %v4388_v19, 0.0  ;;  %v4391_v42 = vadd.f32 %v9018_v57, %v4276_v34 }
 0x803   : > { %3502 = vmatprep.mubr.f32.mxu1 %v8108_v40  ;;  %7074 = vmatpush3.msra.mxu0 %v5356_v51  ;;  %v4267_v51 = vld [vmem:[%s11112_s1 + $0xa0] sm:$0xff] }
 0x804   : > { %7075 = vmatprep.subr.mxu0 %v8108_v40  ;;  %v4412_v56 = vmax.f32 %v4380_v49, 0.0 }
 0x805   : > { %7031 = vmatmul.mubr.msk.f32.gmra.mxu0 %vm1610_vm0, %v4401_v55  ;;  %v3187_v55 = vmax.f32 %v3129_v62, 0.0  ;;  %v4423_v62 = vmax.f32 %v4391_v42, 0.0 }
 0x806   : > { %6351 = vmatmul.mubr.msk.f32.gmra.mxu1 %vm1610_vm0, %v3182_v41  ;;  %7033 = vmatprep.mubr.msk.f32.mxu0 %vm1610_vm0, %v4402_v58  ;;  %v4382_v41 = vadd.f32 %v9018_v57, %v4267_v51  ;;  %v4268_v58 = vld [vmem:[%s11112_s1 + $0xa8] sm:$0xff] }
 0x807   : > { %3508 = vmatprep.mubr.f32.mxu1 %v8108_v40  ;;  %7076 = vmatpush3.msra.mxu0 %v5355_v63  ;;  %v4383_v63 = vadd.f32 %v9018_v57, %v4268_v58 }
 0x808   : > { %7077 = vmatprep.subr.mxu0 %v8108_v40 }
 0x809   : > { %7034 = vmatmul.mubr.msk.f32.gmra.mxu0 %vm1610_vm0, %v4403_v59  ;;  %v4414_v59 = vmax.f32 %v4382_v41, 0.0 }
 0x80a   : > { %6352 = vmatmul.mubr.msk.f32.gmra.mxu1 %vm1610_vm0, %v3183_v4  ;;  %7036 = vmatprep.mubr.msk.f32.mxu0 %vm1610_vm0, %v4404_v7  ;;  %v4270_v4 = vld [vmem:[%s11112_s1 + $0xb8] sm:$0xff]  ;;  %v4415_v7 = vmax.f32 %v4383_v63, 0.0 }
 0x80b   : > { %3514 = vmatprep.mubr.f32.mxu1 %v8108_v40  ;;  %7078 = vmatpush3.msra.mxu0 %v5354_v11  ;;  %v4385_v10 = vadd.f32 %v9018_v57, %v4270_v4  ;;  %v4416_v11 = vmax.f32 %v4384_v2, 0.0 }
 0x80c   : > { %7079 = vmatprep.subr.mxu0 %v8108_v40 }
 0x80d   : > { %7037 = vmatmul.mubr.msk.f32.gmra.mxu0 %vm1610_vm0, %v4405_v52  ;;  %v4272_v52 = vld [vmem:[%s11112_s1 + $0xc8] sm:$0xff]  ;;  %v4417_v13 = vmax.f32 %v4385_v10, 0.0 }
 0x80e   : > { %6353 = vmatmul.mubr.msk.f32.gmra.mxu1 %vm1610_vm0, %v3184_v14  ;;  %7039 = vmatprep.mubr.msk.f32.mxu0 %vm1610_vm0, %v4406_v15  ;;  %v4387_v14 = vadd.f32 %v9018_v57, %v4272_v52  ;;  %v3190_v15 = vmax.f32 %v3144_v9, 0.0 }
 0x80f   : > { %3520 = vmatprep.mubr.f32.mxu1 %v8108_v40  ;;  %7080 = vmatpush3.msra.mxu0 %v5353_v20  ;;  %v4274_v20 = vld [vmem:[%s11112_s1 + $0xd8] sm:$0xff] }
 0x810   : > { %7081 = vmatprep.subr.mxu0 %v8108_v40  ;;  %v4389_v21 = vadd.f32 %v9018_v57, %v4274_v20 }
 0x811   : > { %7040 = vmatmul.mubr.msk.f32.gmra.mxu0 %vm1610_vm0, %v4407_v25  ;;  %v4419_v25 = vmax.f32 %v4387_v14, 0.0 }
 0x812   : > { %6354 = vmatmul.mubr.msk.f32.gmra.mxu1 %vm1610_vm0, %v3185_v23  ;;  %7042 = vmatprep.mubr.msk.f32.mxu0 %vm1610_vm0, %v4408_v30  ;;  %v3154_v23 = vadd.f32 %v9008_v18, %v8935_v44  ;;  %v4390_v30 = vadd.f32 %v9018_v57, %v4275_v22  ;;  %v4392_v44 = vadd.f32 %v9018_v57, %v4277_v54  ;;  %v4278_v18 = vld [vmem:[%s11112_s1 + $0xf8] sm:$0xff] }
 0x813   : > { %3526 = vmatprep.mubr.f32.mxu1 %v8108_v40  ;;  %7082 = vmatpush3.msra.mxu0 %v5352_v39  ;;  %v4421_v39 = vmax.f32 %v4389_v21, 0.0 }
 0x814   : > { %7083 = vmatprep.subr.mxu0 %v8108_v40  ;;  %v4422_v37 = vmax.f32 %v4390_v30, 0.0  ;;  %v4424_v49 = vmax.f32 %v4392_v44, 0.0 }
 0x815   : > { %7043 = vmatmul.mubr.msk.f32.gmra.mxu0 %vm1610_vm0, %v4409_v17  ;;  %v3192_v17 = vmax.f32 %v3154_v23, 0.0 }
 0x816   : > { %6355 = vmatmul.mubr.msk.f32.gmra.mxu1 %vm1610_vm0, %v3186_v47  ;;  %7045 = vmatprep.mubr.msk.f32.mxu0 %vm1610_vm0, %v4410_v36  ;;  %v4393_v47 = vadd.f32 %v9018_v57, %v4278_v18  ;;  %v3193_v36 = vmax.f32 %v9006_v61, 0.0 }
 0x817   : > { %3532 = vmatprep.mubr.f32.mxu1 %v8108_v40  ;;  %7084 = vmatpush3.msra.mxu0 %v5351_v33  ;;  %v3210_v33 = vld [vmem:[%s11113_s26] sm:$0x3]  ;;  %s5893_s26 = sshll.u32 %s10398_s4, 4  ;;  %s10823_s26 = int_to_ptr.vmem [resolvable:$true] %s5893_s26 }
 0x818   : > { %v4425_v50 = vmax.f32 %v4393_v47, 0.0  ;;  %v9187_v57 = vrot.slane %v3210_v33, %v8568_v28  ;;  %v9190_v61 = vrot.slane %v3210_v33, %v8573_v32 }
 0x819   : > { %7046 = vmatmul.mubr.msk.f32.gmra.mxu0 %vm1610_vm0, %v4411_v8 }
 0x81a   : > { %6356 = vmatmul.mubr.msk.f32.gmra.mxu1 %vm1610_vm0, %v3187_v55  ;;  %7048 = vmatprep.mubr.msk.f32.mxu0 %vm1610_vm0, %v4412_v56 }
 0x81b   : > { %3538 = vmatprep.mubr.f32.mxu1 %v8108_v40 }
 0x81d   : > { %7049 = vmatmul.mubr.msk.f32.gmra.mxu0 %vm1610_vm0, %v4413_v46 }
 0x81e   : > { %6357 = vmatmul.mubr.msk.f32.gmra.mxu1 %vm1610_vm0, %v3188_v1  ;;  %7051 = vmatprep.mubr.msk.f32.mxu0 %vm1610_vm0, %v4414_v59 }
 0x81f   : > { %3544 = vmatprep.mubr.f32.mxu1 %v8108_v40 }
 0x821   : > { %7052 = vmatmul.mubr.msk.f32.gmra.mxu0 %vm1610_vm0, %v4415_v7 }
 0x822   : > { %6358 = vmatmul.mubr.msk.f32.gmra.mxu1 %vm1610_vm0, %v3189_v38  ;;  %7054 = vmatprep.mubr.msk.f32.mxu0 %vm1610_vm0, %v4416_v11 }
 0x823   : > { %3550 = vmatprep.mubr.f32.mxu1 %v8108_v40 }
 0x825   : > { %7055 = vmatmul.mubr.msk.f32.gmra.mxu0 %vm1610_vm0, %v4417_v13 }
 0x826   : > { %6359 = vmatmul.mubr.msk.f32.gmra.mxu1 %vm1610_vm0, %v3190_v15  ;;  %7057 = vmatprep.mubr.msk.f32.mxu0 %vm1610_vm0, %v4418_v16 }
 0x827   : > { %3556 = vmatprep.mubr.f32.mxu1 %v8108_v40 }
 0x829   : > { %7058 = vmatmul.mubr.msk.f32.gmra.mxu0 %vm1610_vm0, %v4419_v25 }
 0x82a   : > { %6360 = vmatmul.mubr.msk.f32.gmra.mxu1 %vm1610_vm0, %v3191_v45  ;;  %7060 = vmatprep.mubr.msk.f32.mxu0 %vm1610_vm0, %v4420_v26 }
 0x82b   : > { %3562 = vmatprep.mubr.f32.mxu1 %v8108_v40 }
 0x82d   : > { %7061 = vmatmul.mubr.msk.f32.gmra.mxu0 %vm1610_vm0, %v4421_v39 }
 0x82e   : > { %6361 = vmatmul.mubr.msk.f32.gmra.mxu1 %vm1610_vm0, %v3192_v17  ;;  %7063 = vmatprep.mubr.msk.f32.mxu0 %vm1610_vm0, %v4422_v37 }
 0x82f   : > { %3568 = vmatprep.mubr.f32.mxu1 %v8108_v40 }
 0x831   : > { %7064 = vmatmul.mubr.msk.f32.gmra.mxu0 %vm1610_vm0, %v4423_v62 }
 0x832   : > { %6362 = vmatmul.mubr.msk.f32.gmra.mxu1 %vm1610_vm0, %v3193_v36  ;;  %7066 = vmatprep.mubr.msk.f32.mxu0 %vm1610_vm0, %v4424_v49 }
 0x835   : > { %7067 = vmatmul.mubr.msk.f32.gmra.mxu0 %vm1610_vm0, %v4425_v50 }
 0x836   : > { %7085 = vmatprep.mubr.msk.f32.mxu0 %vm8109_vm1, %v8108_v40 }
 0x839   : > { %7086 = vmatmul.mubr.msk.f32.vlgmr.msra.gmra.mxu0 %vm1610_vm0, %v8762_v29 }
 0x876   : > { %v3384_v51 = vpop.f32.mrf.mxu1 }
 0x877   : > { %v9193_v8 = vadd.f32 %v3384_v51, %v9187_v57 }
 0x878   : > { %v3386_v53 = vpop.f32.mrf.mxu1 }
 0x879   : > { %11114 = vst [vmem:[#allocation66_spill] sm:$0xff] %v9193_v8  ;;  %v9196_v55 = vadd.f32 %v3386_v53, %v9190_v61  ;;  %v10907_v40 = vmax.f32 %v9193_v8, 0.0 }
 0x87a   : > { %v3390_v24 = vpop.f32.mrf.mxu1 }
 0x87b   : > { %v10925_v29 = vmax.f32 %v9196_v55, 0.0  ;;  %v9201_v56 = vadd.f32 %v3390_v24, %v9187_v57 }
 0x87c   : > { %v3392_v41 = vpop.f32.mrf.mxu1 }
 0x87d   : > { %11115 = vst [vmem:[#allocation67_spill] sm:$0xff] %v9201_v56  ;;  %v9204_v58 = vadd.f32 %v3392_v41, %v9190_v61  ;;  %v3639_v60 = vadd.f32 %v10925_v29, %v10907_v40  ;;  %v10906_v63 = vmax.f32 %v9201_v56, 0.0 }
 0x87e   : > { %v3396_v46 = vpop.f32.mrf.mxu1 }
 0x87f   : > { %v10924_v43 = vmax.f32 %v9204_v58, 0.0  ;;  %v9213_v1 = vadd.f32 %v3396_v46, %v9187_v57  ;;  %3640 = vadd.xlane.f32.xlu1 %v3639_v60 }
 0x880   : > { %v3398_v59 = vpop.f32.mrf.mxu1 }
 0x881   : > { %11116 = vst [vmem:[#allocation68_spill] sm:$0xff] %v9213_v1  ;;  %v9216_v2 = vadd.f32 %v3398_v59, %v9190_v61  ;;  %v3642_v4 = vadd.f32 %v10924_v43, %v10906_v63  ;;  %v10904_v7 = vmax.f32 %v9213_v1, 0.0 }
 0x882   : > { %v3402_v6 = vpop.f32.mrf.mxu1 }
 0x883   : > { %v10923_v10 = vmax.f32 %v9216_v2, 0.0  ;;  %v9225_v38 = vadd.f32 %v3402_v6, %v9187_v57  ;;  %3643 = vadd.xlane.f32.xlu0 %v3642_v4 }
 0x884   : > { %v3404_v9 = vpop.f32.mrf.mxu1 }
 0x885   : > { %11117 = vst [vmem:[#allocation69_spill] sm:$0xff] %v9225_v38  ;;  %v9228_v11 = vadd.f32 %v3404_v9, %v9190_v61  ;;  %v3645_v12 = vadd.f32 %v10923_v10, %v10904_v7  ;;  %v10903_v31 = vmax.f32 %v9225_v38, 0.0 }
 0x886   : > { %v3408_v52 = vpop.f32.mrf.mxu1 }
 0x887   : > { %v10922_v13 = vmax.f32 %v9228_v11, 0.0  ;;  %v9237_v14 = vadd.f32 %v3408_v52, %v9187_v57  ;;  %3646 = vadd.xlane.f32.xlu1 %v3645_v12 }
 0x888   : > { %v3410_v48 = vpop.f32.mrf.mxu1 }
 0x889   : > { %11118 = vst [vmem:[#allocation70_spill] sm:$0xff] %v9237_v14  ;;  %v9240_v15 = vadd.f32 %v3410_v48, %v9190_v61  ;;  %v3648_v16 = vadd.f32 %v10922_v13, %v10903_v31  ;;  %v10901_v20 = vmax.f32 %v9237_v14, 0.0  ;;  %v5505_v13 = vld [vmem:[#allocation23 + $0x38] sm:$0xff] }
 0x88a   : > { %v3414_v19 = vpop.f32.mrf.mxu1  ;;  %7088 = vmatprep.subr.mxu0 %v5505_v13 }
 0x88b   : > { %11119 = vst [vmem:[#allocation71_spill] sm:$0xff] %v9240_v15  ;;  %v10921_v22 = vmax.f32 %v9240_v15, 0.0  ;;  %v9249_v25 = vadd.f32 %v3414_v19, %v9187_v57  ;;  %3649 = vadd.xlane.f32.xlu0 %v3648_v16  ;;  %7089 = vmatpush3.msra.mxu0 %v5505_v13 }
 0x88c   : > { %v3416_v21 = vpop.f32.mrf.mxu1 }
 0x88d   : > { %11120 = vst [vmem:[#allocation72_spill] sm:$0xff] %v9249_v25  ;;  %v9252_v45 = vadd.f32 %v3416_v21, %v9190_v61  ;;  %v3651_v23 = vadd.f32 %v10921_v22, %v10901_v20  ;;  %v10900_v30 = vmax.f32 %v9249_v25, 0.0 }
 0x88e   : > { %v3420_v26 = vpop.f32.mrf.mxu1 }
 0x88f   : > { %11121 = vst [vmem:[#allocation73_spill] sm:$0xff] %v9252_v45  ;;  %v10920_v34 = vmax.f32 %v9252_v45, 0.0  ;;  %v9261_v54 = vadd.f32 %v3420_v26, %v9187_v57  ;;  %3652 = vadd.xlane.f32.xlu1 %v3651_v23 }
 0x890   : > { %v3422_v39 = vpop.f32.mrf.mxu1 }
 0x891   : > { %11122 = vst [vmem:[#allocation74_spill] sm:$0xff] %v9261_v54  ;;  %v9264_v42 = vadd.f32 %v3422_v39, %v9190_v61  ;;  %v3654_v17 = vadd.f32 %v10920_v34, %v10900_v30  ;;  %v10899_v44 = vmax.f32 %v9261_v54, 0.0 }
 0x892   : > { %v3426_v37 = vpop.f32.mrf.mxu1 }
 0x893   : > { %11123 = vst [vmem:[#allocation75_spill] sm:$0xff] %v9264_v42  ;;  %v10919_v18 = vmax.f32 %v9264_v42, 0.0  ;;  %v9273_v62 = vadd.f32 %v3426_v37, %v9187_v57  ;;  %3655 = vadd.xlane.f32.xlu0 %v3654_v17 }
 0x894   : > { %v3428_v47 = vpop.f32.mrf.mxu1 }
 0x895   : > { %11124 = vst [vmem:[#allocation76_spill] sm:$0xff] %v9273_v62  ;;  %v9276_v36 = vadd.f32 %v3428_v47, %v9190_v61  ;;  %v3657_v49 = vadd.f32 %v10919_v18, %v10899_v44  ;;  %v10897_v33 = vmax.f32 %v9273_v62, 0.0 }
 0x896   : > { %v3432_v50 = vpop.f32.mrf.mxu1 }
 0x897   : > { %11125 = vst [vmem:[#allocation77_spill] sm:$0xff] %v9276_v36  ;;  %v10918_v51 = vmax.f32 %v9276_v36, 0.0  ;;  %v9285_v53 = vadd.f32 %v3432_v50, %v9187_v57  ;;  %3658 = vadd.xlane.f32.xlu1 %v3657_v49 }
 0x898   : > { %v3434_v24 = vpop.f32.mrf.mxu1 }
 0x899   : > { %11126 = vst [vmem:[#allocation78_spill] sm:$0xff] %v9285_v53  ;;  %v9288_v41 = vadd.f32 %v3434_v24, %v9190_v61  ;;  %v3660_v60 = vadd.f32 %v10918_v51, %v10897_v33  ;;  %v10896_v59 = vmax.f32 %v9285_v53, 0.0 }
 0x89a   : > { %v3438_v46 = vpop.f32.mrf.mxu1 }
 0x89b   : > { %11127 = vst [vmem:[#allocation79_spill] sm:$0xff] %v9288_v41  ;;  %v10917_v4 = vmax.f32 %v9288_v41, 0.0  ;;  %v9297_v6 = vadd.f32 %v3438_v46, %v9187_v57  ;;  %3661 = vadd.xlane.f32.xlu0 %v3660_v60 }
 0x89c   : > { %v3440_v9 = vpop.f32.mrf.mxu1 }
 0x89d   : > { %11128 = vst [vmem:[#allocation80_spill] sm:$0xff] %v9297_v6  ;;  %v9300_v12 = vadd.f32 %v3440_v9, %v9190_v61  ;;  %v3663_v52 = vadd.f32 %v10917_v4, %v10896_v59  ;;  %v10895_v16 = vmax.f32 %v9297_v6, 0.0 }
 0x89e   : > { %v3444_v48 = vpop.f32.mrf.mxu1 }
 0x89f   : > { %11129 = vst [vmem:[#allocation81_spill] sm:$0xff] %v9300_v12  ;;  %v10914_v19 = vmax.f32 %v9300_v12, 0.0  ;;  %v9309_v21 = vadd.f32 %v3444_v48, %v9187_v57  ;;  %3664 = vadd.xlane.f32.xlu1 %v3663_v52 }
 0x8a0   : > { %v3446_v23 = vpop.f32.mrf.mxu1 }
 0x8a1   : > { %11130 = vst [vmem:[#allocation82_spill] sm:$0xff] %v9309_v21  ;;  %v9312_v26 = vadd.f32 %v3446_v23, %v9190_v61  ;;  %v3666_v39 = vadd.f32 %v10914_v19, %v10895_v16  ;;  %v10894_v37 = vmax.f32 %v9309_v21, 0.0 }
 0x8a2   : > { %v3450_v17 = vpop.f32.mrf.mxu1 }
 0x8a3   : > { %11131 = vst [vmem:[#allocation83_spill] sm:$0xff] %v9312_v26  ;;  %v10913_v47 = vmax.f32 %v9312_v26, 0.0  ;;  %v9321_v49 = vadd.f32 %v3450_v17, %v9187_v57  ;;  %3667 = vadd.xlane.f32.xlu0 %v3666_v39 }
 0x8a4   : > { %v3452_v50 = vpop.f32.mrf.mxu1 }
 0x8a5   : > { %11132 = vst [vmem:[#allocation84_spill] sm:$0xff] %v9321_v49  ;;  %v9324_v24 = vadd.f32 %v3452_v50, %v9190_v61  ;;  %v3669_v60 = vadd.f32 %v10913_v47, %v10894_v37  ;;  %v10898_v9 = vmax.f32 %v9321_v49, 0.0 }
 0x8a6   : > { %v3456_v46 = vpop.f32.mrf.mxu1 }
 0x8a7   : > { %11133 = vst [vmem:[#allocation85_spill] sm:$0xff] %v9324_v24  ;;  %v10910_v52 = vmax.f32 %v9324_v24, 0.0  ;;  %v9333_v48 = vadd.f32 %v3456_v46, %v9187_v57  ;;  %3670 = vadd.xlane.f32.xlu1 %v3669_v60 }
 0x8a8   : > { %v3458_v23 = vpop.f32.mrf.mxu1 }
 0x8a9   : > { %11134 = vst [vmem:[#allocation86_spill] sm:$0xff] %v9333_v48  ;;  %v9336_v39 = vadd.f32 %v3458_v23, %v9190_v61  ;;  %v3672_v17 = vadd.f32 %v10910_v52, %v10898_v9  ;;  %v10902_v37 = vmax.f32 %v9333_v48, 0.0 }
 0x8aa   : > { %v3462_v50 = vpop.f32.mrf.mxu1 }
 0x8ab   : > { %11135 = vst [vmem:[#allocation87_spill] sm:$0xff] %v9336_v39  ;;  %v10909_v16 = vmax.f32 %v9336_v39, 0.0  ;;  %v9345_v59 = vadd.f32 %v3462_v50, %v9187_v57  ;;  %3673 = vadd.xlane.f32.xlu0 %v3672_v17 }
 0x8ac   : > { %v3464_v46 = vpop.f32.mrf.mxu1 }
 0x8ad   : > { %11136 = vst [vmem:[#allocation88_spill] sm:$0xff] %v9345_v59  ;;  %v9348_v60 = vadd.f32 %v3464_v46, %v9190_v61  ;;  %v3675_v23 = vadd.f32 %v10909_v16, %v10902_v37  ;;  %v10905_v9 = vmax.f32 %v9345_v59, 0.0  ;;  %v9387_v16 = vld [vmem:[%s11140_s16] ss:$0 sm:$0xff]  ;;  %s5873_s16 = scalar_lea.sflag [#allocation4], %s8759_s0 }
 0x8ae   : > { %v3468_v33 = vpop.f32.mrf.mxu1  ;;  %v5498_v59 = vld [vmem:[#allocation23] sm:$0xff] }
 0x8af   : > { %11137 = vst [vmem:[#allocation89_spill] sm:$0xff] %v9348_v60  ;;  %v10908_v44 = vmax.f32 %v9348_v60, 0.0  ;;  %v9357_v30 = vadd.f32 %v3468_v33, %v9187_v57  ;;  %3676 = vadd.xlane.f32.xlu1 %v3675_v23 }
 0x8b0   : > { %v3470_v50 = vpop.f32.mrf.mxu1 }
 0x8b1   : > { %11138 = vst [vmem:[#allocation90_spill] sm:$0xff] %v9357_v30  ;;  %v9360_v17 = vadd.f32 %v3470_v50, %v9190_v61  ;;  %v3678_v46 = vadd.f32 %v10908_v44, %v10905_v9  ;;  %v10911_v37 = vmax.f32 %v9357_v30, 0.0 }
 0x8b2   : > { %v3474_v20 = vpop.f32.mrf.mxu1 }
 0x8b3   : > { %11139 = vst [vmem:[#allocation91_spill] sm:$0xff] %v9360_v17  ;;  %v10912_v31 = vmax.f32 %v9360_v17, 0.0  ;;  %v9369_v7 = vadd.f32 %v3474_v20, %v9187_v57  ;;  %3679 = vadd.xlane.f32.xlu0 %v3678_v46 }
 0x8b4   : > { %v3476_v33 = vpop.f32.mrf.mxu1 }
 0x8b5   : > { %11141 = vst [vmem:[#allocation92_spill] sm:$0xff] %v9369_v7  ;;  %v9372_v23 = vadd.f32 %v3476_v33, %v9190_v61  ;;  %v3681_v50 = vadd.f32 %v10912_v31, %v10911_v37  ;;  %v10915_v9 = vmax.f32 %v9369_v7, 0.0  ;;  %v5501_v7 = vld [vmem:[#allocation23 + $0x18] sm:$0xff] }
 0x8b6   : > { %v3480_v30 = vpop.f32.mrf.mxu1 }
 0x8b7   : > { %11142 = vst [vmem:[#allocation93_spill] sm:$0xff] %v9372_v23  ;;  %v10916_v63 = vmax.f32 %v9372_v23, 0.0  ;;  %3682 = vadd.xlane.f32.xlu1 %v3681_v50 }
 0x8b9   : > { %v7023_v40 = vpop.f32.mrf.mxu0  ;;  %v3684_v20 = vadd.f32 %v10916_v63, %v10915_v9 }
 0x8ba   : > { %v4609_v19 = vadd.f32 %v7023_v40, %v9387_v16 }
 0x8bb   : > { %v4603_v46 = vpop.f32.mrf.mxu0  ;;  %3685 = vadd.xlane.f32.xlu0 %v3684_v20 }
 0x8bd   : > { %v9384_v33 = vpop.f32.mrf.mxu0 }
 0x8bf   : > { %v4613_v44 = vpop.f32.mrf.mxu0 }
 0x8c1   : > { %v7029_v52 = vpop.f32.mrf.mxu0 }
 0x8c2   : > { %v9390_v37 = vadd.f32 %v7029_v52, %v9387_v16 }
 0x8c3   : > { %v4623_v31 = vpop.f32.mrf.mxu0 }
 0x8c4   : > { %v9393_v50 = vadd.f32 %v9387_v16, %v4623_v31 }
 0x8c5   : > { %v7032_v47 = vpop.f32.mrf.mxu0 }
 0x8c6   : > { %v9397_v9 = vadd.f32 %v7032_v47, %v9387_v16 }
 0x8c7   : > { %v4633_v20 = vpop.f32.mrf.mxu0 }
 0x8c8   : > { %v9400_v63 = vadd.f32 %v9387_v16, %v4633_v20  ;;  %4770 = vperm.xlu1 %7409, %v4609_v19   ;;  %v4604_v20 = vadd.f32 %v9387_v16, %v4603_v46 }
 0x8c9   : > { %v7035_v4 = vpop.f32.mrf.mxu0 }
 0x8ca   : > { %v9403_v51 = vadd.f32 %v7035_v4, %v9387_v16 }
 0x8cb   : > { %v4643_v52 = vpop.f32.mrf.mxu0 }
 0x8cc   : > { %v9406_v18 = vadd.f32 %v9387_v16, %v4643_v52  ;;  %7410 = vset.pattern.permute.xlu1 %v10930_v3 }
 0x8cd   : > { %v7038_v31 = vpop.f32.mrf.mxu0  ;;  %4964 = vperm.xlu1 %7410, %v4609_v19  }
 0x8ce   : > { %v9410_v40 = vadd.f32 %v7038_v31, %v9387_v16  ;;  %v5504_v31 = vld [vmem:[#allocation23 + $0x30] sm:$0xff] }
 0x8cf   : > { %v4653_v47 = vpop.f32.mrf.mxu0  ;;  %7090 = vmatprep.subr.mxu0 %v5504_v31 }
 0x8d0   : > { %v9414_v34 = vadd.f32 %v9387_v16, %v4653_v47  ;;  %7091 = vmatpush3.msra.mxu0 %v5504_v31 }
 0x8d1   : > { %v7041_v22 = vpop.f32.mrf.mxu0  ;;  %5160 = vperm.xlu0 %7407, %v4609_v19   ;;  %7413 = vset.pattern.permute.xlu1 %v10932_v5 }
 0x8d2   : > { %v9418_v4 = vadd.f32 %v7041_v22, %v9387_v16  ;;  %5156 = vperm.xlu1 %7413, %v4604_v20   ;;  %v5503_v22 = vld [vmem:[#allocation23 + $0x28] sm:$0xff] }
 0x8d3   : > { %v4663_v52 = vpop.f32.mrf.mxu0  ;;  %7092 = vmatprep.subr.mxu0 %v5503_v22 }
 0x8d4   : > { %v9421_v10 = vadd.f32 %v9387_v16, %v4663_v52  ;;  %7093 = vmatpush3.msra.mxu0 %v5503_v22  ;;  %v5500_v22 = vld [vmem:[#allocation23 + $0x10] sm:$0xff] }
 0x8d5   : > { %v7044_v43 = vpop.f32.mrf.mxu0  ;;  %7411 = vset.pattern.permute.xlu0 %v10927_v0 }
 0x8d6   : > { %v9425_v46 = vadd.f32 %v7044_v43, %v9387_v16  ;;  %4765 = vperm.xlu0 %7411, %v4604_v20   ;;  %7414 = vset.pattern.permute.xlu1 %v10927_v0  ;;  %v9439_v0 = vadd.f32 %v9387_v16, %v4613_v44 }
 0x8d7   : > { %v4673_v19 = vpop.f32.mrf.mxu0 }
 0x8d8   : > { %v9429_v47 = vadd.f32 %v9387_v16, %v4673_v19 }
 0x8d9   : > { %v7047_v52 = vpop.f32.mrf.mxu0 }
 0x8da   : > { %v9432_v29 = vadd.f32 %v7047_v52, %v9387_v16  ;;  %7412 = vset.pattern.permute.xlu0 %v10930_v3  ;;  %v5502_v52 = vld [vmem:[#allocation23 + $0x20] sm:$0xff] }
 0x8db   : > { %v4683_v43 = vpop.f32.mrf.mxu0  ;;  %4960 = vperm.xlu0 %7412, %v4604_v20   ;;  %7094 = vmatprep.subr.mxu0 %v5502_v52 }
 0x8dc   : > { %v9436_v13 = vadd.f32 %v9387_v16, %v4683_v43  ;;  %7095 = vmatpush3.msra.mxu0 %v5502_v52  ;;  %v5499_v43 = vld [vmem:[#allocation23 + $0x8] sm:$0xff] }
 0x8dd   : > { %v7050_v35 = vpop.f32.mrf.mxu0  ;;  %7096 = vmatprep.subr.mxu0 %v5501_v7 }
 0x8de   : > { %v9442_v19 = vadd.f32 %v7050_v35, %v9387_v16  ;;  %7097 = vmatpush3.msra.mxu0 %v5501_v7  ;;  %v3482_v7 = vpop.f32.mrf.mxu1 }
 0x8df   : > { %v4693_v31 = vpop.f32.mrf.mxu0  ;;  %7419 = vset.pattern.permute.xlu0 %v10932_v5  ;;  %7098 = vmatprep.subr.mxu0 %v5500_v22 }
 0x8e0   : > { %v9446_v3 = vadd.f32 %v9387_v16, %v4693_v31  ;;  %5164 = vperm.xlu0 %7419, %v9439_v0   ;;  %7099 = vmatpush3.msra.mxu0 %v5500_v22  ;;  %v9465_v22 = vadd.f32 %v3482_v7, %v9190_v61 }
 0x8e1   : > { %v7053_v20 = vpop.f32.mrf.mxu0  ;;  %7100 = vmatprep.subr.mxu0 %v5499_v43 }
 0x8e2   : > { %v9450_v44 = vadd.f32 %v7053_v20, %v9387_v16  ;;  %7101 = vmatpush3.msra.mxu0 %v5499_v43  ;;  %11143 = vst [vmem:[#allocation94_spill] sm:$0xff] %v9465_v22  ;;  %v9471_v43 = vadd.f32 %v3480_v30, %v9187_v57 }
 0x8e3   : > { %v4703_v35 = vpop.f32.mrf.mxu0  ;;  %7102 = vmatprep.subr.mxu0 %v5498_v59 }
 0x8e4   : > { %v9453_v5 = vadd.f32 %v9387_v16, %v4703_v35  ;;  %7103 = vmatpush3.msra.mxu0 %v5498_v59  ;;  %11144 = vst [vmem:[#allocation95_spill] sm:$0xff] %v9471_v43  ;;  %v10950_v59 = vmax.f32 %v9465_v22, 0.0  ;;  %v10951_v7 = vmax.f32 %v9471_v43, 0.0 }
 0x8e5   : > { %v7056_v31 = vpop.f32.mrf.mxu0 }
 0x8e6   : > { %v9456_v48 = vadd.f32 %v7056_v31, %v9387_v16 }
 0x8e7   : > { %v4713_v52 = vpop.f32.mrf.mxu0 }
 0x8e8   : > { %v9459_v20 = vadd.f32 %v9387_v16, %v4713_v52  ;;  %v3486_v52 = vpop.f32.mrf.mxu1 }
 0x8e9   : > { %v7059_v49 = vpop.f32.mrf.mxu0 }
 0x8ea   : > { %v9462_v35 = vadd.f32 %v7059_v49, %v9387_v16  ;;  %v3488_v25 = vpop.f32.mrf.mxu1 }
 0x8eb   : > { %v4723_v21 = vpop.f32.mrf.mxu0  ;;  %v9492_v38 = vadd.f32 %v3488_v25, %v9190_v61 }
 0x8ec   : > { %v9468_v31 = vadd.f32 %v9387_v16, %v4723_v21 }
 0x8ed   : > { %v7062_v6 = vpop.f32.mrf.mxu0  ;;  %11146 = vst [vmem:[#allocation97_spill] sm:$0xff] %v9492_v38  ;;  %v10952_v8 = vmax.f32 %v9492_v38, 0.0 }
 0x8ee   : > { %v9474_v53 = vadd.f32 %v7062_v6, %v9387_v16  ;;  %v3687_v6 = vadd.f32 %v10950_v59, %v10951_v7  ;;  %v11152_v7 = vmov 0  }
 0x8ef   : > { %v4733_v62 = vpop.f32.mrf.mxu0 }
 0x8f0   : > { %v9478_v49 = vadd.f32 %v9387_v16, %v4733_v62 }
 0x8f1   : > { %v7065_v54 = vpop.f32.mrf.mxu0 }
 0x8f2   : > { %v9482_v21 = vadd.f32 %v7065_v54, %v9387_v16  ;;  %v9498_v54 = vadd.f32 %v3486_v52, %v9187_v57  ;;  %v4619_v52 = vadd.f32 %v9384_v33, %v9387_v16 }
 0x8f3   : > { %v4743_v14 = vpop.f32.mrf.mxu0 }
 0x8f4   : > { %v9485_v30 = vadd.f32 %v9387_v16, %v4743_v14  ;;  %11148 = vst [vmem:[#allocation99_spill] sm:$0xff] %v9498_v54  ;;  %v10953_v59 = vmax.f32 %v9498_v54, 0.0 }
 0x8f5   : > { %v7068_v62 = vpop.f32.mrf.mxu0 }
 0x8f6   : > { %11145 = vst [vmem:[#allocation96_spill] sm:$0xff] %v9485_v30  ;;  %v9495_v1 = vadd.f32 %v7068_v62, %v9387_v16  ;;  %3688 = vadd.xlane.f32.xlu1 %v3687_v6  ;;  %v3690_v62 = vadd.f32 %v10952_v8, %v10953_v59  ;;  %v11150_v6 = vmov 1   ;;  %v5359_v30 = vld [vmem:[%s11165_s18] sm:$0x1]  ;;  %s8110_s18 = smov [#allocation25]  }
 0x8f7   : > { %v4753_v56 = vpop.f32.mrf.mxu0  ;;  %s7934_s25 = sshll.u32 %s8110_s18, 4  ;;  %s7935_s25 = int_to_ptr.vmem [resolvable:$false] %s7934_s25 }
 0x8f8   : > { %11147 = vst [vmem:[#allocation98_spill] sm:$0xff] %v9495_v1  ;;  %v9501_v14 = vadd.f32 %v9387_v16, %v4753_v56  ;;  %v11151_v56 = vmov 2   ;;  %s7936_s7 = scalar_lea.vmem %s7935_s25, 16384  ;;  %p7937_p3 = scmp.lt.s32.totalorder %s10823_s26, %s7935_s25 }
 0x8f9   : > { %v9504_v43 = vpop.f32.mrf.mxu0 }
 0x8fa   : > { %11149 = vst [vmem:[#allocation100_spill] sm:$0xff] %v9501_v14 }
 0x8fb   : > { %v7087_v25 = vpop.f32.mrf.mxu0 }
 0x8fc   : > { %v3492_v25 = vpop.f32.mrf.mxu1 }
 0x8ff   : > { %3691 = vadd.xlane.f32.xlu0 %v3690_v62 }
 0x907   : > { %4780 = vperm.xlu1 %7414, %v4619_v52  }
 0x908   : > { %v9530_v16 = vpop.xlane.xlu1 %3640 }
 0x909   : > { %7501 = vrcp.f32 %v9530_v16 }
 0x90b   : > { %7415 = vset.pattern.permute.xlu1 %v11150_v6 }
 0x90c   : > { %4972 = vperm.xlu1 %7415, %v4619_v52   ;;  %v9538_v33 = vpop.xlane.xlu0 %3643 }
 0x90d   : > { %7503 = vrcp.f32 %v9538_v33 }
 0x910   : > { %7416 = vset.pattern.permute.xlu1 %v11151_v56 }
 0x911   : > { %5168 = vperm.xlu1 %7416, %v4619_v52   ;;  %v3494_v52 = vpop.f32.mrf.mxu1 }
 0x912   : > { %v9571_v41 = vadd.f32 %v3494_v52, %v9190_v61 }
 0x913   : > { %v3498_v38 = vpop.f32.mrf.mxu1 }
 0x914   : > { %v9563_v39 = vadd.f32 %v3498_v38, %v9187_v57  ;;  %11162 = vst [vmem:[#allocation109_spill] sm:$0xff] %v9571_v41 }
 0x915   : > { %5176 = vperm.xlu0 %7419, %v9390_v37   ;;  %7417 = vset.pattern.permute.xlu1 %v11152_v7  ;;  %v3500_v14 = vpop.f32.mrf.mxu1 }
 0x916   : > { %4775 = vperm.xlu1 %7417, %v9439_v0   ;;  %v9558_v17 = vadd.f32 %v3500_v14, %v9190_v61  ;;  %11158 = vst [vmem:[#allocation106_spill] sm:$0xff] %v9563_v39  ;;  %v10970_v36 = vmax.f32 %v9563_v39, 0.0  ;;  %v9577_v14 = vadd.f32 %v3492_v25, %v9187_v57 }
 0x918   : > { %11156 = vst [vmem:[#allocation104_spill] sm:$0xff] %v9558_v17  ;;  %v10969_v26 = vmax.f32 %v9558_v17, 0.0  ;;  %11164 = vst [vmem:[#allocation111_spill] sm:$0xff] %v9577_v14 }
 0x919   : > { %7422 = vset.pattern.permute.xlu0 %v11152_v7 }
 0x91a   : > { %4785 = vperm.xlu0 %7422, %v9393_v50   ;;  %7418 = vset.pattern.permute.xlu1 %v11150_v6  ;;  %v3696_v38 = vadd.f32 %v10969_v26, %v10970_v36 }
 0x91b   : > { %4968 = vperm.xlu1 %7418, %v9439_v0   ;;  %v9536_v0 = vpop.xlane.xlu1 %3646 }
 0x91c   : > { %7505 = vrcp.f32 %v9536_v0  ;;  %v11184_v0 = vmax.f32 %v9196_v55, 0.0 }
 0x91e   : > { %7423 = vset.pattern.permute.xlu0 %v11150_v6 }
 0x91f   : > { %4976 = vperm.xlu0 %7423, %v9393_v50   ;;  %7420 = vset.pattern.permute.xlu1 %v11152_v7  ;;  %v9541_v62 = vpop.xlane.xlu1 %3652 }
 0x920   : > { %4790 = vperm.xlu1 %7420, %v9390_v37  }
 0x923   : > { %7428 = vset.pattern.permute.xlu0 %v11152_v7  ;;  %v9545_v8 = vpop.xlane.xlu1 %3658 }
 0x924   : > { %4795 = vperm.xlu0 %7428, %v9400_v63   ;;  %7421 = vset.pattern.permute.xlu1 %v11150_v6 }
 0x925   : > { %4980 = vperm.xlu1 %7421, %v9390_v37   ;;  %v9543_v37 = vpop.xlane.xlu0 %3649 }
 0x926   : > { %7507 = vrcp.f32 %v9543_v37 }
 0x927   : > { %7509 = vrcp.f32 %v9541_v62 }
 0x928   : > { %7430 = vset.pattern.permute.xlu0 %v11151_v56  ;;  %v9549_v22 = vpop.xlane.xlu1 %3664 }
 0x929   : > { %5180 = vperm.xlu0 %7430, %v9400_v63   ;;  %7424 = vset.pattern.permute.xlu1 %v11151_v56  ;;  %v9547_v59 = vpop.xlane.xlu0 %3655  ;;  %11153 = vst [vmem:[#allocation101_spill] sm:$0xff] %v9549_v22 }
 0x92a   : > { %5172 = vperm.xlu1 %7424, %v9393_v50   ;;  %7511 = vrcp.f32 %v9547_v59  ;;  %v11188_v59 = vmax.f32 %v9216_v2, 0.0 }
 0x92b   : > { %7513 = vrcp.f32 %v9545_v8  ;;  %v11190_v8 = vmax.f32 %v9228_v11, 0.0 }
 0x92d   : > { %v9551_v50 = vpop.xlane.xlu0 %3661 }
 0x92e   : > { %7425 = vset.pattern.permute.xlu1 %v11152_v7  ;;  %7515 = vrcp.f32 %v9551_v50 }
 0x930   : > { %v9553_v54 = vpop.xlane.xlu1 %3670 }
 0x931   : > { %11154 = vst [vmem:[#allocation102_spill] sm:$0xff] %v9553_v54  ;;  %v9555_v23 = vpop.xlane.xlu0 %3667  ;;  %v4762_v54 = vld [vmem:[%s11159_s14] sm:$0x7]  ;;  %s7930_s14 = scalar_lea.vmem %s10823_s26, 8192 }
 0x932   : > { %11155 = vst [vmem:[#allocation103_spill] sm:$0xff] %v9555_v23  ;;  %v9593_v39 = vrot.slane %v4762_v54, %v8573_v32  ;;  %v9596_v36 = vrot.slane %v4762_v54, %v8568_v28  ;;  %v5427_v32 = vadd.f32 %v9504_v43, %v5359_v30  ;;  %p7931_p5 = scmp.ne.s32.totalorder %s10823_s26, %s7930_s14  ;;  %p7938_p7 = scmp.lt.s32.totalorder %s7936_s7, %s7930_s14 }
 0x934   : > { %p7932_p12 = pnand %p7931_p5, %p11355_p2  ;;  %p7939_p4 = por %p7938_p7, %p7937_p3 }
 0x935   : > { %v9565_v24 = vpop.xlane.xlu0 %3673 }
 0x936   : > { %11160 = vst [vmem:[#allocation107_spill] sm:$0xff] %v9565_v24  ;;  %p7933_p10 = pneg %p7932_p12 }
 0x938   : > { %v9560_v60 = vpop.xlane.xlu1 %3676  ;;  %p7940_p8 = pnand %p7939_p4, %p7933_p10 }
 0x939   : > { %11157 = vst [vmem:[#allocation105_spill] sm:$0xff] %v9560_v60  ;;  %v10974_v60 = vmax.f32 %v9571_v41, 0.0  ;;  %v11196_v11 = vld [vmem:[#allocation103_spill] sm:$0xff] }
 0x93c   : > { %v9574_v42 = vpop.xlane.xlu0 %3679 }
 0x93d   : > { %11163 = vst [vmem:[#allocation110_spill] sm:$0xff] %v9574_v42 }
 0x940   : > { %v9568_v12 = vpop.xlane.xlu1 %3682 }
 0x941   : > { %11161 = vst [vmem:[#allocation108_spill] sm:$0xff] %v9568_v12  ;;  %v10975_v12 = vmax.f32 %v9577_v14, 0.0 }
 0x943   : > { %v3693_v25 = vadd.f32 %v10974_v60, %v10975_v12 }
 0x944   : > { %v9584_v24 = vpop.xlane.xlu0 %3685  ;;  %v4771_v52 = vpop.permute.xlu1 %4770 }
 0x945   : > { %11166 = vst [vmem:[#allocation112_spill] sm:$0xff] %v9584_v24  ;;  %v4928_v60 = vmul.f32 %v9596_v36, %v4771_v52 }
 0x948   : > { %3697 = vadd.xlane.f32.xlu0 %v3696_v38  ;;  %v4965_v26 = vpop.permute.xlu1 %4964  ;;  %v11167_v38 = vsub.s32 2, %v8564_v27 }
 0x949   : > { %v5092_v14 = vmul.f32 %v9593_v39, %v4965_v26  ;;  %v9611_v26 = vrot.slane %v5427_v32, %v8568_v28  ;;  %v3504_v28 = vpop.f32.mrf.mxu1 }
 0x94a   : > { %v9600_v17 = vrot.slane %v4762_v54, %v11167_v38 }
 0x94b   : > { %v5124_v41 = vadd.f32 %v5092_v14, %v4928_v60 }
 0x94c   : > { %v5161_v42 = vpop.permute.xlu0 %5160 }
 0x94d   : > { %v5288_v12 = vmul.f32 %v9600_v17, %v5161_v42 }
 0x94e   : > { %3694 = vadd.xlane.f32.xlu1 %v3693_v25  ;;  %v5157_v25 = vpop.permute.xlu1 %5156 }
 0x94f   : > { %v5320_v27 = vadd.f32 %v5288_v12, %v5124_v41  ;;  %v5287_v54 = vmul.f32 %v9600_v17, %v5157_v25 }
 0x951   : > { %v4766_v24 = vpop.permute.xlu0 %4765  ;;  %v5435_v52 = vadd.f32 %v9611_v26, %v5320_v27 }
 0x952   : > { %v4927_v23 = vmul.f32 %v9596_v36, %v4766_v24 }
 0x953   : > { %v5467_v24 = vmax.f32 %v5435_v52, 0.0 }
 0x956   : > { %v4961_v45 = vpop.permute.xlu0 %4960 }
 0x957   : > { %v5091_v15 = vmul.f32 %v9593_v39, %v4961_v45 }
 0x959   : > { %v5123_v38 = vadd.f32 %v5091_v15, %v4927_v23  ;;  %v3506_v15 = vpop.f32.mrf.mxu1 }
 0x95b   : > { %v5319_v22 = vadd.f32 %v5287_v54, %v5123_v38  ;;  %v5165_v43 = vpop.permute.xlu0 %5164 }
 0x95d   : > { %v5434_v42 = vadd.f32 %v9611_v26, %v5319_v22 }
 0x95e   : > { %5192 = vperm.xlu0 %7430, %v9403_v51  }
 0x95f   : > { %v5466_v60 = vmax.f32 %v5434_v42, 0.0  ;;  %4800 = vperm.xlu1 %7425, %v9397_v9  }
 0x961   : > { %7104 = vmatprep.mubr.msk.f32.mxu0 %vm1610_vm0, %v5466_v60 }
 0x962   : > { %7433 = vset.pattern.permute.xlu0 %v11152_v7  ;;  %7105 = vmatmul.mubr.msk.f32.vlgmr.msra.gmra.mxu0 %vm1610_vm0, %v5467_v24  ;;  %v9660_v24 = vadd.f32 %v3506_v15, %v9190_v61 }
 0x963   : > { %4805 = vperm.xlu0 %7433, %v9406_v18   ;;  %7426 = vset.pattern.permute.xlu1 %v11150_v6 }
 0x964   : > { %4988 = vperm.xlu1 %7426, %v9397_v9   ;;  %11170 = vst [vmem:[#allocation115_spill] sm:$0xff] %v9660_v24 }
 0x967   : > { %7434 = vset.pattern.permute.xlu0 %v11150_v6 }
 0x968   : > { %4992 = vperm.xlu0 %7434, %v9406_v18   ;;  %7427 = vset.pattern.permute.xlu1 %v11151_v56 }
 0x969   : > { %5184 = vperm.xlu1 %7427, %v9397_v9  }
 0x96c   : > { %7439 = vset.pattern.permute.xlu0 %v11152_v7 }
 0x96d   : > { %4815 = vperm.xlu0 %7439, %v9414_v34   ;;  %7429 = vset.pattern.permute.xlu1 %v11150_v6 }
 0x96e   : > { %4984 = vperm.xlu1 %7429, %v9400_v63   ;;  %v3510_v63 = vpop.f32.mrf.mxu1 }
 0x96f   : > { %v9646_v22 = vadd.f32 %v3510_v63, %v9187_v57 }
 0x970   : > { %v3512_v12 = vpop.f32.mrf.mxu1 }
 0x971   : > { %7441 = vset.pattern.permute.xlu0 %v11151_v56  ;;  %v9643_v9 = vadd.f32 %v3512_v12, %v9190_v61  ;;  %11169 = vst [vmem:[#allocation114_spill] sm:$0xff] %v9646_v22 }
 0x972   : > { %5196 = vperm.xlu0 %7441, %v9414_v34   ;;  %7431 = vset.pattern.permute.xlu1 %v11152_v7 }
 0x973   : > { %4810 = vperm.xlu1 %7431, %v9403_v51   ;;  %11168 = vst [vmem:[#allocation113_spill] sm:$0xff] %v9643_v9 }
 0x977   : > { %7432 = vset.pattern.permute.xlu1 %v11150_v6 }
 0x978   : > { %4996 = vperm.xlu1 %7432, %v9403_v51   ;;  %v10980_v51 = vmax.f32 %v9643_v9, 0.0 }
 0x97c   : > { %7435 = vset.pattern.permute.xlu1 %v11151_v56 }
 0x97d   : > { %5188 = vperm.xlu1 %7435, %v9406_v18   ;;  %v10981_v18 = vmax.f32 %v9646_v22, 0.0 }
 0x97f   : > { %v9639_v45 = vpop.xlane.xlu1 %3688  ;;  %v3702_v32 = vadd.f32 %v10980_v51, %v10981_v18 }
 0x981   : > { %7436 = vset.pattern.permute.xlu1 %v11152_v7 }
 0x983   : > { %v4781_v41 = vpop.permute.xlu1 %4780 }
 0x984   : > { %v4930_v38 = vmul.f32 %v9596_v36, %v4781_v41  ;;  %v10982_v41 = vmax.f32 %v9660_v24, 0.0 }
 0x987   : > { %v4973_v23 = vpop.permute.xlu1 %4972 }
 0x988   : > { %v9650_v14 = vpop.xlane.xlu0 %3691  ;;  %v5094_v27 = vmul.f32 %v9593_v39, %v4973_v23  ;;  %v5289_v23 = vmul.f32 %v9600_v17, %v5165_v43 }
 0x98a   : > { %v5126_v42 = vadd.f32 %v5094_v27, %v4930_v38 }
 0x98c   : > { %v5169_v30 = vpop.permute.xlu1 %5168 }
 0x98d   : > { %v5290_v52 = vmul.f32 %v9600_v17, %v5169_v30 }
 0x98f   : > { %v5322_v9 = vadd.f32 %v5290_v52, %v5126_v42 }
 0x990   : > { %v5177_v54 = vpop.permute.xlu0 %5176 }
 0x991   : > { %3703 = vadd.xlane.f32.xlu0 %v3702_v32  ;;  %v4776_v25 = vpop.permute.xlu1 %4775  ;;  %v9665_v32 = vadd.f32 %v3504_v28, %v9187_v57  ;;  %v5437_v38 = vadd.f32 %v9611_v26, %v5322_v9 }
 0x992   : > { %v4929_v63 = vmul.f32 %v9596_v36, %v4776_v25 }
 0x993   : > { %v10983_v15 = vmax.f32 %v9665_v32, 0.0  ;;  %v5469_v43 = vmax.f32 %v5437_v38, 0.0 }
 0x995   : > { %v4786_v51 = vpop.permute.xlu0 %4785  ;;  %v3699_v28 = vadd.f32 %v10982_v41, %v10983_v15 }
 0x996   : > { %v4969_v60 = vpop.permute.xlu1 %4968 }
 0x997   : > { %v5093_v12 = vmul.f32 %v9593_v39, %v4969_v60 }
 0x999   : > { %v5125_v18 = vadd.f32 %v5093_v12, %v4929_v63  ;;  %v5292_v12 = vmul.f32 %v9600_v17, %v5177_v54 }
 0x99a   : > { %v4977_v52 = vpop.permute.xlu0 %4976 }
 0x99b   : > { %v5321_v30 = vadd.f32 %v5289_v23, %v5125_v18  ;;  %v4791_v27 = vpop.permute.xlu1 %4790  ;;  %v5095_v9 = vmul.f32 %v9593_v39, %v4977_v52 }
 0x99c   : > { %v4932_v63 = vmul.f32 %v9596_v36, %v4791_v27 }
 0x99d   : > { %v5436_v25 = vadd.f32 %v9611_v26, %v5321_v30  ;;  %v4931_v30 = vmul.f32 %v9596_v36, %v4786_v51  ;;  %v3516_v51 = vpop.f32.mrf.mxu1 }
 0x99f   : > { %v5468_v42 = vmax.f32 %v5436_v25, 0.0  ;;  %v5127_v38 = vadd.f32 %v5095_v9, %v4931_v30 }
 0x9a0   : > { %v4981_v60 = vpop.permute.xlu1 %4980 }
 0x9a1   : > { %v5096_v18 = vmul.f32 %v9593_v39, %v4981_v60  ;;  %3700 = vadd.xlane.f32.xlu1 %v3699_v28  ;;  %7107 = vmatprep.mubr.msk.f32.mxu0 %vm1610_vm0, %v5468_v42 }
 0x9a2   : > { %7108 = vmatmul.mubr.msk.f32.gmra.mxu0 %vm1610_vm0, %v5469_v43 }
 0x9a3   : > { %v5128_v23 = vadd.f32 %v5096_v18, %v4932_v63 }
 0x9a5   : > { %v5324_v41 = vadd.f32 %v5292_v12, %v5128_v23  ;;  %v5173_v25 = vpop.permute.xlu1 %5172 }
 0x9a6   : > { %v5291_v15 = vmul.f32 %v9600_v17, %v5173_v25 }
 0x9a7   : > { %5208 = vperm.xlu0 %7441, %v9418_v4   ;;  %v5439_v28 = vadd.f32 %v9611_v26, %v5324_v41  ;;  %v3518_v41 = vpop.f32.mrf.mxu1 }
 0x9a8   : > { %v5323_v27 = vadd.f32 %v5291_v15, %v5127_v38 }
 0x9a9   : > { %v5471_v54 = vmax.f32 %v5439_v28, 0.0  ;;  %v3522_v15 = vpop.f32.mrf.mxu1 }
 0x9aa   : > { %v5438_v42 = vadd.f32 %v9611_v26, %v5323_v27 }
 0x9ab   : > { %7444 = vset.pattern.permute.xlu0 %v11152_v7  ;;  %v3524_v43 = vpop.f32.mrf.mxu1 }
 0x9ac   : > { %v5470_v52 = vmax.f32 %v5438_v42, 0.0  ;;  %4825 = vperm.xlu0 %7444, %v9421_v10  }
 0x9ae   : > { %7110 = vmatprep.mubr.msk.f32.mxu0 %vm1610_vm0, %v5470_v52 }
 0x9af   : > { %7111 = vmatmul.mubr.msk.f32.gmra.mxu0 %vm1610_vm0, %v5471_v54  ;;  %v9732_v54 = vadd.f32 %v3518_v41, %v9190_v61 }
 0x9b0   : > { %7445 = vset.pattern.permute.xlu0 %v11150_v6 }
 0x9b1   : > { %5008 = vperm.xlu0 %7445, %v9421_v10   ;;  %11173 = vst [vmem:[#allocation118_spill] sm:$0xff] %v9732_v54 }
 0x9b2   : > { %4820 = vperm.xlu1 %7436, %v9410_v40  }
 0x9b5   : > { %7447 = vset.pattern.permute.xlu0 %v11152_v7 }
 0x9b6   : > { %4840 = vperm.xlu0 %7447, %v9425_v46   ;;  %7437 = vset.pattern.permute.xlu1 %v11150_v6 }
 0x9b7   : > { %5004 = vperm.xlu1 %7437, %v9410_v40  }
 0x9ba   : > { %7449 = vset.pattern.permute.xlu0 %v11151_v56 }
 0x9bb   : > { %5216 = vperm.xlu0 %7449, %v9425_v46   ;;  %7438 = vset.pattern.permute.xlu1 %v11151_v56 }
 0x9bc   : > { %5200 = vperm.xlu1 %7438, %v9410_v40   ;;  %v9711_v40 = vadd.f32 %v3524_v43, %v9190_v61 }
 0x9be   : > { %11171 = vst [vmem:[#allocation116_spill] sm:$0xff] %v9711_v40  ;;  %v10984_v60 = vmax.f32 %v9711_v40, 0.0 }
 0x9bf   : > { %7453 = vset.pattern.permute.xlu0 %v11152_v7 }
 0x9c0   : > { %7440 = vset.pattern.permute.xlu1 %v11150_v6 }
 0x9c1   : > { %5000 = vperm.xlu1 %7440, %v9414_v34   ;;  %v9715_v34 = vadd.f32 %v3522_v15, %v9187_v57 }
 0x9c3   : > { %11172 = vst [vmem:[#allocation117_spill] sm:$0xff] %v9715_v34  ;;  %v10985_v63 = vmax.f32 %v9715_v34, 0.0 }
 0x9c5   : > { %7442 = vset.pattern.permute.xlu1 %v11152_v7  ;;  %v3708_v9 = vadd.f32 %v10984_v60, %v10985_v63  ;;  %v9737_v60 = vadd.f32 %v3516_v51, %v9187_v57 }
 0x9c6   : > { %4830 = vperm.xlu1 %7442, %v9418_v4  }
 0x9c7   : > { %v10993_v41 = vmax.f32 %v9737_v60, 0.0 }
 0x9ca   : > { %7443 = vset.pattern.permute.xlu1 %v11150_v6 }
 0x9cb   : > { %5012 = vperm.xlu1 %7443, %v9418_v4   ;;  %v4796_v4 = vpop.permute.xlu0 %4795 }
 0x9cc   : > { %v4933_v15 = vmul.f32 %v9596_v36, %v4796_v4 }
 0x9cf   : > { %7446 = vset.pattern.permute.xlu1 %v11151_v56 }
 0x9d0   : > { %5204 = vperm.xlu1 %7446, %v9421_v10   ;;  %v5181_v10 = vpop.permute.xlu0 %5180 }
 0x9d1   : > { %v5293_v63 = vmul.f32 %v9600_v17, %v5181_v10 }
 0x9d4   : > { %7448 = vset.pattern.permute.xlu1 %v11150_v6  ;;  %v9726_v30 = vpop.xlane.xlu0 %3697 }
 0x9d7   : > { %v9720_v18 = vpop.xlane.xlu1 %3694 }
 0x9d9   : > { %v5193_v38 = vpop.permute.xlu0 %5192 }
 0x9da   : > { %3709 = vadd.xlane.f32.xlu0 %v3708_v9 }
 0x9db   : > { %v4801_v12 = vpop.permute.xlu1 %4800 }
 0x9dc   : > { %v4934_v28 = vmul.f32 %v9596_v36, %v4801_v12  ;;  %v10991_v12 = vmax.f32 %v9732_v54, 0.0 }
 0x9de   : > { %v4806_v40 = vpop.permute.xlu0 %4805  ;;  %v3705_v51 = vadd.f32 %v10991_v12, %v10993_v41 }
 0x9df   : > { %v4989_v23 = vpop.permute.xlu1 %4988 }
 0x9e0   : > { %v5098_v27 = vmul.f32 %v9593_v39, %v4989_v23 }
 0x9e2   : > { %v5130_v43 = vadd.f32 %v5098_v27, %v4934_v28 }
 0x9e3   : > { %v4993_v10 = vpop.permute.xlu0 %4992 }
 0x9e4   : > { %v5185_v25 = vpop.permute.xlu1 %5184 }
 0x9e5   : > { %v5294_v42 = vmul.f32 %v9600_v17, %v5185_v25 }
 0x9e7   : > { %v5326_v23 = vadd.f32 %v5294_v42, %v5130_v43 }
 0x9e9   : > { %v4985_v52 = vpop.permute.xlu1 %4984  ;;  %v5441_v22 = vadd.f32 %v9611_v26, %v5326_v23 }
 0x9ea   : > { %v5097_v9 = vmul.f32 %v9593_v39, %v4985_v52  ;;  %v5099_v52 = vmul.f32 %v9593_v39, %v4993_v10 }
 0x9eb   : > { %v5473_v42 = vmax.f32 %v5441_v22, 0.0  ;;  %v4935_v22 = vmul.f32 %v9596_v36, %v4806_v40 }
 0x9ec   : > { %v5129_v24 = vadd.f32 %v5097_v9, %v4933_v15  ;;  %v5296_v15 = vmul.f32 %v9600_v17, %v5193_v38 }
 0x9ed   : > { %v5131_v23 = vadd.f32 %v5099_v52, %v4935_v22 }
 0x9ee   : > { %v5325_v25 = vadd.f32 %v5293_v63, %v5129_v24  ;;  %v4811_v34 = vpop.permute.xlu1 %4810 }
 0x9ef   : > { %v4936_v24 = vmul.f32 %v9596_v36, %v4811_v34 }
 0x9f0   : > { %v5440_v4 = vadd.f32 %v9611_v26, %v5325_v25  ;;  %4850 = vperm.xlu0 %7453, %v9432_v29  }
 0x9f2   : > { %v5472_v27 = vmax.f32 %v5440_v4, 0.0 }
 0x9f3   : > { %v4997_v28 = vpop.permute.xlu1 %4996 }
 0x9f4   : > { %v5100_v63 = vmul.f32 %v9593_v39, %v4997_v28  ;;  %7455 = vset.pattern.permute.xlu0 %v11151_v56  ;;  %3706 = vadd.xlane.f32.xlu1 %v3705_v51 }
 0x9f5   : > { %7113 = vmatprep.mubr.msk.f32.mxu0 %vm1610_vm0, %v5472_v27  ;;  %5224 = vperm.xlu0 %7455, %v9432_v29   ;;  %v9768_v27 = vpop.f32.mrf.mxu1 }
 0x9f6   : > { %v5132_v43 = vadd.f32 %v5100_v63, %v4936_v24  ;;  %7114 = vmatmul.mubr.msk.f32.gmra.mxu0 %vm1610_vm0, %v5473_v42 }
 0x9f7   : > { %v3530_v28 = vpop.f32.mrf.mxu1 }
 0x9f8   : > { %v5328_v9 = vadd.f32 %v5296_v15, %v5132_v43  ;;  %v5189_v34 = vpop.permute.xlu1 %5188 }
 0x9f9   : > { %v5295_v25 = vmul.f32 %v9600_v17, %v5189_v34  ;;  %7459 = vset.pattern.permute.xlu0 %v11152_v7  ;;  %v3534_v42 = vpop.f32.mrf.mxu1 }
 0x9fa   : > { %4860 = vperm.xlu0 %7459, %v9442_v19   ;;  %v5443_v51 = vadd.f32 %v9611_v26, %v5328_v9 }
 0x9fb   : > { %v5327_v4 = vadd.f32 %v5295_v25, %v5131_v23  ;;  %v3536_v24 = vpop.f32.mrf.mxu1  ;;  %v4816_v25 = vpop.permute.xlu0 %4815 }
 0x9fc   : > { %v5475_v40 = vmax.f32 %v5443_v51, 0.0  ;;  %v9777_v63 = vadd.f32 %v3536_v24, %v9190_v61 }
 0x9fd   : > { %v5442_v10 = vadd.f32 %v9611_v26, %v5327_v4 }
 0x9fe   : > { %7461 = vset.pattern.permute.xlu0 %v11151_v56  ;;  %11174 = vst [vmem:[#allocation119_spill] sm:$0xff] %v9777_v63  ;;  %v10990_v52 = vmax.f32 %v9777_v63, 0.0 }
 0x9ff   : > { %v5474_v38 = vmax.f32 %v5442_v10, 0.0  ;;  %5232 = vperm.xlu0 %7461, %v9442_v19   ;;  %v5197_v51 = vpop.permute.xlu0 %5196 }
 0xa01   : > { %7116 = vmatprep.mubr.msk.f32.mxu0 %vm1610_vm0, %v5474_v38 }
 0xa02   : > { %7117 = vmatmul.mubr.msk.f32.gmra.mxu0 %vm1610_vm0, %v5475_v40 }
 0xa03   : > { %7465 = vset.pattern.permute.xlu0 %v11152_v7 }
 0xa05   : > { %5020 = vperm.xlu1 %7448, %v9425_v46   ;;  %v9781_v46 = vadd.f32 %v3534_v42, %v9187_v57 }
 0xa07   : > { %11175 = vst [vmem:[#allocation120_spill] sm:$0xff] %v9781_v46  ;;  %v10992_v15 = vmax.f32 %v9781_v46, 0.0 }
 0xa09   : > { %7450 = vset.pattern.permute.xlu1 %v11152_v7  ;;  %v3714_v43 = vadd.f32 %v10990_v52, %v10992_v15 }
 0xa0a   : > { %4835 = vperm.xlu1 %7450, %v9429_v47  }
 0xa0e   : > { %7451 = vset.pattern.permute.xlu1 %v11150_v6 }
 0xa0f   : > { %5016 = vperm.xlu1 %7451, %v9429_v47  }
 0xa13   : > { %7452 = vset.pattern.permute.xlu1 %v11151_v56 }
 0xa14   : > { %5212 = vperm.xlu1 %7452, %v9429_v47   ;;  %v9795_v47 = vld [vmem:[%s8272_s29] ss:$0 sm:$0xff] }
 0xa18   : > { %7454 = vset.pattern.permute.xlu1 %v11150_v6 }
 0xa19   : > { %5028 = vperm.xlu1 %7454, %v9432_v29  }
 0xa1a   : > { %v9814_v38 = vpop.xlane.xlu0 %3703 }
 0xa1d   : > { %7456 = vset.pattern.permute.xlu1 %v11152_v7 }
 0xa1e   : > { %3715 = vadd.xlane.f32.xlu0 %v3714_v43  ;;  %4845 = vperm.xlu1 %7456, %v9436_v13  }
 0xa22   : > { %7457 = vset.pattern.permute.xlu1 %v11150_v6  ;;  %v7106_v29 = vpop.f32.mrf.mxu0  ;;  %v5209_v24 = vpop.permute.xlu0 %5208 }
 0xa23   : > { %v5681_v22 = vadd.f32 %v7106_v29, %v9795_v47  ;;  %5024 = vperm.xlu1 %7457, %v9436_v13  }
 0xa24   : > { %v5675_v9 = vpop.f32.mrf.mxu0 }
 0xa25   : > { %5836 = vst.msk [vmem:[%s9798_s22 + $0x8] sm:$0xff] %vm5834_vm3, %v5681_v22  ;;  %v5676_v34 = vadd.f32 %v9795_v47, %v5675_v9  ;;  %v4937_v9 = vmul.f32 %v9596_v36, %v4816_v25 }
 0xa27   : > { %5835 = vst.msk [vmem:[%s9798_s22] sm:$0xff] %vm5834_vm3, %v5676_v34  ;;  %7458 = vset.pattern.permute.xlu1 %v11151_v56  ;;  %v4826_v12 = vpop.permute.xlu0 %4825 }
 0xa28   : > { %5220 = vperm.xlu1 %7458, %v9436_v13  }
 0xa2a   : > { %v9810_v23 = vpop.xlane.xlu1 %3700 }
 0xa2c   : > { %7460 = vset.pattern.permute.xlu1 %v11150_v6 }
 0xa2e   : > { %v4821_v4 = vpop.permute.xlu1 %4820 }
 0xa2f   : > { %v4938_v13 = vmul.f32 %v9596_v36, %v4821_v4  ;;  %v9827_v4 = vadd.f32 %v3530_v28, %v9190_v61 }
 0xa31   : > { %11176 = vst [vmem:[#allocation121_spill] sm:$0xff] %v9827_v4 }
 0xa32   : > { %v5005_v10 = vpop.permute.xlu1 %5004 }
 0xa33   : > { %v5102_v42 = vmul.f32 %v9593_v39, %v5005_v10  ;;  %v5297_v10 = vmul.f32 %v9600_v17, %v5197_v51  ;;  %v5009_v51 = vpop.permute.xlu0 %5008 }
 0xa34   : > { %4870 = vperm.xlu0 %7465, %v9450_v44  }
 0xa35   : > { %v5134_v29 = vadd.f32 %v5102_v42, %v4938_v13  ;;  %v9835_v42 = vadd.f32 %v9768_v27, %v9187_v57  ;;  %v9845_v27 = vpop.f32.mrf.mxu1 }
 0xa37   : > { %v5201_v40 = vpop.permute.xlu1 %5200 }
 0xa38   : > { %7467 = vset.pattern.permute.xlu0 %v11151_v56  ;;  %v5298_v43 = vmul.f32 %v9600_v17, %v5201_v40 }
 0xa39   : > { %5240 = vperm.xlu0 %7467, %v9450_v44  }
 0xa3a   : > { %v5330_v52 = vadd.f32 %v5298_v43, %v5134_v29 }
 0xa3c   : > { %v5001_v22 = vpop.permute.xlu1 %5000  ;;  %v5445_v40 = vadd.f32 %v9611_v26, %v5330_v52 }
 0xa3d   : > { %v5101_v34 = vmul.f32 %v9593_v39, %v5001_v22  ;;  %7471 = vset.pattern.permute.xlu0 %v11152_v7  ;;  %v5103_v22 = vmul.f32 %v9593_v39, %v5009_v51  ;;  %v9854_v51 = vpop.f32.mrf.mxu1 }
 0xa3e   : > { %4880 = vperm.xlu0 %7471, %v9456_v48   ;;  %v5477_v43 = vmax.f32 %v5445_v40, 0.0 }
 0xa3f   : > { %v5133_v15 = vadd.f32 %v5101_v34, %v4937_v9  ;;  %v5300_v9 = vmul.f32 %v9600_v17, %v5209_v24 }
 0xa41   : > { %v5329_v41 = vadd.f32 %v5297_v10, %v5133_v15  ;;  %v4831_v63 = vpop.permute.xlu1 %4830  ;;  %v10998_v15 = vmax.f32 %v9827_v4, 0.0  ;;  %v4939_v10 = vmul.f32 %v9596_v36, %v4826_v12 }
 0xa42   : > { %7473 = vset.pattern.permute.xlu0 %v11151_v56  ;;  %v4940_v28 = vmul.f32 %v9596_v36, %v4831_v63 }
 0xa43   : > { %v5444_v25 = vadd.f32 %v9611_v26, %v5329_v41  ;;  %5248 = vperm.xlu0 %7473, %v9456_v48   ;;  %v11000_v41 = vmax.f32 %v9835_v42, 0.0 }
 0xa45   : > { %v5476_v13 = vmax.f32 %v5444_v25, 0.0  ;;  %v3711_v63 = vadd.f32 %v10998_v15, %v11000_v41 }
 0xa46   : > { %v5013_v29 = vpop.permute.xlu1 %5012 }
 0xa47   : > { %v5104_v52 = vmul.f32 %v9593_v39, %v5013_v29  ;;  %7119 = vmatprep.mubr.msk.f32.mxu0 %vm1610_vm0, %v5476_v13  ;;  %7477 = vset.pattern.permute.xlu0 %v11152_v7  ;;  %v5135_v13 = vadd.f32 %v5103_v22, %v4939_v10 }
 0xa48   : > { %7120 = vmatmul.mubr.msk.f32.gmra.mxu0 %vm1610_vm0, %v5477_v43 }
 0xa49   : > { %v5136_v34 = vadd.f32 %v5104_v52, %v4940_v28  ;;  %v3546_v28 = vpop.f32.mrf.mxu1 }
 0xa4b   : > { %v5332_v40 = vadd.f32 %v5300_v9, %v5136_v34  ;;  %v5205_v25 = vpop.permute.xlu1 %5204  ;;  %v3548_v12 = vpop.f32.mrf.mxu1  ;;  %v9864_v9 = vadd.f32 %v3546_v28, %v9187_v57 }
 0xa4c   : > { %v5299_v29 = vmul.f32 %v9600_v17, %v5205_v25  ;;  %3712 = vadd.xlane.f32.xlu1 %v3711_v63  ;;  %v9861_v22 = vadd.f32 %v3548_v12, %v9190_v61 }
 0xa4d   : > { %v5447_v54 = vadd.f32 %v9611_v26, %v5332_v40  ;;  %v10999_v63 = vmax.f32 %v9864_v9, 0.0 }
 0xa4e   : > { %v5331_v43 = vadd.f32 %v5299_v29, %v5135_v13  ;;  %11177 = vst [vmem:[#allocation122_spill] sm:$0xff] %v9861_v22  ;;  %v10997_v34 = vmax.f32 %v9861_v22, 0.0 }
 0xa4f   : > { %v5479_v46 = vmax.f32 %v5447_v54, 0.0 }
 0xa50   : > { %v5446_v24 = vadd.f32 %v9611_v26, %v5331_v43  ;;  %v3720_v54 = vadd.f32 %v10997_v34, %v10999_v63 }
 0xa52   : > { %v5478_v52 = vmax.f32 %v5446_v24, 0.0  ;;  %v4841_v24 = vpop.permute.xlu0 %4840 }
 0xa53   : > { %v4942_v12 = vmul.f32 %v9596_v36, %v4841_v24 }
 0xa54   : > { %7122 = vmatprep.mubr.msk.f32.mxu0 %vm1610_vm0, %v5478_v52 }
 0xa55   : > { %7123 = vmatmul.mubr.msk.f32.gmra.mxu0 %vm1610_vm0, %v5479_v46 }
 0xa5d   : > { %5036 = vperm.xlu1 %7460, %v9442_v19  }
 0xa61   : > { %7462 = vset.pattern.permute.xlu1 %v11152_v7 }
 0xa62   : > { %3721 = vadd.xlane.f32.xlu0 %v3720_v54  ;;  %4855 = vperm.xlu1 %7462, %v9446_v3   ;;  %v7109_v46 = vpop.f32.mrf.mxu0  ;;  %v5217_v54 = vpop.permute.xlu0 %5216 }
 0xa63   : > { %v5691_v10 = vadd.f32 %v7109_v46, %v9795_v47 }
 0xa64   : > { %v5685_v40 = vpop.f32.mrf.mxu0 }
 0xa65   : > { %5838 = vst.msk [vmem:[%s9798_s22 + $0x18] sm:$0xff] %vm5834_vm3, %v5691_v10  ;;  %v5686_v19 = vadd.f32 %v9795_v47, %v5685_v40  ;;  %v9913_v40 = vpop.f32.mrf.mxu1 }
 0xa66   : > { %7463 = vset.pattern.permute.xlu1 %v11150_v6 }
 0xa67   : > { %5837 = vst.msk [vmem:[%s9798_s22 + $0x10] sm:$0xff] %vm5834_vm3, %v5686_v19  ;;  %5032 = vperm.xlu1 %7463, %v9446_v3   ;;  %v5302_v19 = vmul.f32 %v9600_v17, %v5217_v54  ;;  %v9918_v34 = vpop.f32.mrf.mxu1 }
 0xa69   : > { %v3558_v63 = vpop.f32.mrf.mxu1 }
 0xa6b   : > { %7464 = vset.pattern.permute.xlu1 %v11151_v56 }
 0xa6c   : > { %5228 = vperm.xlu1 %7464, %v9446_v3  }
 0xa6f   : > { %v7112_v25 = vpop.f32.mrf.mxu0 }
 0xa70   : > { %v5701_v13 = vadd.f32 %v7112_v25, %v9795_v47  ;;  %7466 = vset.pattern.permute.xlu1 %v11150_v6 }
 0xa71   : > { %5044 = vperm.xlu1 %7466, %v9450_v44   ;;  %v5695_v29 = vpop.f32.mrf.mxu0 }
 0xa72   : > { %5840 = vst.msk [vmem:[%s9798_s22 + $0x28] sm:$0xff] %vm5834_vm3, %v5701_v13  ;;  %v5696_v43 = vadd.f32 %v9795_v47, %v5695_v29 }
 0xa74   : > { %5839 = vst.msk [vmem:[%s9798_s22 + $0x20] sm:$0xff] %vm5834_vm3, %v5696_v43 }
 0xa75   : > { %7468 = vset.pattern.permute.xlu1 %v11152_v7 }
 0xa76   : > { %4865 = vperm.xlu1 %7468, %v9453_v5  }
 0xa78   : > { %4890 = vperm.xlu0 %7477, %v9462_v35  }
 0xa7a   : > { %7469 = vset.pattern.permute.xlu1 %v11150_v6 }
 0xa7b   : > { %5040 = vperm.xlu1 %7469, %v9453_v5  }
 0xa7c   : > { %7479 = vset.pattern.permute.xlu0 %v11151_v56 }
 0xa7d   : > { %5256 = vperm.xlu0 %7479, %v9462_v35   ;;  %v9900_v3 = vpop.xlane.xlu1 %3706 }
 0xa7f   : > { %7470 = vset.pattern.permute.xlu1 %v11151_v56 }
 0xa80   : > { %5236 = vperm.xlu1 %7470, %v9453_v5  }
 0xa81   : > { %7483 = vset.pattern.permute.xlu0 %v11152_v7  ;;  %v5021_v44 = vpop.permute.xlu1 %5020 }
 0xa82   : > { %4900 = vperm.xlu0 %7483, %v9474_v53   ;;  %v5106_v52 = vmul.f32 %v9593_v39, %v5021_v44 }
 0xa84   : > { %7472 = vset.pattern.permute.xlu1 %v11150_v6  ;;  %v5138_v5 = vadd.f32 %v5106_v52, %v4942_v12  ;;  %v9921_v12 = vpop.xlane.xlu0 %3709 }
 0xa85   : > { %v4836_v28 = vpop.permute.xlu1 %4835 }
 0xa86   : > { %7485 = vset.pattern.permute.xlu0 %v11151_v56  ;;  %v4941_v25 = vmul.f32 %v9596_v36, %v4836_v28  ;;  %v5334_v13 = vadd.f32 %v5302_v19, %v5138_v5  ;;  %v3560_v28 = vpop.f32.mrf.mxu1 }
 0xa87   : > { %5264 = vperm.xlu0 %7485, %v9474_v53  }
 0xa88   : > { %v5449_v52 = vadd.f32 %v9611_v26, %v5334_v13  ;;  %v4851_v22 = vpop.permute.xlu0 %4850  ;;  %v9936_v13 = vadd.f32 %v3560_v28, %v9190_v61 }
 0xa8a   : > { %v5017_v46 = vpop.permute.xlu1 %5016  ;;  %v5481_v54 = vmax.f32 %v5449_v52, 0.0  ;;  %11179 = vst [vmem:[#allocation124_spill] sm:$0xff] %v9936_v13 }
 0xa8b   : > { %7489 = vset.pattern.permute.xlu0 %v11152_v7  ;;  %v5105_v10 = vmul.f32 %v9593_v39, %v5017_v46 }
 0xa8d   : > { %v5137_v43 = vadd.f32 %v5105_v10, %v4941_v25  ;;  %v9928_v10 = vadd.f32 %v9854_v51, %v9190_v61  ;;  %v9933_v25 = vadd.f32 %v9845_v27, %v9187_v57 }
 0xa8f   : > { %v5213_v29 = vpop.permute.xlu1 %5212  ;;  %11178 = vst [vmem:[#allocation123_spill] sm:$0xff] %v9928_v10  ;;  %v11004_v52 = vmax.f32 %v9933_v25, 0.0 }
 0xa90   : > { %v5301_v44 = vmul.f32 %v9600_v17, %v5213_v29  ;;  %v4944_v29 = vmul.f32 %v9596_v36, %v4851_v22 }
 0xa92   : > { %v5333_v24 = vadd.f32 %v5301_v44, %v5137_v43  ;;  %v9941_v43 = vadd.f32 %v3558_v63, %v9187_v57  ;;  %v5225_v44 = vpop.permute.xlu0 %5224 }
 0xa94   : > { %v5448_v46 = vadd.f32 %v9611_v26, %v5333_v24  ;;  %v5029_v15 = vpop.permute.xlu1 %5028  ;;  %11180 = vst [vmem:[#allocation125_spill] sm:$0xff] %v9941_v43 }
 0xa95   : > { %v5108_v19 = vmul.f32 %v9593_v39, %v5029_v15  ;;  %v11005_v15 = vmax.f32 %v9936_v13, 0.0 }
 0xa96   : > { %v5480_v41 = vmax.f32 %v5448_v46, 0.0  ;;  %v5304_v46 = vmul.f32 %v9600_v17, %v5225_v44 }
 0xa97   : > { %v5140_v51 = vadd.f32 %v5108_v19, %v4944_v29 }
 0xa98   : > { %7125 = vmatprep.mubr.msk.f32.mxu0 %vm1610_vm0, %v5480_v41  ;;  %v11003_v41 = vmax.f32 %v9928_v10, 0.0 }
 0xa99   : > { %7126 = vmatmul.mubr.msk.f32.gmra.mxu0 %vm1610_vm0, %v5481_v54  ;;  %v4846_v5 = vpop.permute.xlu1 %4845  ;;  %v11006_v54 = vmax.f32 %v9941_v43, 0.0  ;;  %v5336_v28 = vadd.f32 %v5304_v46, %v5140_v51 }
 0xa9a   : > { %v3717_v22 = vadd.f32 %v11003_v41, %v11004_v52  ;;  %v4943_v63 = vmul.f32 %v9596_v36, %v4846_v5 }
 0xa9b   : > { %v3726_v19 = vadd.f32 %v11005_v15, %v11006_v54  ;;  %v5451_v41 = vadd.f32 %v9611_v26, %v5336_v28  ;;  %v9988_v28 = vpop.f32.mrf.mxu1 }
 0xa9d   : > { %v5483_v51 = vmax.f32 %v5451_v41, 0.0 }
 0xa9e   : > { %v5025_v24 = vpop.permute.xlu1 %5024 }
 0xa9f   : > { %v5107_v27 = vmul.f32 %v9593_v39, %v5025_v24 }
 0xaa1   : > { %v5139_v29 = vadd.f32 %v5107_v27, %v4943_v63 }
 0xaa3   : > { %v5221_v4 = vpop.permute.xlu1 %5220 }
 0xaa4   : > { %v5303_v44 = vmul.f32 %v9600_v17, %v5221_v4  ;;  %3718 = vadd.xlane.f32.xlu1 %v3717_v22 }
 0xaa6   : > { %v5335_v24 = vadd.f32 %v5303_v44, %v5139_v29  ;;  %3727 = vadd.xlane.f32.xlu0 %v3726_v19 }
 0xaa8   : > { %v5450_v52 = vadd.f32 %v9611_v26, %v5335_v24 }
 0xaaa   : > { %v5482_v5 = vmax.f32 %v5450_v52, 0.0 }
 0xaac   : > { %7128 = vmatprep.mubr.msk.f32.mxu0 %vm1610_vm0, %v5482_v5  ;;  %v4861_v5 = vpop.permute.xlu0 %4860 }
 0xaad   : > { %7129 = vmatmul.mubr.msk.f32.gmra.mxu0 %vm1610_vm0, %v5483_v51 }
 0xab5   : > { %5052 = vperm.xlu1 %7472, %v9456_v48  }
 0xab6   : > { %v7115_v46 = vpop.f32.mrf.mxu0 }
 0xab7   : > { %v5711_v27 = vadd.f32 %v7115_v46, %v9795_v47 }
 0xab8   : > { %v5705_v4 = vpop.f32.mrf.mxu0 }
 0xab9   : > { %5842 = vst.msk [vmem:[%s9798_s22 + $0x38] sm:$0xff] %vm5834_vm3, %v5711_v27  ;;  %v5706_v22 = vadd.f32 %v9795_v47, %v5705_v4  ;;  %7474 = vset.pattern.permute.xlu1 %v11152_v7 }
 0xaba   : > { %4875 = vperm.xlu1 %7474, %v9459_v20  }
 0xabb   : > { %5841 = vst.msk [vmem:[%s9798_s22 + $0x30] sm:$0xff] %vm5834_vm3, %v5706_v22 }
 0xabc   : > { %4910 = vperm.xlu0 %7489, %v9482_v21  }
 0xabe   : > { %7475 = vset.pattern.permute.xlu1 %v11150_v6 }
 0xabf   : > { %5048 = vperm.xlu1 %7475, %v9459_v20  }
 0xac0   : > { %7491 = vset.pattern.permute.xlu0 %v11151_v56 }
 0xac1   : > { %5272 = vperm.xlu0 %7491, %v9482_v21  }
 0xac2   : > { %v7118_v48 = vpop.f32.mrf.mxu0 }
 0xac3   : > { %v5721_v41 = vadd.f32 %v7118_v48, %v9795_v47  ;;  %7476 = vset.pattern.permute.xlu1 %v11151_v56  ;;  %v4946_v48 = vmul.f32 %v9596_v36, %v4861_v5 }
 0xac4   : > { %5244 = vperm.xlu1 %7476, %v9459_v20   ;;  %v5715_v52 = vpop.f32.mrf.mxu0  ;;  %v9992_v20 = vpop.f32.mrf.mxu1 }
 0xac5   : > { %5844 = vst.msk [vmem:[%s9798_s22 + $0x48] sm:$0xff] %vm5834_vm3, %v5721_v41  ;;  %v5716_v63 = vadd.f32 %v9795_v47, %v5715_v52  ;;  %7495 = vset.pattern.permute.xlu0 %v11152_v7 }
 0xac6   : > { %4920 = vperm.xlu0 %7495, %v9495_v1   ;;  %v3570_v19 = vpop.f32.mrf.mxu1 }
 0xac7   : > { %5843 = vst.msk [vmem:[%s9798_s22 + $0x40] sm:$0xff] %vm5834_vm3, %v5716_v63  ;;  %v10005_v51 = vadd.f32 %v3570_v19, %v9187_v57 }
 0xac8   : > { %7478 = vset.pattern.permute.xlu1 %v11150_v6  ;;  %v3572_v44 = vpop.f32.mrf.mxu1 }
 0xac9   : > { %5060 = vperm.xlu1 %7478, %v9462_v35   ;;  %v10001_v24 = vadd.f32 %v3572_v44, %v9190_v61  ;;  %11182 = vst [vmem:[#allocation127_spill] sm:$0xff] %v10005_v51  ;;  %v11012_v22 = vmax.f32 %v10005_v51, 0.0 }
 0xacb   : > { %11181 = vst [vmem:[#allocation126_spill] sm:$0xff] %v10001_v24  ;;  %v11011_v27 = vmax.f32 %v10001_v24, 0.0 }
 0xacd   : > { %7480 = vset.pattern.permute.xlu1 %v11152_v7  ;;  %v3732_v52 = vadd.f32 %v11011_v27, %v11012_v22 }
 0xace   : > { %4885 = vperm.xlu1 %7480, %v9468_v31  }
 0xad2   : > { %7481 = vset.pattern.permute.xlu1 %v11150_v6 }
 0xad3   : > { %5056 = vperm.xlu1 %7481, %v9468_v31  }
 0xad5   : > { %v9996_v29 = vpop.xlane.xlu1 %3712 }
 0xad7   : > { %7482 = vset.pattern.permute.xlu1 %v11151_v56 }
 0xad8   : > { %5252 = vperm.xlu1 %7482, %v9468_v31   ;;  %v5233_v31 = vpop.permute.xlu0 %5232 }
 0xad9   : > { %v5037_v35 = vpop.permute.xlu1 %5036  ;;  %v5306_v44 = vmul.f32 %v9600_v17, %v5233_v31 }
 0xada   : > { %v5110_v4 = vmul.f32 %v9593_v39, %v5037_v35 }
 0xadc   : > { %7484 = vset.pattern.permute.xlu1 %v11150_v6  ;;  %v5142_v63 = vadd.f32 %v5110_v4, %v4946_v48  ;;  %v10020_v51 = vpop.xlane.xlu0 %3715 }
 0xadd   : > { %v4856_v46 = vpop.permute.xlu1 %4855 }
 0xade   : > { %v4945_v15 = vmul.f32 %v9596_v36, %v4856_v46  ;;  %v5338_v35 = vadd.f32 %v5306_v44, %v5142_v63 }
 0xae0   : > { %v5453_v43 = vadd.f32 %v9611_v26, %v5338_v35  ;;  %v4871_v22 = vpop.permute.xlu0 %4870 }
 0xae2   : > { %v5033_v41 = vpop.permute.xlu1 %5032 }
 0xae3   : > { %v5109_v19 = vmul.f32 %v9593_v39, %v5033_v41  ;;  %v5485_v41 = vmax.f32 %v5453_v43, 0.0 }
 0xae5   : > { %3733 = vadd.xlane.f32.xlu0 %v3732_v52  ;;  %v5141_v13 = vadd.f32 %v5109_v19, %v4945_v15  ;;  %v10027_v15 = vadd.f32 %v9918_v34, %v9190_v61 }
 0xae7   : > { %v5229_v54 = vpop.permute.xlu1 %5228  ;;  %11183 = vst [vmem:[#allocation128_spill] sm:$0xff] %v10027_v15  ;;  %v11013_v43 = vmax.f32 %v10027_v15, 0.0 }
 0xae8   : > { %v5305_v5 = vmul.f32 %v9600_v17, %v5229_v54  ;;  %v10032_v54 = vadd.f32 %v9913_v40, %v9187_v57 }
 0xaea   : > { %v5337_v10 = vadd.f32 %v5305_v5, %v5141_v13  ;;  %v11014_v63 = vmax.f32 %v10032_v54, 0.0 }
 0xaec   : > { %v5452_v27 = vadd.f32 %v9611_v26, %v5337_v10  ;;  %v5045_v4 = vpop.permute.xlu1 %5044  ;;  %v4948_v10 = vmul.f32 %v9596_v36, %v4871_v22  ;;  %v3723_v44 = vadd.f32 %v11013_v43, %v11014_v63 }
 0xaed   : > { %v5112_v13 = vmul.f32 %v9593_v39, %v5045_v4 }
 0xaee   : > { %v5484_v48 = vmax.f32 %v5452_v27, 0.0  ;;  %v5241_v27 = vpop.permute.xlu0 %5240 }
 0xaef   : > { %v5144_v52 = vadd.f32 %v5112_v13, %v4948_v10  ;;  %v5308_v34 = vmul.f32 %v9600_v17, %v5241_v27 }
 0xaf0   : > { %7131 = vmatprep.mubr.msk.f32.mxu0 %vm1610_vm0, %v5484_v48 }
 0xaf1   : > { %7132 = vmatmul.mubr.msk.f32.gmra.mxu0 %vm1610_vm0, %v5485_v41  ;;  %v4866_v46 = vpop.permute.xlu1 %4865  ;;  %v5340_v35 = vadd.f32 %v5308_v34, %v5144_v52 }
 0xaf2   : > { %v4947_v40 = vmul.f32 %v9596_v36, %v4866_v46 }
 0xaf3   : > { %v5455_v41 = vadd.f32 %v9611_v26, %v5340_v35 }
 0xaf5   : > { %v5487_v27 = vmax.f32 %v5455_v41, 0.0 }
 0xaf6   : > { %v5041_v31 = vpop.permute.xlu1 %5040 }
 0xaf7   : > { %v5111_v19 = vmul.f32 %v9593_v39, %v5041_v31 }
 0xaf9   : > { %v5143_v5 = vadd.f32 %v5111_v19, %v4947_v40  ;;  %v10057_v19 = vpop.eup %7501 }
 0xafa   : > { %v10066_v33 = vmul.f32 %v10057_v19, %v11184_v0  ;;  %v10068_v34 = vpop.eup %7503 }
 0xafb   : > { %v5237_v22 = vpop.permute.xlu1 %5236  ;;  %v10079_v55 = vpop.eup %7505 }
 0xafc   : > { %v5307_v4 = vmul.f32 %v9600_v17, %v5237_v22  ;;  %3724 = vadd.xlane.f32.xlu1 %v3723_v44  ;;  %11185 = vst [vmem:[#allocation129_spill] sm:$0xff] %v10066_v33  ;;  %v10092_v35 = vmul.f32 %v10079_v55, %v11188_v59  ;;  %v10094_v22 = vpop.eup %7507 }
 0xafd   : > { %v10107_v2 = vpop.eup %7509 }
 0xafe   : > { %v5339_v48 = vadd.f32 %v5307_v4, %v5143_v5  ;;  %11189 = vst [vmem:[#allocation131_spill] sm:$0xff] %v10092_v35  ;;  %v10105_v5 = vmul.f32 %v10094_v22, %v11190_v8  ;;  %v11192_v4 = vld [vmem:[#allocation101_spill] sm:$0xff]  ;;  %v10117_v50 = vpop.eup %7511 }
 0xaff   : > { %7517 = vrcp.f32 %v11192_v4  ;;  %v11209_v4 = vld [vmem:[#allocation105_spill] sm:$0xff] }
 0xb00   : > { %v5454_v13 = vadd.f32 %v9611_v26, %v5339_v48  ;;  %11191 = vst [vmem:[#allocation132_spill] sm:$0xff] %v10105_v5  ;;  %v11193_v48 = vld [vmem:[#allocation71_spill] sm:$0xff]  ;;  %7519 = vrcp.f32 %v11196_v11 }
 0xb01   : > { %v11194_v41 = vmax.f32 %v11193_v48, 0.0  ;;  %v11210_v48 = vld [vmem:[#allocation79_spill] sm:$0xff] }
 0xb02   : > { %v5486_v10 = vmax.f32 %v5454_v13, 0.0 }
 0xb03   : > { %v10115_v13 = vmul.f32 %v10107_v2, %v11194_v41  ;;  %v11211_v41 = vmax.f32 %v11210_v48, 0.0  ;;  %v11217_v48 = vld [vmem:[#allocation108_spill] sm:$0xff] }
 0xb04   : > { %7134 = vmatprep.mubr.msk.f32.mxu0 %vm1610_vm0, %v5486_v10 }
 0xb05   : > { %7135 = vmatmul.mubr.msk.f32.gmra.mxu0 %vm1610_vm0, %v5487_v27  ;;  %11195 = vst [vmem:[#allocation101_spill] sm:$0xff] %v10115_v13 }
 0xb08   : > { %v7121_v46 = vpop.f32.mrf.mxu0 }
 0xb09   : > { %v5731_v31 = vadd.f32 %v7121_v46, %v9795_v47  ;;  %v10127_v46 = vpop.eup %7513 }
 0xb0a   : > { %v5725_v52 = vpop.f32.mrf.mxu0 }
 0xb0b   : > { %5846 = vst.msk [vmem:[%s9798_s22 + $0x58] sm:$0xff] %vm5834_vm3, %v5731_v31  ;;  %v5726_v16 = vadd.f32 %v9795_v47, %v5725_v52  ;;  %v11200_v31 = vld [vmem:[#allocation96_spill] sm:$0xff]  ;;  %v11201_v52 = vld [vmem:[#allocation102_spill] sm:$0xff] }
 0xb0c   : > { %7521 = vrcp.f32 %v11201_v52  ;;  %v11213_v52 = vld [vmem:[#allocation110_spill] sm:$0xff] }
 0xb0d   : > { %5845 = vst.msk [vmem:[%s9798_s22 + $0x50] sm:$0xff] %vm5834_vm3, %v5726_v16  ;;  %5068 = vperm.xlu1 %7484, %v9474_v53   ;;  %v11186_v53 = vmax.f32 %v9204_v58, 0.0 }
 0xb0f   : > { %v10077_v62 = vmul.f32 %v10068_v34, %v11186_v53  ;;  %v10138_v53 = vpop.eup %7515 }
 0xb10   : > { %v10149_v59 = vpop.eup %7517 }
 0xb11   : > { %7486 = vset.pattern.permute.xlu1 %v11152_v7  ;;  %11187 = vst [vmem:[#allocation130_spill] sm:$0xff] %v10077_v62  ;;  %v10160_v11 = vmul.f32 %v10149_v59, %v11211_v41  ;;  %v11218_v41 = vld [vmem:[#allocation83_spill] sm:$0xff] }
 0xb12   : > { %3959 = vxpose.xlu0.b32.start [1/16] %v10066_v33, 128  ;;  %4895 = vperm.xlu1 %7486, %v9478_v49   ;;  %v11219_v43 = vmax.f32 %v11218_v41, 0.0 }
 0xb13   : > { %11212 = vst [vmem:[#allocation96_spill] sm:$0xff] %v10160_v11 }
 0xb15   : > { %v7124_v37 = vpop.f32.mrf.mxu0 }
 0xb16   : > { %v5741_v44 = vadd.f32 %v7124_v37, %v9795_v47  ;;  %3960 = vxpose.xlu0.b32.cont [2/16] %v10077_v62, 128  ;;  %7487 = vset.pattern.permute.xlu1 %v11150_v6  ;;  %v11205_v37 = vld [vmem:[#allocation107_spill] sm:$0xff] }
 0xb17   : > { %5064 = vperm.xlu1 %7487, %v9478_v49   ;;  %v5735_v40 = vpop.f32.mrf.mxu0  ;;  %7523 = vrcp.f32 %v11205_v37 }
 0xb18   : > { %5848 = vst.msk [vmem:[%s9798_s22 + $0x68] sm:$0xff] %vm5834_vm3, %v5741_v44  ;;  %v5736_v58 = vadd.f32 %v9795_v47, %v5735_v40  ;;  %v11206_v44 = vld [vmem:[#allocation77_spill] sm:$0xff]  ;;  %7525 = vrcp.f32 %v11209_v4 }
 0xb19   : > { %v11207_v40 = vmax.f32 %v11206_v44, 0.0  ;;  %7527 = vrcp.f32 %v11213_v52 }
 0xb1a   : > { %5847 = vst.msk [vmem:[%s9798_s22 + $0x60] sm:$0xff] %vm5834_vm3, %v5736_v58  ;;  %3961 = vxpose.xlu0.b32.cont [3/16] %v10092_v35, 128  ;;  %7529 = vrcp.f32 %v11217_v48 }
 0xb1b   : > { %7488 = vset.pattern.permute.xlu1 %v11151_v56  ;;  %v10147_v58 = vmul.f32 %v10138_v53, %v11207_v40 }
 0xb1c   : > { %5260 = vperm.xlu1 %7488, %v9478_v49   ;;  %v11197_v49 = vld [vmem:[#allocation73_spill] sm:$0xff] }
 0xb1d   : > { %v11198_v10 = vmax.f32 %v11197_v49, 0.0  ;;  %11208 = vst [vmem:[#allocation73_spill] sm:$0xff] %v10147_v58  ;;  %v10162_v49 = vpop.eup %7519 }
 0xb1e   : > { %3962 = vxpose.xlu0.b32.cont [4/16] %v10105_v5, 128 }
 0xb1f   : > { %v10125_v27 = vmul.f32 %v10117_v50, %v11198_v10 }
 0xb20   : > { %7490 = vset.pattern.permute.xlu1 %v11150_v6 }
 0xb21   : > { %5076 = vperm.xlu1 %7490, %v9482_v21   ;;  %11199 = vst [vmem:[#allocation71_spill] sm:$0xff] %v10125_v27  ;;  %v11202_v21 = vld [vmem:[#allocation75_spill] sm:$0xff] }
 0xb22   : > { %3963 = vxpose.xlu0.b32.cont [5/16] %v10115_v13, 128  ;;  %v11203_v16 = vmax.f32 %v11202_v21, 0.0  ;;  %v4881_v21 = vpop.permute.xlu0 %4880 }
 0xb24   : > { %v10136_v0 = vmul.f32 %v10127_v46, %v11203_v16  ;;  %v11214_v16 = vld [vmem:[#allocation81_spill] sm:$0xff] }
 0xb25   : > { %7492 = vset.pattern.permute.xlu1 %v11152_v7  ;;  %v11215_v37 = vmax.f32 %v11214_v16, 0.0 }
 0xb26   : > { %3964 = vxpose.xlu0.b32.cont [6/16] %v10125_v27, 128  ;;  %4905 = vperm.xlu1 %7492, %v11200_v31   ;;  %11204 = vst [vmem:[#allocation103_spill] sm:$0xff] %v10136_v0  ;;  %v5249_v63 = vpop.permute.xlu0 %5248 }
 0xb27   : > { %v10169_v44 = vmul.f32 %v10162_v49, %v11215_v37  ;;  %v4950_v37 = vmul.f32 %v9596_v36, %v4881_v21  ;;  %v5310_v27 = vmul.f32 %v9600_v17, %v5249_v63 }
 0xb29   : > { %11216 = vst [vmem:[#allocation102_spill] sm:$0xff] %v10169_v44 }
 0xb2a   : > { %3965 = vxpose.xlu0.b32.cont [7/16] %v10136_v0, 128  ;;  %7493 = vset.pattern.permute.xlu1 %v11150_v6  ;;  %v11221_v0 = vld [vmem:[#allocation112_spill] sm:$0xff] }
 0xb2b   : > { %5072 = vperm.xlu1 %7493, %v11200_v31   ;;  %7531 = vrcp.f32 %v11221_v0 }
 0xb2c   : > { %7533 = vrcp.f32 %v9639_v45 }
 0xb2d   : > { %v10151_v8 = vpop.xlane.xlu1 %3718  ;;  %7535 = vrcp.f32 %v9650_v14  ;;  %v11231_v14 = vld [vmem:[#allocation91_spill] sm:$0xff] }
 0xb2e   : > { %3966 = vxpose.xlu0.b32.cont [8/16] %v10147_v58, 128  ;;  %7537 = vrcp.f32 %v9720_v18 }
 0xb2f   : > { %7494 = vset.pattern.permute.xlu1 %v11151_v56  ;;  %7539 = vrcp.f32 %v9726_v30 }
 0xb30   : > { %5268 = vperm.xlu1 %7494, %v11200_v31   ;;  %v10172_v31 = vpop.eup %7521  ;;  %7541 = vrcp.f32 %v9810_v23 }
 0xb31   : > { %v5053_v10 = vpop.permute.xlu1 %5052  ;;  %v10180_v52 = vmul.f32 %v10172_v31, %v11219_v43  ;;  %v10182_v16 = vpop.eup %7523  ;;  %7543 = vrcp.f32 %v9814_v38 }
 0xb32   : > { %3967 = vxpose.xlu0.b32.cont [9/16] %v10160_v11, 128  ;;  %v5114_v4 = vmul.f32 %v9593_v39, %v5053_v10  ;;  %v10193_v43 = vpop.eup %7525  ;;  %7545 = vrcp.f32 %v9900_v3 }
 0xb33   : > { %11220 = vst [vmem:[#allocation75_spill] sm:$0xff] %v10180_v52  ;;  %7547 = vrcp.f32 %v9921_v12  ;;  %v11246_v12 = vmax.f32 %v9665_v32, 0.0  ;;  %v11249_v32 = vmax.f32 %v9737_v60, 0.0 }
 0xb34   : > { %7496 = vset.pattern.permute.xlu1 %v11150_v6  ;;  %v5146_v58 = vadd.f32 %v5114_v4, %v4950_v37  ;;  %v11225_v4 = vld [vmem:[#allocation87_spill] sm:$0xff]  ;;  %7549 = vrcp.f32 %v9996_v29 }
 0xb35   : > { %v4876_v40 = vpop.permute.xlu1 %4875  ;;  %7551 = vrcp.f32 %v10020_v51 }
 0xb36   : > { %3968 = vxpose.xlu0.b32.cont [10/16] %v10169_v44, 128  ;;  %v11222_v44 = vld [vmem:[#allocation85_spill] sm:$0xff]  ;;  %v4949_v21 = vmul.f32 %v9596_v36, %v4876_v40  ;;  %7553 = vrcp.f32 %v10151_v8 }
 0xb37   : > { %v11223_v48 = vmax.f32 %v11222_v44, 0.0  ;;  %v11226_v44 = vmax.f32 %v11225_v4, 0.0 }
 0xb39   : > { %v10191_v41 = vmul.f32 %v10182_v16, %v11223_v48  ;;  %v10203_v37 = vmul.f32 %v10193_v43, %v11226_v44  ;;  %v10205_v48 = vpop.eup %7527 }
 0xb3a   : > { %3969 = vxpose.xlu0.b32.cont [11/16] %v10180_v52, 128  ;;  %v5049_v11 = vpop.permute.xlu1 %5048  ;;  %v5342_v52 = vadd.f32 %v5310_v27, %v5146_v58  ;;  %v10210_v27 = vpop.xlane.xlu0 %3721 }
 0xb3b   : > { %v5113_v10 = vmul.f32 %v9593_v39, %v5049_v11  ;;  %11224 = vst [vmem:[#allocation107_spill] sm:$0xff] %v10191_v41  ;;  %11227 = vst [vmem:[#allocation77_spill] sm:$0xff] %v10203_v37  ;;  %7555 = vrcp.f32 %v10210_v27 }
 0xb3c   : > { %v5457_v63 = vadd.f32 %v9611_v26, %v5342_v52 }
 0xb3d   : > { %v5145_v0 = vadd.f32 %v5113_v10, %v4949_v21  ;;  %v10218_v21 = vpop.eup %7529 }
 0xb3e   : > { %3970 = vxpose.xlu0.b32.cont [12/16] %v10191_v41, 128  ;;  %v4891_v52 = vpop.permute.xlu0 %4890  ;;  %v10228_v44 = vpop.eup %7531 }
 0xb3f   : > { %v5245_v13 = vpop.permute.xlu1 %5244 }
 0xb40   : > { %v5309_v11 = vmul.f32 %v9600_v17, %v5245_v13  ;;  %v11228_v13 = vld [vmem:[#allocation89_spill] sm:$0xff] }
 0xb41   : > { %v11229_v40 = vmax.f32 %v11228_v13, 0.0 }
 0xb42   : > { %v5341_v5 = vadd.f32 %v5309_v11, %v5145_v0  ;;  %3971 = vxpose.xlu0.b32.cont [13/16] %v10203_v37, 128  ;;  %v5489_v0 = vmax.f32 %v5457_v63, 0.0  ;;  %v11232_v11 = vmax.f32 %v11231_v14, 0.0  ;;  %v10239_v63 = vadd.f32 %v9988_v28, %v9187_v57  ;;  %v11238_v28 = vld [vmem:[#allocation95_spill] sm:$0xff] }
 0xb43   : > { %v10216_v10 = vmul.f32 %v10205_v48, %v11229_v40  ;;  %v11235_v40 = vld [vmem:[#allocation93_spill] sm:$0xff] }
 0xb44   : > { %v5456_v45 = vadd.f32 %v9611_v26, %v5341_v5  ;;  %v5061_v58 = vpop.permute.xlu1 %5060  ;;  %v10226_v5 = vmul.f32 %v10218_v21, %v11232_v11  ;;  %v5257_v11 = vpop.permute.xlu0 %5256  ;;  %v11029_v57 = vmax.f32 %v10239_v63, 0.0 }
 0xb45   : > { %11230 = vst [vmem:[#allocation105_spill] sm:$0xff] %v10216_v10  ;;  %v5116_v18 = vmul.f32 %v9593_v39, %v5061_v58 }
 0xb46   : > { %v5488_v4 = vmax.f32 %v5456_v45, 0.0  ;;  %3972 = vxpose.xlu0.b32.cont [14/16] %v10216_v10, 128  ;;  %11233 = vst [vmem:[#allocation79_spill] sm:$0xff] %v10226_v5  ;;  %v10233_v45 = vadd.f32 %v9992_v20, %v9190_v61  ;;  %v4952_v61 = vmul.f32 %v9596_v36, %v4891_v52  ;;  %v5312_v52 = vmul.f32 %v9600_v17, %v5257_v11 }
 0xb48   : > { %7137 = vmatprep.mubr.msk.f32.mxu0 %vm1610_vm0, %v5488_v4  ;;  %11234 = vst [vmem:[#allocation110_spill] sm:$0xff] %v10233_v45  ;;  %v11236_v4 = vmax.f32 %v11235_v40, 0.0  ;;  %v11028_v20 = vmax.f32 %v10233_v45, 0.0  ;;  %v11239_v40 = vmax.f32 %v11238_v28, 0.0 }
 0xb49   : > { %7138 = vmatmul.mubr.msk.f32.gmra.mxu0 %vm1610_vm0, %v5489_v0  ;;  %v4886_v13 = vpop.permute.xlu1 %4885  ;;  %v10247_v0 = vpop.eup %7533 }
 0xb4a   : > { %3973 = vxpose.xlu0.b32.cont [15/16] %v10226_v5, 128  ;;  %v10245_v14 = vmul.f32 %v10228_v44, %v11236_v4  ;;  %v5148_v5 = vadd.f32 %v5116_v18, %v4952_v61  ;;  %v10258_v4 = vmul.f32 %v10247_v0, %v11239_v40  ;;  %v10260_v10 = vpop.eup %7535  ;;  %v3729_v18 = vadd.f32 %v11028_v20, %v11029_v57 }
 0xb4b   : > { %v4951_v61 = vmul.f32 %v9596_v36, %v4886_v13  ;;  %v10276_v41 = vpop.eup %7537  ;;  %v11242_v13 = vld [vmem:[#allocation111_spill] sm:$0xff] }
 0xb4c   : > { %11237 = vst [vmem:[#allocation81_spill] sm:$0xff] %v10245_v14  ;;  %v5344_v23 = vadd.f32 %v5312_v52, %v5148_v5 }
 0xb4e   : > { %3974 = vxpose.xlu0.b32.end [16/16] %v10245_v14, 128  ;;  %v5057_v58 = vpop.permute.xlu1 %5056  ;;  %v11240_v14 = vld [vmem:[#allocation99_spill] sm:$0xff]  ;;  %v5459_v5 = vadd.f32 %v9611_v26, %v5344_v23 }
 0xb4f   : > { %v5115_v30 = vmul.f32 %v9593_v39, %v5057_v58  ;;  %v11241_v37 = vmax.f32 %v11240_v14, 0.0 }
 0xb50   : > { %v5491_v23 = vmax.f32 %v5459_v5, 0.0 }
 0xb51   : > { %v5147_v28 = vadd.f32 %v5115_v30, %v4951_v61  ;;  %v10274_v11 = vmul.f32 %v10260_v10, %v11241_v37  ;;  %v11243_v30 = vmax.f32 %v11242_v13, 0.0  ;;  %v10287_v37 = vpop.eup %7539 }
 0xb52   : > { %3991 = vxpose.xlu0.b32.start [1/16] %v10258_v4, 128 }
 0xb53   : > { %v5253_v58 = vpop.permute.xlu1 %5252  ;;  %v10285_v14 = vmul.f32 %v10276_v41, %v11243_v30  ;;  %v11247_v30 = vld [vmem:[#allocation114_spill] sm:$0xff] }
 0xb54   : > { %v5311_v40 = vmul.f32 %v9600_v17, %v5253_v58  ;;  %3730 = vadd.xlane.f32.xlu1 %v3729_v18 }
 0xb56   : > { %v5343_v20 = vadd.f32 %v5311_v40, %v5147_v28  ;;  %3992 = vxpose.xlu0.b32.cont [2/16] %v10274_v11, 128 }
 0xb58   : > { %v5458_v38 = vadd.f32 %v9611_v26, %v5343_v20  ;;  %v11244_v20 = vld [vmem:[#allocation106_spill] sm:$0xff] }
 0xb59   : > { %v7127_v52 = vpop.f32.mrf.mxu0  ;;  %v11245_v28 = vmax.f32 %v11244_v20, 0.0 }
 0xb5a   : > { %v5490_v18 = vmax.f32 %v5458_v38, 0.0  ;;  %v5751_v61 = vadd.f32 %v7127_v52, %v9795_v47  ;;  %3993 = vxpose.xlu0.b32.cont [3/16] %v10285_v14, 128  ;;  %v10301_v38 = vpop.eup %7541  ;;  %v11248_v52 = vmax.f32 %v11247_v30, 0.0  ;;  %v11253_v30 = vmax.f32 %v9835_v42, 0.0 }
 0xb5b   : > { %v5745_v58 = vpop.f32.mrf.mxu0  ;;  %v10299_v40 = vmul.f32 %v10287_v37, %v11245_v28  ;;  %v10311_v5 = vmul.f32 %v10301_v38, %v11246_v12  ;;  %v10313_v13 = vpop.eup %7543  ;;  %v11258_v42 = vmax.f32 %v9933_v25, 0.0 }
 0xb5c   : > { %5850 = vst.msk [vmem:[%s9798_s22 + $0x78] sm:$0xff] %vm5834_vm3, %v5751_v61  ;;  %v5746_v3 = vadd.f32 %v9795_v47, %v5745_v58  ;;  %7140 = vmatprep.mubr.msk.f32.mxu0 %vm1610_vm0, %v5490_v18  ;;  %v10320_v18 = vmul.f32 %v10313_v13, %v11248_v52  ;;  %v10322_v61 = vpop.eup %7545  ;;  %v11250_v58 = vld [vmem:[#allocation100_spill] sm:$0xff] }
 0xb5d   : > { %7141 = vmatmul.mubr.msk.f32.gmra.mxu0 %vm1610_vm0, %v5491_v23  ;;  %v10330_v29 = vmul.f32 %v10322_v61, %v11249_v32  ;;  %v10332_v51 = vpop.eup %7547  ;;  %v4901_v23 = vpop.permute.xlu0 %4900 }
 0xb5e   : > { %5849 = vst.msk [vmem:[%s9798_s22 + $0x70] sm:$0xff] %vm5834_vm3, %v5746_v3  ;;  %3994 = vxpose.xlu0.b32.cont [4/16] %v10299_v40, 128  ;;  %v11251_v3 = vld [vmem:[#allocation117_spill] sm:$0xff]  ;;  %v10343_v20 = vpop.eup %7549  ;;  %v4954_v56 = vmul.f32 %v9596_v36, %v4901_v23 }
 0xb5f   : > { %v11252_v8 = vmax.f32 %v11251_v3, 0.0  ;;  %v10355_v52 = vmul.f32 %v10343_v20, %v11253_v30  ;;  %v10357_v32 = vpop.eup %7551 }
 0xb60   : > { %11254 = vst [vmem:[#allocation108_spill] sm:$0xff] %v10357_v32 }
 0xb61   : > { %v10341_v60 = vmul.f32 %v10332_v51, %v11252_v8  ;;  %v5265_v3 = vpop.permute.xlu0 %5264 }
 0xb62   : > { %3995 = vxpose.xlu0.b32.cont [5/16] %v10311_v5, 128  ;;  %v5314_v23 = vmul.f32 %v9600_v17, %v5265_v3 }
 0xb65   : > { %5084 = vperm.xlu1 %7496, %v9495_v1  }
 0xb66   : > { %3996 = vxpose.xlu0.b32.cont [6/16] %v10320_v18, 128 }
 0xb69   : > { %7497 = vset.pattern.permute.xlu1 %v11152_v7 }
 0xb6a   : > { %4915 = vperm.xlu1 %7497, %v11250_v58   ;;  %3997 = vxpose.xlu0.b32.cont [7/16] %v10330_v29, 128 }
 0xb6d   : > { %v7130_v28 = vpop.f32.mrf.mxu0 }
 0xb6e   : > { %v5761_v12 = vadd.f32 %v7130_v28, %v9795_v47  ;;  %7498 = vset.pattern.permute.xlu1 %v11150_v6  ;;  %3998 = vxpose.xlu0.b32.cont [8/16] %v10341_v60, 128  ;;  %v11255_v6 = vld [vmem:[#allocation120_spill] sm:$0xff] }
 0xb6f   : > { %5080 = vperm.xlu1 %7498, %v11250_v58   ;;  %v5755_v7 = vpop.f32.mrf.mxu0  ;;  %v11256_v8 = vmax.f32 %v11255_v6, 0.0  ;;  %v11260_v6 = vmax.f32 %v9864_v9, 0.0 }
 0xb70   : > { %5852 = vst.msk [vmem:[%s9798_s22 + $0x88] sm:$0xff] %vm5834_vm3, %v5761_v12  ;;  %v5756_v27 = vadd.f32 %v9795_v47, %v5755_v7  ;;  %v10367_v12 = vpop.eup %7553  ;;  %v3728_v47 = vpop.xlane.xlu0 %3727 }
 0xb71   : > { %v10365_v28 = vmul.f32 %v10357_v32, %v11256_v8  ;;  %11257 = vst [vmem:[#allocation83_spill] sm:$0xff] %v10367_v12  ;;  %v10373_v7 = vmul.f32 %v10367_v12, %v11258_v42  ;;  %v10375_v30 = vpop.eup %7555 }
 0xb72   : > { %5851 = vst.msk [vmem:[%s9798_s22 + $0x80] sm:$0xff] %vm5834_vm3, %v5756_v27  ;;  %3999 = vxpose.xlu0.b32.cont [9/16] %v10355_v52, 128  ;;  %11259 = vst [vmem:[#allocation112_spill] sm:$0xff] %v10375_v30  ;;  %v10383_v8 = vmul.f32 %v10375_v30, %v11260_v6  ;;  %v3895_v6 = vmul.f32 0.5, %v10258_v4 }
 0xb74   : > { %v10377_v27 = vpop.permute.xlu0 %4910 }
 0xb76   : > { %4000 = vxpose.xlu0.b32.cont [10/16] %v10365_v28, 128 }
 0xb78   : > { %v10386_v57 = vpop.permute.xlu0 %5272 }
 0xb7a   : > { %4001 = vxpose.xlu0.b32.cont [11/16] %v10373_v7, 128 }
 0xb7c   : > { %v10388_v25 = vpop.permute.xlu0 %4920 }
 0xb7e   : > { %4002 = vxpose.xlu0.b32.cont [12/16] %v10383_v8, 128 }
 0xb80   : > { %v10390_v62 = vpop.xlane.xlu0 %3733 }
 0xb85   : > { %v3725_v35 = vpop.xlane.xlu1 %3724 }
 0xb86   : > { %7557 = vrcp.f32 %v3725_v35 }
 0xb87   : > { %7559 = vrcp.f32 %v3728_v47  ;;  %v3897_v47 = vmul.f32 0.5, %v10274_v11 }
 0xb88   : > { %7561 = vrcp.f32 %v10390_v62 }
 0xb89   : > { %v5069_v42 = vpop.permute.xlu1 %5068 }
 0xb8a   : > { %v5118_v9 = vmul.f32 %v9593_v39, %v5069_v42 }
 0xb8c   : > { %v5150_v35 = vadd.f32 %v5118_v9, %v4954_v56 }
 0xb8d   : > { %v4896_v58 = vpop.permute.xlu1 %4895 }
 0xb8e   : > { %v3975_v33 = vpop.trf.xlu0  ;;  %v4953_v9 = vmul.f32 %v9596_v36, %v4896_v58  ;;  %v11265_v58 = vld [vmem:[#allocation125_spill] sm:$0xff] }
 0xb8f   : > { %v4087_v1 = vmul.f32 0.5, %v3975_v33  ;;  %v11262_v33 = vmax.f32 %v10032_v54, 0.0  ;;  %v3899_v54 = vmul.f32 0.5, %v10285_v14 }
 0xb91   : > { %v4151_v24 = vadd.f32 %v4087_v1, %v3895_v6 }
 0xb92   : > { %v3976_v45 = vpop.trf.xlu0  ;;  %v5065_v15 = vpop.permute.xlu1 %5064 }
 0xb93   : > { %v10396_v30 = vpop.eup %7557  ;;  %4215 = vst [vmem:[%s10398_s4 + $0x100] sm:$0xff] %v4151_v24  ;;  %v4089_v12 = vmul.f32 0.5, %v3976_v45  ;;  %v5117_v42 = vmul.f32 %v9593_v39, %v5065_v15  ;;  %v11263_v24 = vld [vmem:[#allocation66_spill] sm:$0xff]  ;;  %v5346_v15 = vadd.f32 %v5314_v23, %v5150_v35  ;;  %v11267_v35 = vld [vmem:[#allocation67_spill] sm:$0xff] }
 0xb94   : > { %11261 = vst [vmem:[#allocation85_spill] sm:$0xff] %v10396_v30  ;;  %v10406_v4 = vmul.f32 %v10396_v30, %v11262_v33  ;;  %v10408_v1 = vpop.eup %7559  ;;  %v11264_v11 = vmax.f32 %v11263_v24, 0.0  ;;  %v11268_v14 = vmax.f32 %v11267_v35, 0.0  ;;  %v11271_v35 = vld [vmem:[#allocation69_spill] sm:$0xff] }
 0xb95   : > { %v4153_v56 = vadd.f32 %v4089_v12, %v3897_v47  ;;  %v5149_v32 = vadd.f32 %v5117_v42, %v4953_v9  ;;  %v11266_v12 = vmax.f32 %v11265_v58, 0.0  ;;  %v3901_v42 = vmul.f32 0.5, %v10299_v40 }
 0xb96   : > { %v3977_v6 = vpop.trf.xlu0  ;;  %4003 = vxpose.xlu0.b32.cont [13/16] %v10406_v4, 128  ;;  %v10416_v45 = vmul.f32 %v10057_v19, %v11264_v11  ;;  %v10431_v23 = vmul.f32 %v10068_v34, %v11268_v14  ;;  %v11272_v14 = vmax.f32 %v11271_v35, 0.0 }
 0xb97   : > { %4217 = vst [vmem:[%s10398_s4 + $0x110] sm:$0xff] %v4153_v56  ;;  %v4091_v33 = vmul.f32 0.5, %v3977_v6  ;;  %v5261_v30 = vpop.permute.xlu1 %5260  ;;  %v10425_v47 = vmul.f32 %v10408_v1, %v11266_v12 }
 0xb98   : > { %v5313_v3 = vmul.f32 %v9600_v17, %v5261_v30  ;;  %3927 = vxpose.xlu1.b32.start [1/16] %v10416_v45, 128  ;;  %v5461_v30 = vadd.f32 %v9611_v26, %v5346_v15  ;;  %v3903_v15 = vmul.f32 0.5, %v10311_v5  ;;  %v3905_v5 = vmul.f32 0.5, %v10320_v18 }
 0xb99   : > { %v4155_v24 = vadd.f32 %v4091_v33, %v3899_v54 }
 0xb9a   : > { %v5345_v19 = vadd.f32 %v5313_v3, %v5149_v32  ;;  %v3978_v11 = vpop.trf.xlu0  ;;  %4004 = vxpose.xlu0.b32.cont [14/16] %v10425_v47, 128  ;;  %v11269_v3 = vld [vmem:[#allocation68_spill] sm:$0xff]  ;;  %v5493_v12 = vmax.f32 %v5461_v30, 0.0 }
 0xb9b   : > { %4219 = vst [vmem:[%s10398_s4 + $0x120] sm:$0xff] %v4155_v24  ;;  %v4093_v56 = vmul.f32 0.5, %v3978_v11  ;;  %v11270_v58 = vmax.f32 %v11269_v3, 0.0 }
 0xb9c   : > { %v5460_v9 = vadd.f32 %v9611_v26, %v5345_v19  ;;  %3928 = vxpose.xlu1.b32.cont [2/16] %v10431_v23, 128  ;;  %v5077_v32 = vpop.permute.xlu1 %5076 }
 0xb9d   : > { %v4157_v6 = vadd.f32 %v4093_v56, %v3901_v42  ;;  %v10441_v34 = vmul.f32 %v10079_v55, %v11270_v58  ;;  %v10451_v55 = vmul.f32 %v10094_v22, %v11272_v14  ;;  %v5120_v30 = vmul.f32 %v9593_v39, %v5077_v32 }
 0xb9e   : > { %v5492_v54 = vmax.f32 %v5460_v9, 0.0  ;;  %v3979_v33 = vpop.trf.xlu0  ;;  %v4956_v56 = vmul.f32 %v9596_v36, %v10377_v27  ;;  %v3907_v32 = vmul.f32 0.5, %v10330_v29  ;;  %v5316_v27 = vmul.f32 %v9600_v17, %v10386_v57 }
 0xb9f   : > { %4221 = vst [vmem:[%s10398_s4 + $0x130] sm:$0xff] %v4157_v6  ;;  %v4095_v40 = vmul.f32 0.5, %v3979_v33  ;;  %v11273_v33 = vld [vmem:[#allocation70_spill] sm:$0xff]  ;;  %v3909_v29 = vmul.f32 0.5, %v10341_v60  ;;  %v3911_v60 = vmul.f32 0.5, %v10355_v52 }
 0xba0   : > { %3929 = vxpose.xlu1.b32.cont [3/16] %v10441_v34, 128  ;;  %7143 = vmatprep.mubr.msk.f32.mxu0 %vm1610_vm0, %v5492_v54  ;;  %v11274_v3 = vmax.f32 %v11273_v33, 0.0  ;;  %v5152_v58 = vadd.f32 %v5120_v30, %v4956_v56 }
 0xba1   : > { %v4159_v24 = vadd.f32 %v4095_v40, %v3903_v15  ;;  %7144 = vmatmul.mubr.msk.f32.gmra.mxu0 %vm1610_vm0, %v5493_v12  ;;  %v4906_v19 = vpop.permute.xlu1 %4905 }
 0xba2   : > { %v3980_v11 = vpop.trf.xlu0  ;;  %v10462_v22 = vmul.f32 %v10107_v2, %v11274_v3  ;;  %v4955_v40 = vmul.f32 %v9596_v36, %v4906_v19  ;;  %v5348_v14 = vadd.f32 %v5316_v27, %v5152_v58  ;;  %v10491_v27 = vld [vmem:[%s8272_s29] ss:$0 sm:$0xff] }
 0xba3   : > { %4223 = vst [vmem:[%s10398_s4 + $0x140] sm:$0xff] %v4159_v24  ;;  %v4097_v42 = vmul.f32 0.5, %v3980_v11  ;;  %v11275_v11 = vld [vmem:[#allocation72_spill] sm:$0xff] }
 0xba4   : > { %3930 = vxpose.xlu1.b32.cont [4/16] %v10451_v55, 128  ;;  %v11276_v2 = vmax.f32 %v11275_v11, 0.0  ;;  %v5463_v33 = vadd.f32 %v9611_v26, %v5348_v14 }
 0xba5   : > { %v4161_v9 = vadd.f32 %v4097_v42, %v3905_v5 }
 0xba6   : > { %v3981_v6 = vpop.trf.xlu0  ;;  %v5073_v54 = vpop.permute.xlu1 %5072  ;;  %v10474_v35 = vmul.f32 %v10117_v50, %v11276_v2  ;;  %v5495_v52 = vmax.f32 %v5463_v33, 0.0  ;;  %v3913_v2 = vmul.f32 0.5, %v10365_v28 }
 0xba7   : > { %4225 = vst [vmem:[%s10398_s4 + $0x150] sm:$0xff] %v4161_v9  ;;  %v4099_v18 = vmul.f32 0.5, %v3981_v6  ;;  %v5119_v12 = vmul.f32 %v9593_v39, %v5073_v54  ;;  %v11277_v6 = vld [vmem:[#allocation74_spill] sm:$0xff] }
 0xba8   : > { %3931 = vxpose.xlu1.b32.cont [5/16] %v10462_v22, 128  ;;  %v11278_v54 = vmax.f32 %v11277_v6, 0.0 }
 0xba9   : > { %v4163_v15 = vadd.f32 %v4099_v18, %v3907_v32  ;;  %v5151_v42 = vadd.f32 %v5119_v12, %v4955_v40  ;;  %v11279_v40 = vld [vmem:[#allocation76_spill] sm:$0xff] }
 0xbaa   : > { %v3982_v24 = vpop.trf.xlu0  ;;  %v10483_v50 = vmul.f32 %v10127_v46, %v11278_v54  ;;  %v11283_v54 = vld [vmem:[#allocation80_spill] sm:$0xff] }
 0xbab   : > { %4227 = vst [vmem:[%s10398_s4 + $0x160] sm:$0xff] %v4163_v15  ;;  %v4101_v30 = vmul.f32 0.5, %v3982_v24  ;;  %v5269_v5 = vpop.permute.xlu1 %5268  ;;  %v11280_v24 = vmax.f32 %v11279_v40, 0.0  ;;  %v11284_v33 = vmax.f32 %v11283_v54, 0.0 }
 0xbac   : > { %v5315_v57 = vmul.f32 %v9600_v17, %v5269_v5  ;;  %3932 = vxpose.xlu1.b32.cont [6/16] %v10474_v35, 128 }
 0xbad   : > { %v4165_v19 = vadd.f32 %v4101_v30, %v3909_v29  ;;  %v10497_v11 = vmul.f32 %v10138_v53, %v11280_v24 }
 0xbae   : > { %v5347_v56 = vadd.f32 %v5315_v57, %v5151_v42  ;;  %v3983_v9 = vpop.trf.xlu0  ;;  %v11281_v42 = vld [vmem:[#allocation78_spill] sm:$0xff] }
 0xbaf   : > { %4229 = vst [vmem:[%s10398_s4 + $0x170] sm:$0xff] %v4165_v19  ;;  %v4103_v3 = vmul.f32 0.5, %v3983_v9  ;;  %v11282_v57 = vmax.f32 %v11281_v42, 0.0  ;;  %v3915_v19 = vmul.f32 0.5, %v10373_v7  ;;  %v11285_v7 = vld [vmem:[#allocation82_spill] sm:$0xff] }
 0xbb0   : > { %v5462_v58 = vadd.f32 %v9611_v26, %v5347_v56  ;;  %3933 = vxpose.xlu1.b32.cont [7/16] %v10483_v50, 128 }
 0xbb1   : > { %v4167_v32 = vadd.f32 %v4103_v3, %v3911_v60  ;;  %v7133_v18 = vpop.f32.mrf.mxu0  ;;  %v10512_v28 = vmul.f32 %v10149_v59, %v11282_v57  ;;  %v10521_v60 = vmul.f32 %v10162_v49, %v11284_v33  ;;  %v3917_v59 = vmul.f32 0.5, %v10383_v8  ;;  %v11291_v57 = vld [vmem:[#allocation127_spill] sm:$0xff] }
 0xbb2   : > { %v5494_v12 = vmax.f32 %v5462_v58, 0.0  ;;  %v5771_v46 = vadd.f32 %v10491_v27, %v7133_v18  ;;  %v3984_v15 = vpop.trf.xlu0 }
 0xbb3   : > { %4231 = vst [vmem:[%s10398_s4 + $0x180] sm:$0xff] %v4167_v32  ;;  %v4105_v14 = vmul.f32 0.5, %v3984_v15  ;;  %v5765_v29 = vpop.f32.mrf.mxu0  ;;  %v11286_v32 = vmax.f32 %v11285_v7, 0.0  ;;  %v11287_v15 = vld [vmem:[#allocation84_spill] sm:$0xff] }
 0xbb4   : > { %5854 = vst.msk [vmem:[%s9798_s22 + $0x98] sm:$0xff] %vm5834_vm3, %v5771_v46  ;;  %v5766_v30 = vadd.f32 %v10491_v27, %v5765_v29  ;;  %3934 = vxpose.xlu1.b32.cont [8/16] %v10497_v11, 128  ;;  %7146 = vmatprep.mubr.msk.f32.mxu0 %vm1610_vm0, %v5494_v12  ;;  %v3919_v12 = vmul.f32 0.5, %v10406_v4  ;;  %v11288_v40 = vmax.f32 %v11287_v15, 0.0  ;;  %v11301_v15 = vld [vmem:[#allocation97_spill] sm:$0xff] }
 0xbb5   : > { %v4169_v5 = vadd.f32 %v4105_v14, %v3913_v2  ;;  %7147 = vmatmul.mubr.msk.f32.gmra.mxu0 %vm1610_vm0, %v5495_v52  ;;  %v10529_v18 = vmul.f32 %v10172_v31, %v11286_v32  ;;  %v3921_v31 = vmul.f32 0.5, %v10425_v47  ;;  %v10541_v2 = vpop.eup %7561  ;;  %v11292_v47 = vmax.f32 %v11291_v57, 0.0  ;;  %v11297_v32 = vld [vmem:[#allocation92_spill] sm:$0xff] }
 0xbb6   : > { %5853 = vst.msk [vmem:[%s9798_s22 + $0x90] sm:$0xff] %vm5834_vm3, %v5766_v30  ;;  %v3985_v53 = vpop.trf.xlu0  ;;  %v10537_v24 = vmul.f32 %v10182_v16, %v11288_v40 }
 0xbb7   : > { %4233 = vst [vmem:[%s10398_s4 + $0x190] sm:$0xff] %v4169_v5  ;;  %v4107_v56 = vmul.f32 0.5, %v3985_v53  ;;  %v11289_v5 = vld [vmem:[#allocation86_spill] sm:$0xff] }
 0xbb8   : > { %3935 = vxpose.xlu1.b32.cont [9/16] %v10512_v28, 128  ;;  %v11290_v53 = vmax.f32 %v11289_v5, 0.0  ;;  %v11305_v5 = vld [vmem:[#allocation104_spill] sm:$0xff] }
 0xbb9   : > { %v4171_v9 = vadd.f32 %v4107_v56, %v3915_v19  ;;  %v3861_v19 = vmul.f32 %v10541_v2, %v11292_v47 }
 0xbba   : > { %v3986_v6 = vpop.trf.xlu0  ;;  %v10548_v16 = vmul.f32 %v10193_v43, %v11290_v53 }
 0xbbb   : > { %4235 = vst [vmem:[%s10398_s4 + $0x1a0] sm:$0xff] %v4171_v9  ;;  %v4109_v3 = vmul.f32 0.5, %v3986_v6  ;;  %v11293_v6 = vld [vmem:[#allocation88_spill] sm:$0xff]  ;;  %v3925_v33 = vmul.f32 0.5, %v3861_v19 }
 0xbbc   : > { %3936 = vxpose.xlu1.b32.cont [10/16] %v10521_v60, 128  ;;  %v11294_v54 = vmax.f32 %v11293_v6, 0.0 }
 0xbbd   : > { %v4173_v62 = vadd.f32 %v4109_v3, %v3917_v59 }
 0xbbe   : > { %v3987_v58 = vpop.trf.xlu0  ;;  %v10563_v43 = vmul.f32 %v10205_v48, %v11294_v54  ;;  %v11299_v48 = vld [vmem:[#allocation94_spill] sm:$0xff] }
 0xbbf   : > { %4237 = vst [vmem:[%s10398_s4 + $0x1b0] sm:$0xff] %v4173_v62  ;;  %v4111_v46 = vmul.f32 0.5, %v3987_v58  ;;  %v11295_v62 = vld [vmem:[#allocation90_spill] sm:$0xff] }
 0xbc0   : > { %3937 = vxpose.xlu1.b32.cont [11/16] %v10529_v18, 128  ;;  %v11296_v58 = vmax.f32 %v11295_v62, 0.0 }
 0xbc1   : > { %v4175_v49 = vadd.f32 %v4111_v46, %v3919_v12  ;;  %v11298_v12 = vmax.f32 %v11297_v32, 0.0 }
 0xbc2   : > { %v3988_v8 = vpop.trf.xlu0  ;;  %v10569_v7 = vmul.f32 %v10218_v21, %v11296_v58  ;;  %v11302_v21 = vmax.f32 %v11301_v15, 0.0 }
 0xbc3   : > { %4239 = vst [vmem:[%s10398_s4 + $0x1c0] sm:$0xff] %v4175_v49  ;;  %v4113_v52 = vmul.f32 0.5, %v3988_v8  ;;  %v10576_v46 = vmul.f32 %v10228_v44, %v11298_v12  ;;  %v11300_v49 = vmax.f32 %v11299_v48, 0.0  ;;  %v11303_v44 = vld [vmem:[#allocation109_spill] sm:$0xff]  ;;  %v11312_v12 = vld [vmem:[#allocation118_spill] sm:$0xff] }
 0xbc4   : > { %3938 = vxpose.xlu1.b32.cont [12/16] %v10537_v24, 128  ;;  %v10588_v40 = vmul.f32 %v10260_v10, %v11302_v21  ;;  %v11306_v10 = vmax.f32 %v11305_v5, 0.0  ;;  %v11313_v48 = vmax.f32 %v11312_v12, 0.0  ;;  %v11326_v5 = vld [vmem:[#allocation112_spill] sm:$0xff] }
 0xbc5   : > { %v4177_v4 = vadd.f32 %v4113_v52, %v3921_v31  ;;  %v7136_v14 = vpop.f32.mrf.mxu0  ;;  %v10582_v8 = vmul.f32 %v10247_v0, %v11300_v49  ;;  %v11304_v52 = vmax.f32 %v11303_v44, 0.0  ;;  %v11320_v44 = vld [vmem:[#allocation108_spill] sm:$0xff] }
 0xbc6   : > { %v5781_v29 = vadd.f32 %v10491_v27, %v7136_v14  ;;  %v3989_v30 = vpop.trf.xlu0  ;;  %v4958_v14 = vmul.f32 %v9596_v36, %v10388_v25  ;;  %v10603_v53 = vmul.f32 %v10287_v37, %v11306_v10 }
 0xbc7   : > { %4241 = vst [vmem:[%s10398_s4 + $0x1d0] sm:$0xff] %v4177_v4  ;;  %v5775_v42 = vpop.f32.mrf.mxu0  ;;  %v10594_v4 = vmul.f32 %v10276_v41, %v11304_v52  ;;  %v11307_v41 = vld [vmem:[#allocation115_spill] sm:$0xff] }
 0xbc8   : > { %5856 = vst.msk [vmem:[%s9798_s22 + $0xa8] sm:$0xff] %vm5834_vm3, %v5781_v29  ;;  %v5776_v56 = vadd.f32 %v10491_v27, %v5775_v42  ;;  %3939 = vxpose.xlu1.b32.cont [13/16] %v10548_v16, 128  ;;  %v11308_v47 = vmax.f32 %v11307_v41, 0.0 }
 0xbca   : > { %5855 = vst.msk [vmem:[%s9798_s22 + $0xa0] sm:$0xff] %vm5834_vm3, %v5776_v56  ;;  %v3990_v9 = vpop.trf.xlu0  ;;  %v10611_v56 = vmul.f32 %v10301_v38, %v11308_v47  ;;  %v11311_v38 = vmax.f32 %v10239_v63, 0.0  ;;  %v11316_v63 = vld [vmem:[#allocation121_spill] sm:$0xff] }
 0xbcb   : > { %v4117_v59 = vmul.f32 0.5, %v3990_v9  ;;  %v11309_v9 = vld [vmem:[#allocation113_spill] sm:$0xff]  ;;  %v11317_v15 = vmax.f32 %v11316_v63, 0.0  ;;  %v3863_v63 = vmul.f32 0.5, %v10416_v45  ;;  %v3867_v45 = vmul.f32 0.5, %v10441_v34 }
 0xbcc   : > { %3940 = vxpose.xlu1.b32.cont [14/16] %v10563_v43, 128  ;;  %v11310_v6 = vmax.f32 %v11309_v9, 0.0  ;;  %v11329_v47 = vld [vmem:[#allocation85_spill] sm:$0xff] }
 0xbcd   : > { %v4181_v3 = vadd.f32 %v4117_v59, %v3925_v33  ;;  %v10642_v21 = vmul.f32 %v10343_v20, %v11317_v15 }
 0xbce   : > { %v10617_v54 = vmul.f32 %v10313_v13, %v11310_v6  ;;  %v10629_v13 = vmul.f32 %v10322_v61, %v11313_v48  ;;  %v11318_v61 = vld [vmem:[#allocation119_spill] sm:$0xff] }
 0xbcf   : > { %4245 = vst [vmem:[%s10398_s4 + $0x1f0] sm:$0xff] %v4181_v3  ;;  %v4115_v3 = vmul.f32 0.5, %v3989_v30 }
 0xbd0   : > { %3941 = vxpose.xlu1.b32.cont [15/16] %v10569_v7, 128 }
 0xbd4   : > { %3942 = vxpose.xlu1.b32.end [16/16] %v10576_v46, 128 }
 0xbd8   : > { %4023 = vxpose.xlu1.b32.start [1/16] %v10582_v8, 128 }
 0xbdc   : > { %4024 = vxpose.xlu1.b32.cont [2/16] %v10588_v40, 128 }
 0xbdd   : > { %v3731_v31 = vpop.xlane.xlu1 %3730 }
 0xbde   : > { %7563 = vrcp.f32 %v3731_v31  ;;  %v11319_v31 = vmax.f32 %v11318_v61, 0.0 }
 0xbe0   : > { %4025 = vxpose.xlu1.b32.cont [3/16] %v10594_v4, 128 }
 0xbe1   : > { %v5085_v0 = vpop.permute.xlu1 %5084 }
 0xbe2   : > { %v5122_v29 = vmul.f32 %v9593_v39, %v5085_v0  ;;  %v11323_v0 = vld [vmem:[#allocation83_spill] sm:$0xff] }
 0xbe4   : > { %v10605_v42 = vadd.f32 %v5122_v29, %v4958_v14  ;;  %4026 = vxpose.xlu1.b32.cont [4/16] %v10603_v53, 128  ;;  %v11324_v29 = vld [vmem:[#allocation122_spill] sm:$0xff] }
 0xbe5   : > { %v4916_v57 = vpop.permute.xlu1 %4915  ;;  %v11325_v20 = vmax.f32 %v11324_v29, 0.0 }
 0xbe6   : > { %v4957_v33 = vmul.f32 %v9596_v36, %v4916_v57  ;;  %v11314_v36 = vld [vmem:[#allocation116_spill] sm:$0xff] }
 0xbe7   : > { %v10660_v10 = vmul.f32 %v11326_v5, %v11325_v20  ;;  %v11327_v57 = vld [vmem:[#allocation128_spill] sm:$0xff] }
 0xbe8   : > { %4027 = vxpose.xlu1.b32.cont [5/16] %v10611_v56, 128  ;;  %v11328_v41 = vmax.f32 %v11327_v57, 0.0 }
 0xbea   : > { %v5081_v25 = vpop.permute.xlu1 %5080 }
 0xbeb   : > { %v7564_v37 = vpop.eup %7563  ;;  %v5121_v59 = vmul.f32 %v9593_v39, %v5081_v25  ;;  %v11315_v39 = vmax.f32 %v11314_v36, 0.0  ;;  %v10666_v25 = vmul.f32 %v11329_v47, %v11328_v41 }
 0xbec   : > { %4028 = vxpose.xlu1.b32.cont [6/16] %v10617_v54, 128  ;;  %v3859_v62 = vmul.f32 %v7564_v37, %v11311_v38 }
 0xbed   : > { %v10624_v58 = vadd.f32 %v5121_v59, %v4957_v33  ;;  %v10636_v30 = vmul.f32 %v10332_v51, %v11315_v39  ;;  %v11321_v51 = vld [vmem:[#allocation123_spill] sm:$0xff]  ;;  %v11330_v33 = vld [vmem:[#allocation124_spill] sm:$0xff] }
 0xbee   : > { %4005 = vxpose.xlu0.b32.cont [15/16] %v3859_v62, 128  ;;  %v3923_v32 = vmul.f32 0.5, %v3859_v62  ;;  %v11322_v52 = vmax.f32 %v11321_v51, 0.0  ;;  %v11331_v59 = vmax.f32 %v11330_v33, 0.0 }
 0xbf0   : > { %v4179_v49 = vadd.f32 %v4115_v3, %v3923_v32  ;;  %4029 = vxpose.xlu1.b32.cont [7/16] %v10629_v13, 128  ;;  %v10654_v14 = vmul.f32 %v11323_v0, %v11322_v52  ;;  %v10673_v3 = vmul.f32 %v10408_v1, %v11331_v59  ;;  %v11332_v32 = vld [vmem:[#allocation110_spill] sm:$0xff]  ;;  %v11336_v52 = vmov 2  }
 0xbf1   : > { %v11333_v12 = vmax.f32 %v11332_v32, 0.0  ;;  %v11337_v0 = vld [vmem:[#allocation98_spill] sm:$0xff]  ;;  %v3871_v59 = vmul.f32 0.5, %v10462_v22  ;;  %v3877_v22 = vmul.f32 0.5, %v10497_v11 }
 0xbf2   : > { %4243 = vst [vmem:[%s10398_s4 + $0x1e0] sm:$0xff] %v4179_v49  ;;  %4006 = vxpose.xlu0.b32.end [16/16] %v3861_v19, 128  ;;  %v10648_v19 = vmul.f32 %v11320_v44, %v11319_v31  ;;  %v11334_v49 = vld [vmem:[#allocation126_spill] sm:$0xff] }
 0xbf3   : > { %v10683_v48 = vmul.f32 %v7564_v37, %v11333_v12  ;;  %v11335_v36 = vmax.f32 %v11334_v49, 0.0  ;;  %v3865_v37 = vmul.f32 0.5, %v10431_v23  ;;  %v3873_v12 = vmul.f32 0.5, %v10474_v35 }
 0xbf4   : > { %4030 = vxpose.xlu1.b32.cont [8/16] %v10636_v30, 128 }
 0xbf5   : > { %v10689_v1 = vmul.f32 %v10541_v2, %v11335_v36 }
 0xbf8   : > { %4031 = vxpose.xlu1.b32.cont [9/16] %v10642_v21, 128 }
 0xbfc   : > { %4032 = vxpose.xlu1.b32.cont [10/16] %v10648_v19, 128 }
 0xc00   : > { %4033 = vxpose.xlu1.b32.cont [11/16] %v10654_v14, 128 }
 0xc04   : > { %4034 = vxpose.xlu1.b32.cont [12/16] %v10660_v10, 128 }
 0xc08   : > { %4035 = vxpose.xlu1.b32.cont [13/16] %v10666_v25, 128 }
 0xc09   : > { %v7139_v9 = vpop.f32.mrf.mxu0 }
 0xc0a   : > { %v5791_v6 = vadd.f32 %v10491_v27, %v7139_v9  ;;  %v3869_v9 = vmul.f32 0.5, %v10451_v55  ;;  %v3875_v55 = vmul.f32 0.5, %v10483_v50 }
 0xc0b   : > { %v5785_v38 = vpop.f32.mrf.mxu0 }
 0xc0c   : > { %5858 = vst.msk [vmem:[%s9798_s22 + $0xb8] sm:$0xff] %vm5834_vm3, %v5791_v6  ;;  %v5786_v62 = vadd.f32 %v10491_v27, %v5785_v38  ;;  %4036 = vxpose.xlu1.b32.cont [14/16] %v10673_v3, 128 }
 0xc0e   : > { %5857 = vst.msk [vmem:[%s9798_s22 + $0xb0] sm:$0xff] %vm5834_vm3, %v5786_v62 }
 0xc10   : > { %4037 = vxpose.xlu1.b32.cont [15/16] %v10683_v48, 128 }
 0xc14   : > { %4038 = vxpose.xlu1.b32.end [16/16] %v10689_v1, 128  ;;  %v3943_v39 = vpop.trf.xlu1 }
 0xc15   : > { %v4055_v15 = vmul.f32 0.5, %v3943_v39 }
 0xc17   : > { %v4119_v61 = vadd.f32 %v4055_v15, %v3863_v63 }
 0xc18   : > { %v3944_v31 = vpop.trf.xlu1 }
 0xc19   : > { %4183 = vst [vmem:[%s10398_s4] sm:$0xff] %v4119_v61  ;;  %v4057_v44 = vmul.f32 0.5, %v3944_v31 }
 0xc1b   : > { %v4121_v51 = vadd.f32 %v4057_v44, %v3865_v37  ;;  %7500 = vset.pattern.permute.xlu0 %v11336_v52  ;;  %v11338_v44 = vld [vmem:[#allocation129_spill] sm:$0xff] }
 0xc1c   : > { %5280 = vperm.xlu0 %7500, %v11337_v0   ;;  %v3945_v2 = vpop.trf.xlu1 }
 0xc1d   : > { %4185 = vst [vmem:[%s10398_s4 + $0x10] sm:$0xff] %v4121_v51  ;;  %v4059_v29 = vmul.f32 0.5, %v3945_v2  ;;  %v7142_v20 = vpop.f32.mrf.mxu0  ;;  %v3864_v51 = vmul.f32 0.5, %v11338_v44  ;;  %v11339_v2 = vld [vmem:[#allocation100_spill] sm:$0xff] }
 0xc1e   : > { %v5801_v5 = vadd.f32 %v10491_v27, %v7142_v20 }
 0xc1f   : > { %v4123_v57 = vadd.f32 %v4059_v29, %v3867_v45  ;;  %v5795_v23 = vpop.f32.mrf.mxu0  ;;  %v3879_v29 = vmul.f32 0.5, %v10512_v28  ;;  %v11341_v28 = vld [vmem:[#allocation131_spill] sm:$0xff] }
 0xc20   : > { %5860 = vst.msk [vmem:[%s9798_s22 + $0xc8] sm:$0xff] %vm5834_vm3, %v5801_v5  ;;  %v5796_v41 = vadd.f32 %v10491_v27, %v5795_v23  ;;  %v3946_v47 = vpop.trf.xlu1 }
 0xc21   : > { %4187 = vst [vmem:[%s10398_s4 + $0x20] sm:$0xff] %v4123_v57  ;;  %v4061_v6 = vmul.f32 0.5, %v3946_v47 }
 0xc22   : > { %5859 = vst.msk [vmem:[%s9798_s22 + $0xc0] sm:$0xff] %vm5834_vm3, %v5796_v41 }
 0xc23   : > { %v4125_v34 = vadd.f32 %v4061_v6, %v3869_v9  ;;  %v3881_v9 = vmul.f32 0.5, %v10521_v60  ;;  %v11342_v60 = vld [vmem:[#allocation132_spill] sm:$0xff] }
 0xc24   : > { %v3947_v33 = vpop.trf.xlu1 }
 0xc25   : > { %4189 = vst [vmem:[%s10398_s4 + $0x30] sm:$0xff] %v4125_v34  ;;  %v4063_v38 = vmul.f32 0.5, %v3947_v33 }
 0xc27   : > { %v4127_v62 = vadd.f32 %v4063_v38, %v3871_v59  ;;  %v3868_v59 = vmul.f32 0.5, %v11341_v28 }
 0xc28   : > { %v3948_v32 = vpop.trf.xlu1 }
 0xc29   : > { %4191 = vst [vmem:[%s10398_s4 + $0x40] sm:$0xff] %v4127_v62  ;;  %v4065_v49 = vmul.f32 0.5, %v3948_v32 }
 0xc2b   : > { %v4129_v36 = vadd.f32 %v4065_v49, %v3873_v12  ;;  %v3883_v12 = vmul.f32 0.5, %v10529_v18  ;;  %v11343_v18 = vld [vmem:[#allocation101_spill] sm:$0xff] }
 0xc2c   : > { %v3949_v39 = vpop.trf.xlu1  ;;  %v3872_v44 = vmul.f32 0.5, %v11343_v18 }
 0xc2d   : > { %4193 = vst [vmem:[%s10398_s4 + $0x50] sm:$0xff] %v4129_v36  ;;  %v4067_v63 = vmul.f32 0.5, %v3949_v39 }
 0xc2f   : > { %v4131_v15 = vadd.f32 %v4067_v63, %v3875_v55  ;;  %v3870_v55 = vmul.f32 0.5, %v11342_v60  ;;  %v3893_v60 = vmul.f32 0.5, %v10576_v46  ;;  %v11348_v46 = vld [vmem:[#allocation102_spill] sm:$0xff] }
 0xc30   : > { %v3950_v61 = vpop.trf.xlu1 }
 0xc31   : > { %4195 = vst [vmem:[%s10398_s4 + $0x60] sm:$0xff] %v4131_v15  ;;  %v4069_v31 = vmul.f32 0.5, %v3950_v61 }
 0xc32   : > { %7499 = vset.pattern.permute.xlu1 %v11336_v52  ;;  %v4007_v37 = vpop.trf.xlu0  ;;  %v11340_v52 = vld [vmem:[#allocation130_spill] sm:$0xff] }
 0xc33   : > { %v4133_v35 = vadd.f32 %v4069_v31, %v3877_v22  ;;  %v4056_v0 = vmul.f32 0.5, %v4007_v37  ;;  %5276 = vperm.xlu1 %7499, %v11339_v2   ;;  %v3866_v57 = vmul.f32 0.5, %v11340_v52  ;;  %v3885_v22 = vmul.f32 0.5, %v10537_v24  ;;  %v11344_v24 = vld [vmem:[#allocation71_spill] sm:$0xff] }
 0xc34   : > { %v3951_v45 = vpop.trf.xlu1 }
 0xc35   : > { %4197 = vst [vmem:[%s10398_s4 + $0x70] sm:$0xff] %v4133_v35  ;;  %v4120_v50 = vadd.f32 %v4056_v0, %v3864_v51  ;;  %v4071_v20 = vmul.f32 0.5, %v3951_v45  ;;  %v3887_v45 = vmul.f32 0.5, %v10548_v16  ;;  %v11345_v16 = vld [vmem:[#allocation103_spill] sm:$0xff] }
 0xc36   : > { %v4008_v5 = vpop.trf.xlu0 }
 0xc37   : > { %4184 = vst [vmem:[%s10398_s4 + $0x8] sm:$0xff] %v4120_v50  ;;  %v4135_v11 = vadd.f32 %v4071_v20, %v3879_v29  ;;  %v4058_v23 = vmul.f32 0.5, %v4008_v5  ;;  %v3874_v5 = vmul.f32 0.5, %v11344_v24 }
 0xc38   : > { %v3952_v41 = vpop.trf.xlu1 }
 0xc39   : > { %4199 = vst [vmem:[%s10398_s4 + $0x80] sm:$0xff] %v4135_v11  ;;  %v4122_v47 = vadd.f32 %v4058_v23, %v3866_v57  ;;  %v4073_v6 = vmul.f32 0.5, %v3952_v41  ;;  %v3889_v23 = vmul.f32 0.5, %v10563_v43  ;;  %v11346_v43 = vld [vmem:[#allocation73_spill] sm:$0xff] }
 0xc3a   : > { %v4009_v34 = vpop.trf.xlu0 }
 0xc3b   : > { %4186 = vst [vmem:[%s10398_s4 + $0x18] sm:$0xff] %v4122_v47  ;;  %v4137_v33 = vadd.f32 %v4073_v6, %v3881_v9  ;;  %v4060_v38 = vmul.f32 0.5, %v4009_v34  ;;  %v3876_v6 = vmul.f32 0.5, %v11345_v16 }
 0xc3c   : > { %v3953_v62 = vpop.trf.xlu1 }
 0xc3d   : > { %4201 = vst [vmem:[%s10398_s4 + $0x90] sm:$0xff] %v4137_v33  ;;  %v4124_v32 = vadd.f32 %v4060_v38, %v3868_v59  ;;  %v4075_v49 = vmul.f32 0.5, %v3953_v62  ;;  %v3891_v59 = vmul.f32 0.5, %v10569_v7  ;;  %v11347_v7 = vld [vmem:[#allocation96_spill] sm:$0xff] }
 0xc3e   : > { %v4010_v36 = vpop.trf.xlu0 }
 0xc3f   : > { %4188 = vst [vmem:[%s10398_s4 + $0x28] sm:$0xff] %v4124_v32  ;;  %v4139_v39 = vadd.f32 %v4075_v49, %v3883_v12  ;;  %v4062_v63 = vmul.f32 0.5, %v4010_v36  ;;  %v3878_v12 = vmul.f32 0.5, %v11346_v43 }
 0xc40   : > { %v3954_v15 = vpop.trf.xlu1 }
 0xc41   : > { %4203 = vst [vmem:[%s10398_s4 + $0xa0] sm:$0xff] %v4139_v39  ;;  %v4126_v61 = vadd.f32 %v4062_v63, %v3870_v55  ;;  %v4077_v31 = vmul.f32 0.5, %v3954_v15 }
 0xc42   : > { %v4011_v37 = vpop.trf.xlu0 }
 0xc43   : > { %4190 = vst [vmem:[%s10398_s4 + $0x38] sm:$0xff] %v4126_v61  ;;  %v4141_v35 = vadd.f32 %v4077_v31, %v3885_v22  ;;  %v4064_v51 = vmul.f32 0.5, %v4011_v37  ;;  %v3880_v61 = vmul.f32 0.5, %v11347_v7 }
 0xc44   : > { %v3955_v0 = vpop.trf.xlu1 }
 0xc45   : > { %4205 = vst [vmem:[%s10398_s4 + $0xb0] sm:$0xff] %v4141_v35  ;;  %v4128_v2 = vadd.f32 %v4064_v51, %v3872_v44  ;;  %v4079_v50 = vmul.f32 0.5, %v3955_v0  ;;  %v3896_v35 = vmul.f32 0.5, %v10582_v8  ;;  %v3882_v0 = vmul.f32 0.5, %v11348_v46  ;;  %v11349_v8 = vld [vmem:[#allocation75_spill] sm:$0xff] }
 0xc46   : > { %v4012_v29 = vpop.trf.xlu0 }
 0xc47   : > { %4192 = vst [vmem:[%s10398_s4 + $0x48] sm:$0xff] %v4128_v2  ;;  %v4143_v20 = vadd.f32 %v4079_v50, %v3887_v45  ;;  %v4066_v11 = vmul.f32 0.5, %v4012_v29  ;;  %v3898_v29 = vmul.f32 0.5, %v10588_v40 }
 0xc48   : > { %v3956_v52 = vpop.trf.xlu1 }
 0xc49   : > { %4207 = vst [vmem:[%s10398_s4 + $0xc0] sm:$0xff] %v4143_v20  ;;  %v4130_v57 = vadd.f32 %v4066_v11, %v3874_v5  ;;  %v4081_v41 = vmul.f32 0.5, %v3956_v52  ;;  %v3884_v11 = vmul.f32 0.5, %v11349_v8 }
 0xc4a   : > { %v4013_v47 = vpop.trf.xlu0 }
 0xc4b   : > { %4194 = vst [vmem:[%s10398_s4 + $0x58] sm:$0xff] %v4130_v57  ;;  %v4145_v9 = vadd.f32 %v4081_v41, %v3889_v23  ;;  %v4068_v34 = vmul.f32 0.5, %v4013_v47  ;;  %v3900_v41 = vmul.f32 0.5, %v10594_v4 }
 0xc4c   : > { %v3957_v33 = vpop.trf.xlu1 }
 0xc4d   : > { %4209 = vst [vmem:[%s10398_s4 + $0xd0] sm:$0xff] %v4145_v9  ;;  %v4132_v28 = vadd.f32 %v4068_v34, %v3876_v6  ;;  %v4083_v38 = vmul.f32 0.5, %v3957_v33  ;;  %v11350_v6 = vld [vmem:[#allocation107_spill] sm:$0xff] }
 0xc4e   : > { %v4014_v62 = vpop.trf.xlu0  ;;  %v3886_v40 = vmul.f32 0.5, %v11350_v6 }
 0xc4f   : > { %4196 = vst [vmem:[%s10398_s4 + $0x68] sm:$0xff] %v4132_v28  ;;  %v4147_v32 = vadd.f32 %v4083_v38, %v3891_v59  ;;  %v4070_v49 = vmul.f32 0.5, %v4014_v62  ;;  %v3902_v59 = vmul.f32 0.5, %v10603_v53 }
 0xc50   : > { %v3958_v36 = vpop.trf.xlu1 }
 0xc51   : > { %4211 = vst [vmem:[%s10398_s4 + $0xe0] sm:$0xff] %v4147_v32  ;;  %v4134_v39 = vadd.f32 %v4070_v49, %v3878_v12  ;;  %v4085_v55 = vmul.f32 0.5, %v3958_v36  ;;  %v11351_v12 = vld [vmem:[#allocation77_spill] sm:$0xff] }
 0xc52   : > { %v4015_v63 = vpop.trf.xlu0  ;;  %v3888_v49 = vmul.f32 0.5, %v11351_v12 }
 0xc53   : > { %4198 = vst [vmem:[%s10398_s4 + $0x78] sm:$0xff] %v4134_v39  ;;  %v4149_v15 = vadd.f32 %v4085_v55, %v3893_v60  ;;  %v4072_v22 = vmul.f32 0.5, %v4015_v63  ;;  %v3904_v63 = vmul.f32 0.5, %v10611_v56 }
 0xc54   : > { %v4039_v31 = vpop.trf.xlu1 }
 0xc55   : > { %4213 = vst [vmem:[%s10398_s4 + $0xf0] sm:$0xff] %v4149_v15  ;;  %v4136_v37 = vadd.f32 %v4072_v22, %v3880_v61  ;;  %v4088_v18 = vmul.f32 0.5, %v4039_v31  ;;  %v11352_v22 = vld [vmem:[#allocation105_spill] sm:$0xff] }
 0xc56   : > { %v4016_v44 = vpop.trf.xlu0  ;;  %v3890_v31 = vmul.f32 0.5, %v11352_v22 }
 0xc57   : > { %4200 = vst [vmem:[%s10398_s4 + $0x88] sm:$0xff] %v4136_v37  ;;  %v4152_v51 = vadd.f32 %v4088_v18, %v3896_v35  ;;  %v4074_v2 = vmul.f32 0.5, %v4016_v44  ;;  %v3906_v44 = vmul.f32 0.5, %v10617_v54  ;;  %v11354_v54 = vld [vmem:[#allocation81_spill] sm:$0xff] }
 0xc58   : > { %v4040_v45 = vpop.trf.xlu1 }
 0xc59   : > { %4216 = vst [vmem:[%s10398_s4 + $0x108] sm:$0xff] %v4152_v51  ;;  %v4138_v50 = vadd.f32 %v4074_v2, %v3882_v0  ;;  %v4090_v20 = vmul.f32 0.5, %v4040_v45  ;;  %v11353_v0 = vld [vmem:[#allocation79_spill] sm:$0xff] }
 0xc5a   : > { %v4017_v24 = vpop.trf.xlu0  ;;  %v3892_v2 = vmul.f32 0.5, %v11353_v0 }
 0xc5b   : > { %4202 = vst [vmem:[%s10398_s4 + $0x98] sm:$0xff] %v4138_v50  ;;  %v4154_v5 = vadd.f32 %v4090_v20, %v3898_v29  ;;  %v4076_v52 = vmul.f32 0.5, %v4017_v24  ;;  %v3908_v20 = vmul.f32 0.5, %v10629_v13  ;;  %v3912_v13 = vmul.f32 0.5, %v10642_v21 }
 0xc5c   : > { %v4041_v57 = vpop.trf.xlu1 }
 0xc5d   : > { %4218 = vst [vmem:[%s10398_s4 + $0x118] sm:$0xff] %v4154_v5  ;;  %v4140_v23 = vadd.f32 %v4076_v52, %v3884_v11  ;;  %v4092_v47 = vmul.f32 0.5, %v4041_v57  ;;  %v3894_v11 = vmul.f32 0.5, %v11354_v54 }
 0xc5e   : > { %v4018_v9 = vpop.trf.xlu0 }
 0xc5f   : > { %4204 = vst [vmem:[%s10398_s4 + $0xa8] sm:$0xff] %v4140_v23  ;;  %v4156_v16 = vadd.f32 %v4092_v47, %v3900_v41  ;;  %v4078_v34 = vmul.f32 0.5, %v4018_v9  ;;  %v3910_v41 = vmul.f32 0.5, %v10636_v30 }
 0xc60   : > { %v4042_v33 = vpop.trf.xlu1 }
 0xc61   : > { %4220 = vst [vmem:[%s10398_s4 + $0x128] sm:$0xff] %v4156_v16  ;;  %v4142_v28 = vadd.f32 %v4078_v34, %v3886_v40  ;;  %v4094_v38 = vmul.f32 0.5, %v4042_v33  ;;  %v7145_v62 = vpop.f32.mrf.mxu0 }
 0xc62   : > { %v5811_v32 = vadd.f32 %v10491_v27, %v7145_v62  ;;  %v4019_v4 = vpop.trf.xlu0 }
 0xc63   : > { %4206 = vst [vmem:[%s10398_s4 + $0xb8] sm:$0xff] %v4142_v28  ;;  %v4158_v43 = vadd.f32 %v4094_v38, %v3902_v59  ;;  %v4080_v36 = vmul.f32 0.5, %v4019_v4  ;;  %v5805_v39 = vpop.f32.mrf.mxu0  ;;  %v3914_v38 = vmul.f32 0.5, %v10648_v19  ;;  %v3916_v4 = vmul.f32 0.5, %v10654_v14 }
 0xc64   : > { %5862 = vst.msk [vmem:[%s9798_s22 + $0xd8] sm:$0xff] %vm5834_vm3, %v5811_v32  ;;  %v5806_v60 = vadd.f32 %v10491_v27, %v5805_v39  ;;  %v4043_v55 = vpop.trf.xlu1  ;;  %v3920_v19 = vmul.f32 0.5, %v10666_v25  ;;  %v3922_v14 = vmul.f32 0.5, %v10673_v3 }
 0xc65   : > { %4222 = vst [vmem:[%s10398_s4 + $0x138] sm:$0xff] %v4158_v43  ;;  %v4144_v53 = vadd.f32 %v4080_v36, %v3888_v49  ;;  %v4096_v15 = vmul.f32 0.5, %v4043_v55  ;;  %v3918_v36 = vmul.f32 0.5, %v10660_v10  ;;  %v3924_v10 = vmul.f32 0.5, %v10683_v48 }
 0xc66   : > { %5861 = vst.msk [vmem:[%s9798_s22 + $0xd0] sm:$0xff] %vm5834_vm3, %v5806_v60  ;;  %v4020_v7 = vpop.trf.xlu0 }
 0xc67   : > { %4208 = vst [vmem:[%s10398_s4 + $0xc8] sm:$0xff] %v4144_v53  ;;  %v4160_v61 = vadd.f32 %v4096_v15, %v3904_v63  ;;  %v4082_v37 = vmul.f32 0.5, %v4020_v7 }
 0xc68   : > { %v4044_v35 = vpop.trf.xlu1 }
 0xc69   : > { %4224 = vst [vmem:[%s10398_s4 + $0x148] sm:$0xff] %v4160_v61  ;;  %v4146_v18 = vadd.f32 %v4082_v37, %v3890_v31  ;;  %v4098_v51 = vmul.f32 0.5, %v4044_v35 }
 0xc6a   : > { %v4021_v46 = vpop.trf.xlu0 }
 0xc6b   : > { %4210 = vst [vmem:[%s10398_s4 + $0xd8] sm:$0xff] %v4146_v18  ;;  %v4162_v56 = vadd.f32 %v4098_v51, %v3906_v44  ;;  %v4084_v45 = vmul.f32 0.5, %v4021_v46  ;;  %v3926_v18 = vmul.f32 0.5, %v10689_v1 }
 0xc6c   : > { %v4045_v50 = vpop.trf.xlu1 }
 0xc6d   : > { %4226 = vst [vmem:[%s10398_s4 + $0x158] sm:$0xff] %v4162_v56  ;;  %v4148_v29 = vadd.f32 %v4084_v45, %v3892_v2  ;;  %v4100_v24 = vmul.f32 0.5, %v4045_v50 }
 0xc6e   : > { %v4022_v5 = vpop.trf.xlu0 }
 0xc6f   : > { %4212 = vst [vmem:[%s10398_s4 + $0xe8] sm:$0xff] %v4148_v29  ;;  %v4164_v8 = vadd.f32 %v4100_v24, %v3908_v20  ;;  %v4086_v52 = vmul.f32 0.5, %v4022_v5 }
 0xc70   : > { %v4046_v57 = vpop.trf.xlu1 }
 0xc71   : > { %4228 = vst [vmem:[%s10398_s4 + $0x168] sm:$0xff] %v4164_v8  ;;  %v4150_v23 = vadd.f32 %v4086_v52, %v3894_v11  ;;  %v4102_v47 = vmul.f32 0.5, %v4046_v57 }
 0xc73   : > { %4214 = vst [vmem:[%s10398_s4 + $0xf8] sm:$0xff] %v4150_v23  ;;  %v4166_v9 = vadd.f32 %v4102_v47, %v3910_v41 }
 0xc74   : > { %v4047_v16 = vpop.trf.xlu1 }
 0xc75   : > { %4230 = vst [vmem:[%s10398_s4 + $0x178] sm:$0xff] %v4166_v9  ;;  %v4104_v6 = vmul.f32 0.5, %v4047_v16  ;;  %v7148_v40 = vpop.f32.mrf.mxu0 }
 0xc76   : > { %v5821_v34 = vadd.f32 %v10491_v27, %v7148_v40 }
 0xc77   : > { %v4168_v33 = vadd.f32 %v4104_v6, %v3912_v13  ;;  %v5815_v28 = vpop.f32.mrf.mxu0 }
 0xc78   : > { %5864 = vst.msk [vmem:[%s9798_s22 + $0xe8] sm:$0xff] %vm5834_vm3, %v5821_v34  ;;  %v5816_v30 = vadd.f32 %v10491_v27, %v5815_v28  ;;  %v4048_v59 = vpop.trf.xlu1 }
 0xc79   : > { %4232 = vst [vmem:[%s10398_s4 + $0x188] sm:$0xff] %v4168_v33  ;;  %v4106_v62 = vmul.f32 0.5, %v4048_v59 }
 0xc7a   : > { %5863 = vst.msk [vmem:[%s9798_s22 + $0xe0] sm:$0xff] %vm5834_vm3, %v5816_v30 }
 0xc7b   : > { %v4170_v21 = vadd.f32 %v4106_v62, %v3914_v38 }
 0xc7c   : > { %v4049_v32 = vpop.trf.xlu1 }
 0xc7d   : > { %4234 = vst [vmem:[%s10398_s4 + $0x198] sm:$0xff] %v4170_v21  ;;  %v4108_v43 = vmul.f32 0.5, %v4049_v32 }
 0xc7f   : > { %v4172_v12 = vadd.f32 %v4108_v43, %v3916_v4 }
 0xc80   : > { %v4050_v49 = vpop.trf.xlu1 }
 0xc81   : > { %4236 = vst [vmem:[%s10398_s4 + $0x1a8] sm:$0xff] %v4172_v12  ;;  %v4110_v39 = vmul.f32 0.5, %v4050_v49 }
 0xc83   : > { %v4174_v60 = vadd.f32 %v4110_v39, %v3918_v36 }
 0xc84   : > { %v4051_v55 = vpop.trf.xlu1 }
 0xc85   : > { %4238 = vst [vmem:[%s10398_s4 + $0x1b8] sm:$0xff] %v4174_v60  ;;  %v4112_v53 = vmul.f32 0.5, %v4051_v55 }
 0xc87   : > { %v4176_v63 = vadd.f32 %v4112_v53, %v3920_v19 }
 0xc88   : > { %v4052_v15 = vpop.trf.xlu1 }
 0xc89   : > { %4240 = vst [vmem:[%s10398_s4 + $0x1c8] sm:$0xff] %v4176_v63  ;;  %v4114_v7 = vmul.f32 0.5, %v4052_v15 }
 0xc8b   : > { %v4178_v61 = vadd.f32 %v4114_v7, %v3922_v14 }
 0xc8c   : > { %v4053_v22 = vpop.trf.xlu1 }
 0xc8d   : > { %4242 = vst [vmem:[%s10398_s4 + $0x1d8] sm:$0xff] %v4178_v61  ;;  %v4116_v31 = vmul.f32 0.5, %v4053_v22 }
 0xc8f   : > { %v4180_v37 = vadd.f32 %v4116_v31, %v3924_v10 }
 0xc90   : > { %v4054_v35 = vpop.trf.xlu1 }
 0xc91   : > { %4244 = vst [vmem:[%s10398_s4 + $0x1e8] sm:$0xff] %v4180_v37  ;;  %v4118_v25 = vmul.f32 0.5, %v4054_v35 }
 0xc93   : > { %v4182_v44 = vadd.f32 %v4118_v25, %v3926_v18 }
 0xc95   : > { %4246 = vst [vmem:[%s10398_s4 + $0x1f8] sm:$0xff] %v4182_v44 }
 0xc97   : > { %v5281_v51 = vpop.permute.xlu0 %5280 }
 0xc98   : > { %v5318_v3 = vmul.f32 %v9600_v17, %v5281_v51 }
 0xc9a   : > { %v5350_v46 = vadd.f32 %v5318_v3, %v10605_v42 }
 0xc9c   : > { %v5465_v1 = vadd.f32 %v9611_v26, %v5350_v46 }
 0xc9e   : > { %v5497_v50 = vmax.f32 %v5465_v1, 0.0 }
 0xcae   : > { %v5277_v56 = vpop.permute.xlu1 %5276 }
 0xcaf   : > { %v5317_v48 = vmul.f32 %v9600_v17, %v5277_v56 }
 0xcb1   : > { %v5349_v0 = vadd.f32 %v5317_v48, %v10624_v58 }
 0xcb3   : > { %v5464_v2 = vadd.f32 %v9611_v26, %v5349_v0 }
 0xcb5   : > { %v5496_v45 = vmax.f32 %v5464_v2, 0.0 }
 0xcb7   : > { %7149 = vmatprep.mubr.msk.f32.mxu0 %vm1610_vm0, %v5496_v45 }
 0xcb8   : > { %7150 = vmatmul.mubr.msk.f32.gmra.mxu0 %vm1610_vm0, %v5497_v50 }
 0xcb9   : > { %7943 = shalt.err (!%p7940_p8)
}
 0xcba   : > { %s7944_s4 = scalar_lea.hbm %s10820_s23, 8192  ;;  %s7948_s2 = scalar_lea.hbm %s8282_s21, 16384 }
 0xcbb   : > { %p7945_p0 = scmp.ne.s32.totalorder %s10820_s23, %s7944_s4  ;;  %p7949_p1 = scmp.lt.s32.totalorder %s10820_s23, %s8282_s21 }
 0xcbc   : > { %p7950_p13 = scmp.lt.s32.totalorder %s7948_s2, %s7944_s4 }
 0xcbd   : > { %p7946_p11 = pnand %p7945_p0, %p11355_p2 }
 0xcbe   : > { %p7951_p9 = por %p7950_p13, %p7949_p1 }
 0xcbf   : > { %p7947_p6 = pneg %p7946_p11 }
 0xcc1   : > { %p7952_p5 = pnand %p7951_p9, %p7947_p6 }
 0xcc3   : > { %7955 = shalt.err (!%p7952_p5)
}
 0xcc4   : > { %s8111_s14 = smov 256   ;;  %s8112_s18 = smov 16  }
 0xcc5   : > { %7208 = dma.vmem_to_hbm [thread:$0]  (%p11355_p2), %s10823_s26, 8192, %s10820_s23, %s5873_s16, %s8111_s14, %s8111_s14, %s8112_s18  }
 0xcc6   : > { %s6434_s25 = sshll.u32 %s8310_s15, 4  ;;  %s5909_s7 = sshll.u32 %s1228_s11, 4  ;;  %s5910_s7 = int_to_ptr.vmem [resolvable:$true] %s5909_s7 }
 0xcc7   : > { %s5907_s4 = scalar_lea.hbm %s8287_s5, %s6434_s25  ;;  %s5878_s2 = scalar_lea.sflag [#allocation27], %s8759_s0 }
 0xcc8   : > { %s7956_s1 = scalar_lea.vmem %s5910_s7, 16  ;;  %s8113_s3 = smov [#allocation26]  }
 0xcc9   : > { %p7957_p12 = scmp.ne.s32.totalorder %s5910_s7, %s7956_s1  ;;  %s7960_s6 = sshll.u32 %s8113_s3, 4  ;;  %s7961_s6 = int_to_ptr.vmem [resolvable:$false] %s7960_s6 }
 0xcca   : > { %s7962_s8 = scalar_lea.vmem %s7961_s6, 32  ;;  %p7963_p7 = scmp.lt.s32.totalorder %s5910_s7, %s7961_s6 }
 0xccb   : > { %p7958_p10 = pnand %p7957_p12, %p11355_p2  ;;  %p7964_p4 = scmp.lt.s32.totalorder %s7962_s8, %s7956_s1 }
 0xccd   : > { %p7959_p3 = pneg %p7958_p10  ;;  %p7965_p8 = por %p7964_p4, %p7963_p7 }
 0xccf   : > { %p7966_p0 = pnand %p7965_p8, %p7959_p3 }
 0xcd1   : > { %7969 = shalt.err (!%p7966_p0)
}
 0xcd2   : > { %s7970_s15 = scalar_lea.hbm %s5907_s4, 16  ;;  %s7974_s0 = scalar_lea.hbm %s8287_s5, 32 }
 0xcd3   : > { %p7971_p11 = scmp.ne.s32.totalorder %s5907_s4, %s7970_s15  ;;  %p7975_p13 = scmp.lt.s32.totalorder %s5907_s4, %s8287_s5 }
 0xcd4   : > { %p7976_p9 = scmp.lt.s32.totalorder %s7974_s0, %s7970_s15 }
 0xcd5   : > { %p7972_p6 = pnand %p7971_p11, %p11355_p2 }
 0xcd6   : > { %p7977_p5 = por %p7976_p9, %p7975_p13 }
 0xcd7   : > { %p7973_p1 = pneg %p7972_p6 }
 0xcd9   : > { %p7978_p12 = pnand %p7977_p5, %p7973_p1 }
 0xcdb   : > { %7981 = shalt.err (!%p7978_p12)
}
 0xcdc   : > { %7209 = dma.vmem_to_hbm [thread:$0]  (%p11355_p2), %s5910_s7, 16, %s5907_s4, %s5878_s2  }
 0xd78   : > { %v7151_v17 = vpop.f32.mrf.mxu0 }
 0xd79   : > { %v5831_v26 = vadd.f32 %v10491_v27, %v7151_v17 }
 0xd7a   : > { %v5825_v42 = vpop.f32.mrf.mxu0 }
 0xd7b   : > { %5866 = vst.msk [vmem:[%s9798_s22 + $0xf8] sm:$0xff] %vm5834_vm3, %v5831_v26  ;;  %v5826_v58 = vadd.f32 %v10491_v27, %v5825_v42 }
 0xd7d   : > { %5865 = vst.msk [vmem:[%s9798_s22 + $0xf0] sm:$0xff] %vm5834_vm3, %v5826_v58 }
 0xd7e PF: > { %s11356_s3 = sld [smem:[#allocation62_spill]] }
 0xd7f   : > { %s11357_s8 = sld [smem:[#allocation60_spill]] }
 0xd80   : > { %s11358_s6 = sld [smem:[#allocation65_spill]] }
 0xd84   : > { %p7290_p10 = scmp.ge.s32.totalorder %s11356_s3, 2 }
 0xd85   : > { %s5929_s11 = sand.u32 1, %s11357_s8  }
 0xd86   : > { %p11359_p3 = scmp.ne.s32.totalorder %s11358_s6, 0  ;;  %s5930_s28 = scalar_lea.sflag [#allocation4], %s5929_s11 }
 0xd88   : > { %p7256_p7 = pnand %p7290_p10, %p11359_p3 }
 0xd8a   : > { %p7257_p4 = pneg %p7256_p7 }
 0xd8c   : > { %8031 = dma.done.wait (%p7257_p4), %s5930_s28, 8192  }
 0xd8d   : > { %8033 = vsyncadd (%p7257_p4), %s5930_s28, 4294959104  ;;  %s5939_s1 = scalar_lea.sflag [#allocation27], %s5929_s11 }
 0xd8e   : > { %8035 = dma.done.wait (%p7257_p4), %s5939_s1, 16  }
 0xd8f   : > { %8037 = vsyncadd (%p7257_p4), %s5939_s1, 4294967280  ;;  %s11360_s0 = sld [smem:[#allocation63_spill]]  ;;  %s11363_s7 = smov %s8044_s10 }
 0xd90   : > { %s11361_s23 = sld [smem:[#allocation61_spill]] }
 0xd91   : > { %s11362_s11 = sld [smem:[#allocation64_spill]] }
 0xd95   : > { %p89_p2 = scmp.ge.s32.totalorder %s11360_s0, 4  }
 0xd96   : > { %s11364_s10 = smov %s11361_s23 }
 0xd97   :  { %91 = sbr.rel (!%p89_p2) target bundleno = 70 (0x46), region = 298 }
 0xd9c   :  { %5943 = vsyncpa [#allocation3], 1 }
 0xd9d   :  { %5945 = vsyncpa [#allocation3 + $0x1], 1 }
 0xd9e   :  { %5946 = vsyncpa [#allocation6], 1 }
 0xd9f   :  { %5947 = vsyncpa [#allocation9], 1 }
 0xda0   :  { %5948 = vsyncpa [#allocation12], 1 }
 0xda1   :  { %5949 = vsyncpa [#allocation15], 1 }
 0xda2   :  { %5950 = vsyncpa [#allocation18], 1 }
 0xda3   :  { %5951 = vsyncpa [#allocation21], 1 }
 0xda4   :  { %5952 = vsyncpa [#allocation24], 1 }
 0xda5   :  { %5953 = vsyncpa [#allocation4], 1 }
 0xda6   :  { %5955 = vsyncpa [#allocation4 + $0x1], 1 }
 0xda7   :  { %5956 = vsyncpa [#allocation27], 1 }
 0xda8   :  { %5958 = vsyncpa [#allocation27 + $0x1], 1 }

</bundles_post_ra>
